<compile_context>
chip_gen: v6e
topology: v6e:2x2x1
jax: 0.10.0
libtpu: 0.0.40
codegen_flags: <defaults>
</compile_context>

<pallas_src>
import numpy as np
import jax
import jax.numpy as jnp
from jax import lax
from jax.experimental import pallas as pl
from jax.experimental.pallas import tpu as pltpu


def _fused_encoder_kernel(x_ref, w1_ref, t1_ref, w2_ref, t2_ref, o_ref,
                          ap1_ref, ap2_ref):
    # x_ref  : (ib, H, W*Cin)          ib input images, lane-dense rows (w, cin)
    # w1_ref : (3, W*Cin, W*C1)        stage-1 banded weights (BN scale folded)
    # t1_ref : (1, W*C1)               stage-1 shift (conv bias + BN shift), tiled over w
    # w2_ref : (3, W*C1, W*C2)         stage-2 banded weights
    # t2_ref : (1, W*C2)               stage-2 shift
    # o_ref  : (ib, H, W*C2)           lane-dense output
    # ap1_ref: VMEM (ib*(H+2), W*Cin)  row-padded stage-1 input
    # ap2_ref: VMEM (ib*(H+2), W*C1)   row-padded stage-1 activation (stays in VMEM)
    ib, H, WCin = x_ref.shape
    Hp = H + 2
    P = ib * Hp - 2                      # rows of valid+boundary GEMM output
    WC1 = w1_ref.shape[2]

    # ---- stage-1 padded activation: zero ONLY the halo rows, fill interiors ----
    for b in range(ib):
        r0 = b * Hp
        ap1_ref[r0:r0 + 1, :] = jnp.zeros((1, WCin), jnp.float32)
        ap1_ref[r0 + H + 1:r0 + H + 2, :] = jnp.zeros((1, WCin), jnp.float32)
        ap1_ref[r0 + 1:r0 + 1 + H, :] = x_ref[b]

    # ---- stage 1: 3 row-shifted GEMMs (dx taps + W-padding folded into K) ----
    s1 = jnp.dot(ap1_ref[0:P, :], w1_ref[0], preferred_element_type=jnp.float32)
    s1 = s1 + jnp.dot(ap1_ref[1:P + 1, :], w1_ref[1], preferred_element_type=jnp.float32)
    s1 = s1 + jnp.dot(ap1_ref[2:P + 2, :], w1_ref[2], preferred_element_type=jnp.float32)
    y1 = jnp.maximum(s1 + t1_ref[...], 0.0)          # (P, W*C1)

    # ---- stage-2 padded activation built in VMEM (interior first, halos re-zeroed) ----
    # Rows of y1 at inter-image boundaries are garbage but land exactly on the
    # halo rows, which are zeroed right after.
    ap2_ref[1:1 + P, :] = y1
    for b in range(ib):
        r0 = b * Hp
        ap2_ref[r0:r0 + 1, :] = jnp.zeros((1, WC1), jnp.float32)
        ap2_ref[r0 + H + 1:r0 + H + 2, :] = jnp.zeros((1, WC1), jnp.float32)

    # ---- stage 2: same 3 GEMMs pattern ----
    s2 = jnp.dot(ap2_ref[0:P, :], w2_ref[0], preferred_element_type=jnp.float32)
    s2 = s2 + jnp.dot(ap2_ref[1:P + 1, :], w2_ref[1], preferred_element_type=jnp.float32)
    s2 = s2 + jnp.dot(ap2_ref[2:P + 2, :], w2_ref[2], preferred_element_type=jnp.float32)
    y2 = jnp.maximum(s2 + t2_ref[...], 0.0)           # (P, W*C2)

    # ---- lane-dense output stores (W*C2 = 512, a multiple of 128 -> unmasked vst) ----
    for b in range(ib):
        r0 = b * Hp
        o_ref[b] = y2[r0:r0 + H, :].astype(o_ref.dtype)


def _build_banded_stage(w_hwio, scale, shift, bias, W):
    """Fold BN scale into the conv weights and lower the 3x3 conv to three
    banded (block-Toeplitz) matrices M[dy] of shape (W*Cin, W*Cout):
        M[dy, (wo+dx-1)*Cin + cin, wo*Cout + cout] = w[dy, dx, cin, cout] * scale[cout]
    (entries with wo+dx-1 outside [0, W) are omitted == SAME padding along W).
    Also returns the shift (conv bias folded into the BN shift) tiled over w."""
    w = np.asarray(w_hwio, np.float32) * np.asarray(scale, np.float32)[None, None, None, :]
    Kh, Kw, Cin, Cout = w.shape
    M = np.zeros((3, W * Cin, W * Cout), np.float32)
    for dy in range(Kh):
        for dx in range(Kw):
            for wo in range(W):
                wi = wo + dx - 1
                if 0 <= wi < W:
                    M[dy, wi * Cin:(wi + 1) * Cin, wo * Cout:(wo + 1) * Cout] = w[dy, dx]
    t = np.tile(np.asarray(bias, np.float32) * np.asarray(scale, np.float32)
                + np.asarray(shift, np.float32), W).reshape(1, W * Cout)
    return jnp.asarray(M), jnp.asarray(t, dtype=jnp.float32)


def fused_encoder2(x_nhwc, banded1, banded2, images_per_step=None):
    """Two fused stages of [3x3 conv (pad 1) + BN (folded) + ReLU] in one pallas_call.

    bandedN = (M: (3, W*Cin, W*Cout), t: (1, W*Cout)) from _build_banded_stage.
    x_nhwc: (B, H, W, Cin).  Returns (B, H, W, Cout_stage2).
    """
    w1b, t1 = banded1
    w2b, t2 = banded2
    B, H, W, Cin = x_nhwc.shape
    WC1 = w1b.shape[2]
    WC2 = w2b.shape[2]
    C2 = WC2 // W
    ib = B if images_per_step is None else images_per_step   # ib=1 -> v7x megacore batch grid
    assert B % ib == 0
    x2d = x_nhwc.reshape(B, H, W * Cin)   # pure collapse of (w, cin) onto the lane axis

    # TODO(synk): for realistic BEV sizes (e.g. 512x512) add an H-tile grid axis with a
    # 2-row halo and tile W with per-tile banded weights + 1-column halo (the banded
    # matrix scales as (W*C)^2), sized for v7x's 64 MiB VMEM; and switch the banded
    # weights/activations to bf16 with f32 accumulation on v6e/v7x (needs a looser test
    # tolerance).
    out = pl.pallas_call(
        _fused_encoder_kernel,
        out_shape=jax.ShapeDtypeStruct((B, H, WC2), x_nhwc.dtype),
        grid=(B // ib,),
        in_specs=[
            pl.BlockSpec((ib, H, W * Cin), lambda g: (g, 0, 0)),
            # Constant index maps: weights/shifts are not re-fetched across steps.
            pl.BlockSpec(w1b.shape, lambda g: (0, 0, 0)),
            pl.BlockSpec(t1.shape, lambda g: (0, 0)),
            pl.BlockSpec(w2b.shape, lambda g: (0, 0, 0)),
            pl.BlockSpec(t2.shape, lambda g: (0, 0)),
        ],
        out_specs=pl.BlockSpec((ib, H, WC2), lambda g: (g, 0, 0)),
        scratch_shapes=[
            pltpu.VMEM((ib * (H + 2), W * Cin), jnp.float32),   # row-padded input
            pltpu.VMEM((ib * (H + 2), WC1), jnp.float32),       # row-padded stage-1 act
        ],
        compiler_params=pltpu.CompilerParams(
            dimension_semantics=("parallel",)),
    )(x2d, w1b, t1, w2b, t2)

    # Undo the lane-dense (H, W*C2) presentation; pure reshape (no transpose).
    return out.reshape(B, H, W, C2)


class SingleStageDetector:
    """JAX/Pallas port of SingleStageDetector (inference forward only)."""

    def __init__(self, classes, voxel_size, pc_area_scope, last_kernel_size,
                 num_dir_bins, cls_weight, reg_weight, dir_weight,
                 in_channels=4, encoder_channels=(32, 32), seed=0, **kwargs):
        self.classes = classes
        self.num_dir_bins = num_dir_bins
        self.cls_weight = cls_weight
        self.reg_weight = reg_weight
        self.dir_weight = dir_weight
        self.voxel_size = np.array(voxel_size, dtype=np.float64)
        self.pc_area_scope = np.array(pc_area_scope, dtype=np.float64)
        self.loc_max = np.round(
            (self.pc_area_scope[:, 1] - self.pc_area_scope[:, 0]) / self.voxel_size)
        self.loc_min = np.zeros_like(self.loc_max)
        H = (self.pc_area_scope[0][1] - self.pc_area_scope[0][0]) / self.voxel_size[0]
        W = (self.pc_area_scope[2][1] - self.pc_area_scope[2][0]) / self.voxel_size[2]
        self.H, self.W = int(round(H)), int(round(W))
        self.nms_configs = dict(roi_threshold=0.1, nms_threshold=0.01, joint_nms=True,
                                before_nms_max=4096, after_nms_max=500)

        # Deterministic synthetic encoder params (2 stages of Conv3x3 + BN + ReLU).
        assert len(encoder_channels) == 2, "fused kernel handles exactly 2 stages"
        key = jax.random.PRNGKey(seed)
        self.encoder_params = []   # raw (w, b, scale, shift): used by the reference
        self.banded_params = []    # (M: (3, W*Cin, W*Cout), t: (1, W*Cout)): used by kernel
        cin = in_channels
        eps = 1e-5
        for cout in encoder_channels:
            key, kw, kb = jax.random.split(key, 3)
            fan_in = cin * 9
            w = jax.random.normal(kw, (3, 3, cin, cout), jnp.float32) / np.sqrt(fan_in)
            b = jax.random.normal(kb, (cout,), jnp.float32) * 0.01
            # BN with reset_parameters(): gamma=1, beta=0; running stats mean=0, var=1.
            gamma = jnp.ones((cout,), jnp.float32)
            beta = jnp.zeros((cout,), jnp.float32)
            mean = jnp.zeros((cout,), jnp.float32)
            var = jnp.ones((cout,), jnp.float32)
            scale = gamma / jnp.sqrt(var + eps)
            shift = beta - mean * scale
            self.encoder_params.append((w, b, scale, shift))
            # One-time host-side lowering: BN scale folded into the weights, conv bias
            # folded into the shift, 3x3 conv lowered to 3 banded GEMM matrices.
            self.banded_params.append(
                _build_banded_stage(np.asarray(w), np.asarray(scale), np.asarray(shift),
                                    np.asarray(b), self.W))
            cin = cout

    def encoder(self, x_nhwc):
        """Returns the list of stage outputs produced by the Pallas encoder.

        Both stages are fused in a single pallas_call (the stage-1 activation
        stays in VMEM), so intermediate feature maps are intentionally not
        materialized; forward() only consumes the last element anyway.
        """
        last = fused_encoder2(x_nhwc, self.banded_params[0], self.banded_params[1])
        return [last]

    def forward(self, x_nchw):
        # PyTorch forward: features = self.encoder(x)[-1]; return   (returns None).
        x_nhwc = jnp.transpose(x_nchw, (0, 2, 3, 1))
        features = self.encoder(x_nhwc)[-1]
        # NOTE: the reference module discards `features` and returns None (early
        # `return`). We return the computed features so the kernel can be verified.
        # TODO(synk): self.rpn / self.head / to_bev / post_processing NMS are dead code
        # after the early return (and None in __init__); not implemented.
        return features

    __call__ = forward


def _reference_forward(det, x_nchw):
    """Pure-JAX reference (lax.conv) for correctness check of the Pallas path."""
    h = jnp.transpose(x_nchw, (0, 2, 3, 1))
    for (w, b, scale, shift) in det.encoder_params:
        y = lax.conv_general_dilated(
            h, w, window_strides=(1, 1), padding="SAME",
            dimension_numbers=("NHWC", "HWIO", "NHWC"))
        y = (y + b) * scale + shift
        h = jnp.maximum(y, 0.0)
    return h


if __name__ == "__main__":
    # pc_area_scope / voxel_size chosen so H = W = 16 (matches small spatial=16).
    det = SingleStageDetector(
        classes=["Car"],
        voxel_size=[0.1, 0.1, 0.1],
        pc_area_scope=[[0.0, 1.6], [-1.0, 1.0], [0.0, 1.6]],
        last_kernel_size=1,
        num_dir_bins=2,
        cls_weight=1.0, reg_weight=2.0, dir_weight=0.2,
        in_channels=4, encoder_channels=(32, 32), seed=0,
    )

    key = jax.random.PRNGKey(0)
    x = jax.random.normal(key, (2, 4, det.H, det.W), jnp.float32)   # NCHW, like PyTorch

    out = det(x)
    out = jax.block_until_ready(out)

    ref = jax.block_until_ready(_reference_forward(det, x))
    assert out.shape == (2, det.H, det.W, 32), out.shape
    np.testing.assert_allclose(np.asarray(out), np.asarray(ref), rtol=1e-4, atol=1e-4)

    print("KERNEL_OK")
</pallas_src>

<mosaic_0001>
module attributes {stable_mosaic.version = 11 : i64} {
  func.func @_fused_encoder_kernel(%arg0: i32, %arg1: memref<2x16x64xf32, #tpu.memory_space<vmem>>, %arg2: memref<3x64x512xf32, #tpu.memory_space<vmem>>, %arg3: memref<1x512xf32, #tpu.memory_space<vmem>>, %arg4: memref<3x512x512xf32, #tpu.memory_space<vmem>>, %arg5: memref<1x512xf32, #tpu.memory_space<vmem>>, %arg6: memref<2x16x512xf32, #tpu.memory_space<vmem>>, %arg7: memref<36x64xf32, #tpu.memory_space<vmem>>, %arg8: memref<36x512xf32, #tpu.memory_space<vmem>>) attributes {dimension_semantics = [#tpu.dimension_semantics<parallel>], iteration_bounds = array<i64: 1>, scalar_prefetch = 0 : i64, scratch_operands = 2 : i64, tpu.core_type = #tpu.core_type<tc>, window_params = [{transform_indices = @transform_0, window_bounds = array<i64: 2, 16, 64>}, {pipeline_mode = #tpu.pipeline_mode<synchronous>, transform_indices = @transform_1, window_bounds = array<i64: 3, 64, 512>}, {pipeline_mode = #tpu.pipeline_mode<synchronous>, transform_indices = @transform_2, window_bounds = array<i64: 1, 512>}, {pipeline_mode = #tpu.pipeline_mode<synchronous>, transform_indices = @transform_3, window_bounds = array<i64: 3, 512, 512>}, {pipeline_mode = #tpu.pipeline_mode<synchronous>, transform_indices = @transform_4, window_bounds = array<i64: 1, 512>}, {transform_indices = @transform_5, window_bounds = array<i64: 2, 16, 512>}]} {
    %cst = arith.constant 0.000000e+00 : f32
    %0 = vector.broadcast %cst : f32 to vector<1x64xf32>
    %c0 = arith.constant 0 : index
    %c0_0 = arith.constant 0 : index
    %1 = vector.load %arg7[%c0, %c0_0] : memref<36x64xf32, #tpu.memory_space<vmem>>, vector<1x64xf32>
    tpu.vector_store %arg7[%c0, %c0_0], %0 {strides = array<i32>} : memref<36x64xf32, #tpu.memory_space<vmem>>, vector<1x64xf32>,
    %cst_1 = arith.constant 0.000000e+00 : f32
    %2 = vector.broadcast %cst_1 : f32 to vector<1x64xf32>
    %c17 = arith.constant 17 : index
    %c0_2 = arith.constant 0 : index
    %3 = vector.load %arg7[%c17, %c0_2] : memref<36x64xf32, #tpu.memory_space<vmem>>, vector<1x64xf32>
    tpu.vector_store %arg7[%c17, %c0_2], %2 {strides = array<i32>} : memref<36x64xf32, #tpu.memory_space<vmem>>, vector<1x64xf32>,
    %c0_3 = arith.constant 0 : index
    %c0_4 = arith.constant 0 : index
    %c0_5 = arith.constant 0 : index
    %4 = vector.load %arg1[%c0_3, %c0_4, %c0_5] : memref<2x16x64xf32, #tpu.memory_space<vmem>>, vector<1x16x64xf32>
    %5 = vector.shape_cast %4 : vector<1x16x64xf32> to vector<16x64xf32>
    %c1 = arith.constant 1 : index
    %c0_6 = arith.constant 0 : index
    %6 = vector.load %arg7[%c1, %c0_6] : memref<36x64xf32, #tpu.memory_space<vmem>>, vector<16x64xf32>
    tpu.vector_store %arg7[%c1, %c0_6], %5 {strides = array<i32>} : memref<36x64xf32, #tpu.memory_space<vmem>>, vector<16x64xf32>,
    %cst_7 = arith.constant 0.000000e+00 : f32
    %7 = vector.broadcast %cst_7 : f32 to vector<1x64xf32>
    %c18 = arith.constant 18 : index
    %c0_8 = arith.constant 0 : index
    %8 = vector.load %arg7[%c18, %c0_8] : memref<36x64xf32, #tpu.memory_space<vmem>>, vector<1x64xf32>
    tpu.vector_store %arg7[%c18, %c0_8], %7 {strides = array<i32>} : memref<36x64xf32, #tpu.memory_space<vmem>>, vector<1x64xf32>,
    %cst_9 = arith.constant 0.000000e+00 : f32
    %9 = vector.broadcast %cst_9 : f32 to vector<1x64xf32>
    %c35 = arith.constant 35 : index
    %c0_10 = arith.constant 0 : index
    %10 = vector.load %arg7[%c35, %c0_10] : memref<36x64xf32, #tpu.memory_space<vmem>>, vector<1x64xf32>
    tpu.vector_store %arg7[%c35, %c0_10], %9 {strides = array<i32>} : memref<36x64xf32, #tpu.memory_space<vmem>>, vector<1x64xf32>,
    %c1_11 = arith.constant 1 : index
    %c0_12 = arith.constant 0 : index
    %c0_13 = arith.constant 0 : index
    %11 = vector.load %arg1[%c1_11, %c0_12, %c0_13] : memref<2x16x64xf32, #tpu.memory_space<vmem>>, vector<1x16x64xf32>
    %12 = vector.shape_cast %11 : vector<1x16x64xf32> to vector<16x64xf32>
    %c19 = arith.constant 19 : index
    %c0_14 = arith.constant 0 : index
    %13 = vector.load %arg7[%c19, %c0_14] : memref<36x64xf32, #tpu.memory_space<vmem>>, vector<16x64xf32>
    tpu.vector_store %arg7[%c19, %c0_14], %12 {strides = array<i32>} : memref<36x64xf32, #tpu.memory_space<vmem>>, vector<16x64xf32>,
    %c0_15 = arith.constant 0 : index
    %c0_16 = arith.constant 0 : index
    %14 = vector.load %arg7[%c0_15, %c0_16] : memref<36x64xf32, #tpu.memory_space<vmem>>, vector<34x64xf32>
    %c0_17 = arith.constant 0 : index
    %c0_18 = arith.constant 0 : index
    %c0_19 = arith.constant 0 : index
    %15 = vector.load %arg2[%c0_17, %c0_18, %c0_19] : memref<3x64x512xf32, #tpu.memory_space<vmem>>, vector<1x64x512xf32>
    %16 = vector.shape_cast %15 : vector<1x64x512xf32> to vector<64x512xf32>
    %cst_20 = arith.constant dense<0.000000e+00> : vector<34x512xf32>
    %17 = tpu.matmul %14, %16, %cst_20 {dimension_numbers = #tpu.dot_dimension_numbers<[1], [0], [0], [1], [0, 0, 1, 1], [], []>} : vector<34x64xf32>, vector<64x512xf32>, vector<34x512xf32> -> vector<34x512xf32>
    %c1_21 = arith.constant 1 : index
    %c0_22 = arith.constant 0 : index
    %18 = vector.load %arg7[%c1_21, %c0_22] : memref<36x64xf32, #tpu.memory_space<vmem>>, vector<34x64xf32>
    %c1_23 = arith.constant 1 : index
    %c0_24 = arith.constant 0 : index
    %c0_25 = arith.constant 0 : index
    %19 = vector.load %arg2[%c1_23, %c0_24, %c0_25] : memref<3x64x512xf32, #tpu.memory_space<vmem>>, vector<1x64x512xf32>
    %20 = vector.shape_cast %19 : vector<1x64x512xf32> to vector<64x512xf32>
    %cst_26 = arith.constant dense<0.000000e+00> : vector<34x512xf32>
    %21 = tpu.matmul %18, %20, %cst_26 {dimension_numbers = #tpu.dot_dimension_numbers<[1], [0], [0], [1], [0, 0, 1, 1], [], []>} : vector<34x64xf32>, vector<64x512xf32>, vector<34x512xf32> -> vector<34x512xf32>
    %22 = arith.addf %17, %21 : vector<34x512xf32>
    %c2 = arith.constant 2 : index
    %c0_27 = arith.constant 0 : index
    %23 = vector.load %arg7[%c2, %c0_27] : memref<36x64xf32, #tpu.memory_space<vmem>>, vector<34x64xf32>
    %c2_28 = arith.constant 2 : index
    %c0_29 = arith.constant 0 : index
    %c0_30 = arith.constant 0 : index
    %24 = vector.load %arg2[%c2_28, %c0_29, %c0_30] : memref<3x64x512xf32, #tpu.memory_space<vmem>>, vector<1x64x512xf32>
    %25 = vector.shape_cast %24 : vector<1x64x512xf32> to vector<64x512xf32>
    %cst_31 = arith.constant dense<0.000000e+00> : vector<34x512xf32>
    %26 = tpu.matmul %23, %25, %cst_31 {dimension_numbers = #tpu.dot_dimension_numbers<[1], [0], [0], [1], [0, 0, 1, 1], [], []>} : vector<34x64xf32>, vector<64x512xf32>, vector<34x512xf32> -> vector<34x512xf32>
    %27 = arith.addf %22, %26 : vector<34x512xf32>
    %c0_32 = arith.constant 0 : index
    %c0_33 = arith.constant 0 : index
    %28 = vector.load %arg3[%c0_32, %c0_33] : memref<1x512xf32, #tpu.memory_space<vmem>>, vector<1x512xf32>
    %29 = vector.broadcast %28 : vector<1x512xf32> to vector<34x512xf32>
    %30 = arith.addf %27, %29 : vector<34x512xf32>
    %cst_34 = arith.constant 0.000000e+00 : f32
    %31 = vector.broadcast %cst_34 : f32 to vector<34x512xf32>
    %32 = arith.maximumf %30, %31 : vector<34x512xf32>
    %c1_35 = arith.constant 1 : index
    %c0_36 = arith.constant 0 : index
    %33 = vector.load %arg8[%c1_35, %c0_36] : memref<36x512xf32, #tpu.memory_space<vmem>>, vector<34x512xf32>
    tpu.vector_store %arg8[%c1_35, %c0_36], %32 {strides = array<i32>} : memref<36x512xf32, #tpu.memory_space<vmem>>, vector<34x512xf32>,
    %cst_37 = arith.constant 0.000000e+00 : f32
    %34 = vector.broadcast %cst_37 : f32 to vector<1x512xf32>
    %c0_38 = arith.constant 0 : index
    %c0_39 = arith.constant 0 : index
    %35 = vector.load %arg8[%c0_38, %c0_39] : memref<36x512xf32, #tpu.memory_space<vmem>>, vector<1x512xf32>
    tpu.vector_store %arg8[%c0_38, %c0_39], %34 {strides = array<i32>} : memref<36x512xf32, #tpu.memory_space<vmem>>, vector<1x512xf32>,
    %cst_40 = arith.constant 0.000000e+00 : f32
    %36 = vector.broadcast %cst_40 : f32 to vector<1x512xf32>
    %c17_41 = arith.constant 17 : index
    %c0_42 = arith.constant 0 : index
    %37 = vector.load %arg8[%c17_41, %c0_42] : memref<36x512xf32, #tpu.memory_space<vmem>>, vector<1x512xf32>
    tpu.vector_store %arg8[%c17_41, %c0_42], %36 {strides = array<i32>} : memref<36x512xf32, #tpu.memory_space<vmem>>, vector<1x512xf32>,
    %cst_43 = arith.constant 0.000000e+00 : f32
    %38 = vector.broadcast %cst_43 : f32 to vector<1x512xf32>
    %c18_44 = arith.constant 18 : index
    %c0_45 = arith.constant 0 : index
    %39 = vector.load %arg8[%c18_44, %c0_45] : memref<36x512xf32, #tpu.memory_space<vmem>>, vector<1x512xf32>
    tpu.vector_store %arg8[%c18_44, %c0_45], %38 {strides = array<i32>} : memref<36x512xf32, #tpu.memory_space<vmem>>, vector<1x512xf32>,
    %cst_46 = arith.constant 0.000000e+00 : f32
    %40 = vector.broadcast %cst_46 : f32 to vector<1x512xf32>
    %c35_47 = arith.constant 35 : index
    %c0_48 = arith.constant 0 : index
    %41 = vector.load %arg8[%c35_47, %c0_48] : memref<36x512xf32, #tpu.memory_space<vmem>>, vector<1x512xf32>
    tpu.vector_store %arg8[%c35_47, %c0_48], %40 {strides = array<i32>} : memref<36x512xf32, #tpu.memory_space<vmem>>, vector<1x512xf32>,
    %c0_49 = arith.constant 0 : index
    %c0_50 = arith.constant 0 : index
    %42 = vector.load %arg8[%c0_49, %c0_50] : memref<36x512xf32, #tpu.memory_space<vmem>>, vector<34x512xf32>
    %c0_51 = arith.constant 0 : index
    %c0_52 = arith.constant 0 : index
    %c0_53 = arith.constant 0 : index
    %43 = vector.load %arg4[%c0_51, %c0_52, %c0_53] : memref<3x512x512xf32, #tpu.memory_space<vmem>>, vector<1x512x512xf32>
    %44 = vector.shape_cast %43 : vector<1x512x512xf32> to vector<512x512xf32>
    %cst_54 = arith.constant dense<0.000000e+00> : vector<34x512xf32>
    %45 = tpu.matmul %42, %44, %cst_54 {dimension_numbers = #tpu.dot_dimension_numbers<[1], [0], [0], [1], [0, 0, 1, 1], [], []>} : vector<34x512xf32>, vector<512x512xf32>, vector<34x512xf32> -> vector<34x512xf32>
    %c1_55 = arith.constant 1 : index
    %c0_56 = arith.constant 0 : index
    %46 = vector.load %arg8[%c1_55, %c0_56] : memref<36x512xf32, #tpu.memory_space<vmem>>, vector<34x512xf32>
    %c1_57 = arith.constant 1 : index
    %c0_58 = arith.constant 0 : index
    %c0_59 = arith.constant 0 : index
    %47 = vector.load %arg4[%c1_57, %c0_58, %c0_59] : memref<3x512x512xf32, #tpu.memory_space<vmem>>, vector<1x512x512xf32>
    %48 = vector.shape_cast %47 : vector<1x512x512xf32> to vector<512x512xf32>
    %cst_60 = arith.constant dense<0.000000e+00> : vector<34x512xf32>
    %49 = tpu.matmul %46, %48, %cst_60 {dimension_numbers = #tpu.dot_dimension_numbers<[1], [0], [0], [1], [0, 0, 1, 1], [], []>} : vector<34x512xf32>, vector<512x512xf32>, vector<34x512xf32> -> vector<34x512xf32>
    %50 = arith.addf %45, %49 : vector<34x512xf32>
    %c2_61 = arith.constant 2 : index
    %c0_62 = arith.constant 0 : index
    %51 = vector.load %arg8[%c2_61, %c0_62] : memref<36x512xf32, #tpu.memory_space<vmem>>, vector<34x512xf32>
    %c2_63 = arith.constant 2 : index
    %c0_64 = arith.constant 0 : index
    %c0_65 = arith.constant 0 : index
    %52 = vector.load %arg4[%c2_63, %c0_64, %c0_65] : memref<3x512x512xf32, #tpu.memory_space<vmem>>, vector<1x512x512xf32>
    %53 = vector.shape_cast %52 : vector<1x512x512xf32> to vector<512x512xf32>
    %cst_66 = arith.constant dense<0.000000e+00> : vector<34x512xf32>
    %54 = tpu.matmul %51, %53, %cst_66 {dimension_numbers = #tpu.dot_dimension_numbers<[1], [0], [0], [1], [0, 0, 1, 1], [], []>} : vector<34x512xf32>, vector<512x512xf32>, vector<34x512xf32> -> vector<34x512xf32>
    %55 = arith.addf %50, %54 : vector<34x512xf32>
    %c0_67 = arith.constant 0 : index
    %c0_68 = arith.constant 0 : index
    %56 = vector.load %arg5[%c0_67, %c0_68] : memref<1x512xf32, #tpu.memory_space<vmem>>, vector<1x512xf32>
    %57 = vector.broadcast %56 : vector<1x512xf32> to vector<34x512xf32>
    %58 = arith.addf %55, %57 : vector<34x512xf32>
    %cst_69 = arith.constant 0.000000e+00 : f32
    %59 = vector.broadcast %cst_69 : f32 to vector<34x512xf32>
    %60 = arith.maximumf %58, %59 : vector<34x512xf32>
    %61 = vector.extract_strided_slice %60 {offsets = [0, 0], sizes = [16, 512], strides = [1, 1]} : vector<34x512xf32> to vector<16x512xf32>
    %c0_70 = arith.constant 0 : index
    %c0_71 = arith.constant 0 : index
    %c0_72 = arith.constant 0 : index
    %62 = vector.load %arg6[%c0_70, %c0_71, %c0_72] : memref<2x16x512xf32, #tpu.memory_space<vmem>>, vector<1x16x512xf32>
    %63 = vector.shape_cast %62 : vector<1x16x512xf32> to vector<16x512xf32>
    %64 = vector.shape_cast %61 : vector<16x512xf32> to vector<1x16x512xf32>
    tpu.vector_store %arg6[%c0_70, %c0_71, %c0_72], %64 {strides = array<i32>} : memref<2x16x512xf32, #tpu.memory_space<vmem>>, vector<1x16x512xf32>,
    %65 = vector.extract_strided_slice %60 {offsets = [18, 0], sizes = [16, 512], strides = [1, 1]} : vector<34x512xf32> to vector<16x512xf32>
    %c1_73 = arith.constant 1 : index
    %c0_74 = arith.constant 0 : index
    %c0_75 = arith.constant 0 : index
    %66 = vector.load %arg6[%c1_73, %c0_74, %c0_75] : memref<2x16x512xf32, #tpu.memory_space<vmem>>, vector<1x16x512xf32>
    %67 = vector.shape_cast %66 : vector<1x16x512xf32> to vector<16x512xf32>
    %68 = vector.shape_cast %65 : vector<16x512xf32> to vector<1x16x512xf32>
    tpu.vector_store %arg6[%c1_73, %c0_74, %c0_75], %68 {strides = array<i32>} : memref<2x16x512xf32, #tpu.memory_space<vmem>>, vector<1x16x512xf32>,
    return
  }
  func.func @transform_0(%arg0: i32) -> (i32, i32, i32) {
    %c0_i32 = arith.constant 0 : i32
    %c0_i32_0 = arith.constant 0 : i32
    %c0_i32_1 = arith.constant 0 : i32
    return %arg0, %c0_i32, %c0_i32_0 : i32, i32, i32
  }
  func.func @transform_1(%arg0: i32) -> (i32, i32, i32) {
    %c0_i32 = arith.constant 0 : i32
    %c0_i32_0 = arith.constant 0 : i32
    %c0_i32_1 = arith.constant 0 : i32
    %c0_i32_2 = arith.constant 0 : i32
    return %c0_i32, %c0_i32_0, %c0_i32_1 : i32, i32, i32
  }
  func.func @transform_2(%arg0: i32) -> (i32, i32) {
    %c0_i32 = arith.constant 0 : i32
    %c0_i32_0 = arith.constant 0 : i32
    %c0_i32_1 = arith.constant 0 : i32
    return %c0_i32, %c0_i32_0 : i32, i32
  }
  func.func @transform_3(%arg0: i32) -> (i32, i32, i32) {
    %c0_i32 = arith.constant 0 : i32
    %c0_i32_0 = arith.constant 0 : i32
    %c0_i32_1 = arith.constant 0 : i32
    %c0_i32_2 = arith.constant 0 : i32
    return %c0_i32, %c0_i32_0, %c0_i32_1 : i32, i32, i32
  }
  func.func @transform_4(%arg0: i32) -> (i32, i32) {
    %c0_i32 = arith.constant 0 : i32
    %c0_i32_0 = arith.constant 0 : i32
    %c0_i32_1 = arith.constant 0 : i32
    return %c0_i32, %c0_i32_0 : i32, i32
  }
  func.func @transform_5(%arg0: i32) -> (i32, i32, i32) {
    %c0_i32 = arith.constant 0 : i32
    %c0_i32_0 = arith.constant 0 : i32
    %c0_i32_1 = arith.constant 0 : i32
    return %arg0, %c0_i32, %c0_i32_0 : i32, i32, i32
  }
}

</mosaic_0001>

<bundles_post_ra>
// kernel: tpu_custom_call.1
= control target key start
LH: loop header
LB: loop body
LE: loop exit
PB: predicated region body
PF: predicated region fallthrough
CT: control target
= control target key end

     0   :  { %10 = vsyncpa [#allocation5], 0  ;;  %s4221_s0 = inlined_call_operand.hbm [shape: f32[2,16,64], index: 0, kind: input, shape index: {}]   ;;  %s4222_s1 = inlined_call_operand.hbm [shape: f32[3,64,512], index: 1, kind: input, shape index: {}]   ;;  %s4223_s2 = inlined_call_operand.hbm [shape: f32[1,512], index: 2, kind: input, shape index: {}]   ;;  %s4224_s3 = inlined_call_operand.hbm [shape: f32[3,512,512], index: 3, kind: input, shape index: {}]   ;;  %s4225_s4 = inlined_call_operand.hbm [shape: f32[1,512], index: 4, kind: input, shape index: {}]   ;;  %s4226_s5 = inlined_call_operand.hbm [shape: f32[2,16,512], index: 5, kind: output, shape index: {}]  }
   0x1   :  { %11 = vsyncpa [#allocation8], 0 }
   0x2   :  { %12 = vsyncpa [#allocation11], 0 }
   0x3   :  { %13 = vsyncpa [#allocation6], 0  ;;  %s3459_s18 = smov [#allocation7]  }
   0x4   :  { %s31_s19 = sshll.u32 %s3459_s18, 4  ;;  %s32_s19 = int_to_ptr.vmem [resolvable:$true] %s31_s19 }
   0x5   :  { %s3339_s20 = scalar_lea.vmem %s32_s19, 12288  ;;  %p3344_p1 = scmp.lt.s32.totalorder %s32_s19, %s32_s19 }
   0x6   :  { %p3340_p0 = scmp.ne.s32.totalorder %s32_s19, %s3339_s20  ;;  %p3345_p2 = scmp.lt.s32.totalorder %s3339_s20, %s3339_s20 }
   0x8   :  { %p3346_p3 = por %p3345_p2, %p3344_p1 }
   0xa   :  { %p3347_p4 = pnand %p3346_p3, %p3340_p0 }
   0xc   :  { %3350 = shalt.err (!%p3347_p4)
}
   0xd   :  { %s3460_s21 = smov 512   ;;  %s3461_s22 = smov 32  }
   0xe   :  { %37 = dma.hbm_to_vmem [thread:$0]  %s4222_s1, 12288, %s32_s19, [#allocation8], %s3460_s21, %s3460_s21, %s3461_s22  }
   0xf   :  { %s3462_s25 = smov [#allocation10]   ;;  %s3463_s27 = smov [#allocation4]  }
  0x10   :  { %s53_s26 = sshll.u32 %s3462_s25, 4  ;;  %s19_s28 = sshll.u32 %s3463_s27, 4  ;;  %s54_s26 = int_to_ptr.vmem [resolvable:$true] %s53_s26  ;;  %s20_s28 = int_to_ptr.vmem [resolvable:$true] %s19_s28 }
  0x11   :  { %s3359_s29 = scalar_lea.vmem %s54_s26, 98304  ;;  %p3364_p6 = scmp.lt.s32.totalorder %s54_s26, %s54_s26 }
  0x12   :  { %p3360_p5 = scmp.ne.s32.totalorder %s54_s26, %s3359_s29  ;;  %p3365_p7 = scmp.lt.s32.totalorder %s3359_s29, %s3359_s29 }
  0x14   :  { %p3366_p8 = por %p3365_p7, %p3364_p6 }
  0x16   :  { %p3367_p9 = pnand %p3366_p8, %p3360_p5 }
  0x18   :  { %3370 = shalt.err (!%p3367_p9)
}
  0x19   :  { %59 = dma.hbm_to_vmem [thread:$0]  %s4224_s3, 98304, %s54_s26, [#allocation11], %s3460_s21, %s3460_s21, %s3461_s22  }
  0x1a   :  { %s3379_s1 = scalar_lea.vmem %s20_s28, 512  ;;  %p3384_p11 = scmp.lt.s32.totalorder %s20_s28, %s20_s28 }
  0x1b   :  { %p3380_p10 = scmp.ne.s32.totalorder %s20_s28, %s3379_s1  ;;  %p3385_p12 = scmp.lt.s32.totalorder %s3379_s1, %s3379_s1 }
  0x1d   :  { %p3386_p13 = por %p3385_p12, %p3384_p11 }
  0x1f   :  { %p3387_p0 = pnand %p3386_p13, %p3380_p10 }
  0x21   :  { %3390 = shalt.err (!%p3387_p0)
}
  0x22   :  { %s3464_s7 = smov 128   ;;  %s3465_s8 = smov 8  }
  0x23   :  { %25 = dma.hbm_to_vmem [thread:$0]  %s4221_s0, 512, %s20_s28, [#allocation5], %s3464_s7, %s3464_s7, %s3465_s8  }
  0x24   :  { %s3466_s11 = smov [#allocation9]   ;;  %s3467_s13 = smov [#allocation12]  }
  0x25   :  { %s44_s12 = sshll.u32 %s3466_s11, 4  ;;  %s66_s14 = sshll.u32 %s3467_s13, 4  ;;  %s45_s12 = int_to_ptr.vmem [resolvable:$true] %s44_s12  ;;  %s67_s14 = int_to_ptr.vmem [resolvable:$true] %s66_s14 }
  0x26   :  { %s3399_s3 = scalar_lea.vmem %s45_s12, 64  ;;  %p3404_p2 = scmp.lt.s32.totalorder %s45_s12, %s45_s12 }
  0x27   :  { %p3400_p1 = scmp.ne.s32.totalorder %s45_s12, %s3399_s3  ;;  %p3405_p3 = scmp.lt.s32.totalorder %s3399_s3, %s3399_s3 }
  0x29   :  { %p3406_p4 = por %p3405_p3, %p3404_p2 }
  0x2b   :  { %p3407_p5 = pnand %p3406_p4, %p3400_p1 }
  0x2d   :  { %3410 = shalt.err (!%p3407_p5)
}
  0x2e   :  { %47 = dma.hbm_to_vmem [thread:$0]  %s4223_s2, 64, %s45_s12, [#allocation8]  }
  0x2f   :  { %s3419_s17 = scalar_lea.vmem %s67_s14, 64  ;;  %p3424_p7 = scmp.lt.s32.totalorder %s67_s14, %s67_s14 }
  0x30   :  { %p3420_p6 = scmp.ne.s32.totalorder %s67_s14, %s3419_s17  ;;  %p3425_p8 = scmp.lt.s32.totalorder %s3419_s17, %s3419_s17 }
  0x32   :  { %p3426_p9 = por %p3425_p8, %p3424_p7 }
  0x34   :  { %p3427_p10 = pnand %p3426_p9, %p3420_p6 }
  0x36   :  { %3430 = shalt.err (!%p3427_p10)
}
  0x37   :  { %69 = dma.hbm_to_vmem [thread:$0]  %s4225_s4, 64, %s67_s14, [#allocation11]  }
  0x38   :  { %3451 = dma.done.wait [#allocation5], 512  }
  0x39   :  { %3452 = vsyncadd [#allocation5], 4294966784 }
  0x3a   :  { %3453 = dma.done.wait [#allocation8], 12352  }
  0x3b   :  { %3454 = vsyncadd [#allocation8], 4294954944 }
  0x3c   :  { %3455 = dma.done.wait [#allocation11], 98368  }
  0x3d   :  { %3456 = vsyncadd [#allocation11], 4294868928  ;;  %vm85_vm0 = vcmask 516096   ;;  %v4230_v0 = vmov 0.0   ;;  %v172_v1 = vld [vmem:[#allocation7 + $0x1e8] sm:$0xff]  ;;  %v174_v2 = vld [vmem:[#allocation7 + $0x1f8] sm:$0xff] }
  0x3e   :  { %254 = vmatprep.mubr.f32.mxu0 %v4230_v0  ;;  %349 = vmatprep.mubr.f32.mxu1 %v4230_v0  ;;  %87 = vst.msk [vmem:[#allocation2 + $0x11] sm:$0x1] %vm85_vm0, %v4230_v0  ;;  %93 = vst.msk [vmem:[#allocation2 + $0x12] sm:$0x1] %vm85_vm0, %v4230_v0  ;;  %v171_v3 = vld [vmem:[#allocation7 + $0x1e0] sm:$0xff]  ;;  %v173_v4 = vld [vmem:[#allocation7 + $0x1f0] sm:$0xff] }
  0x3f   :  { %86 = vst.msk [vmem:[#allocation2] sm:$0x1] %vm85_vm0, %v4230_v0  ;;  %94 = vst.msk [vmem:[#allocation2 + $0x23] sm:$0x1] %vm85_vm0, %v4230_v0  ;;  %206 = vmatprep.subr.mxu0 %v172_v1  ;;  %301 = vmatprep.subr.mxu1 %v174_v2  ;;  %v168_v5 = vld [vmem:[#allocation7 + $0x1c8] sm:$0xff]  ;;  %v170_v6 = vld [vmem:[#allocation7 + $0x1d8] sm:$0xff] }
  0x40   :  { %207 = vmatpush1.msra.mxu0 %v171_v3  ;;  %302 = vmatpush1.msra.mxu1 %v173_v4  ;;  %v167_v7 = vld [vmem:[#allocation7 + $0x1c0] sm:$0xff]  ;;  %v169_v8 = vld [vmem:[#allocation7 + $0x1d0] sm:$0xff]  ;;  %v164_v9 = vld [vmem:[#allocation7 + $0x1a8] sm:$0xff]  ;;  %vm90_vm1 = vcmask 523264   ;;  %vm930_vm3 = vcmask 1040384   ;;  %vm1583_vm4 = vcmask 1046528  }
  0x41   :  { %208 = vmatprep.subr.mxu0 %v168_v5  ;;  %303 = vmatprep.subr.mxu1 %v170_v6  ;;  %v166_v10 = vld [vmem:[#allocation7 + $0x1b8] sm:$0xff]  ;;  %v163_v11 = vld [vmem:[#allocation7 + $0x1a0] sm:$0xff]  ;;  %v165_v12 = vld [vmem:[#allocation7 + $0x1b0] sm:$0xff]  ;;  %vm2673_vm5 = vcmask 1045504   ;;  %s3469_s2 = smov [#allocation13]  }
  0x42   :  { %209 = vmatpush1.msra.mxu0 %v167_v7  ;;  %304 = vmatpush1.msra.mxu1 %v169_v8  ;;  %v160_v13 = vld [vmem:[#allocation7 + $0x188] sm:$0xff]  ;;  %v162_v14 = vld [vmem:[#allocation7 + $0x198] sm:$0xff]  ;;  %v159_v15 = vld [vmem:[#allocation7 + $0x180] sm:$0xff]  ;;  %s3254_s4 = sshll.u32 %s3469_s2, 4  ;;  %s3255_s4 = int_to_ptr.vmem [resolvable:$true] %s3254_s4 }
  0x43   :  { %210 = vmatprep.subr.mxu0 %v164_v9  ;;  %305 = vmatprep.subr.mxu1 %v166_v10  ;;  %v161_v16 = vld [vmem:[#allocation7 + $0x190] sm:$0xff]  ;;  %v156_v17 = vld [vmem:[#allocation7 + $0x168] sm:$0xff]  ;;  %v158_v18 = vld [vmem:[#allocation7 + $0x178] sm:$0xff]  ;;  %s3431_s19 = scalar_lea.vmem %s3255_s4, 2048  ;;  %p3436_p12 = scmp.lt.s32.totalorder %s3255_s4, %s3255_s4 }
  0x44   :  { %211 = vmatpush1.msra.mxu0 %v163_v11  ;;  %306 = vmatpush1.msra.mxu1 %v165_v12  ;;  %v155_v19 = vld [vmem:[#allocation7 + $0x160] sm:$0xff]  ;;  %v157_v20 = vld [vmem:[#allocation7 + $0x170] sm:$0xff]  ;;  %v152_v21 = vld [vmem:[#allocation7 + $0x148] sm:$0xff]  ;;  %p3432_p11 = scmp.ne.s32.totalorder %s3255_s4, %s3431_s19  ;;  %p3437_p13 = scmp.lt.s32.totalorder %s3431_s19, %s3431_s19 }
  0x45   :  { %212 = vmatprep.subr.mxu0 %v160_v13  ;;  %307 = vmatprep.subr.mxu1 %v162_v14  ;;  %v154_v22 = vld [vmem:[#allocation7 + $0x158] sm:$0xff]  ;;  %v151_v23 = vld [vmem:[#allocation7 + $0x140] sm:$0xff]  ;;  %v153_v24 = vld [vmem:[#allocation7 + $0x150] sm:$0xff] }
  0x46   :  { %213 = vmatpush1.msra.mxu0 %v159_v15  ;;  %308 = vmatpush1.msra.mxu1 %v161_v16  ;;  %v148_v25 = vld [vmem:[#allocation7 + $0x128] sm:$0xff]  ;;  %v150_v26 = vld [vmem:[#allocation7 + $0x138] sm:$0xff]  ;;  %v88_v27 = vld [vmem:[#allocation4] sm:$0xff]  ;;  %p3438_p0 = por %p3437_p13, %p3436_p12 }
  0x47   :  { %214 = vmatprep.subr.mxu0 %v156_v17  ;;  %309 = vmatprep.subr.mxu1 %v158_v18  ;;  %v147_v28 = vld [vmem:[#allocation7 + $0x120] sm:$0xff]  ;;  %v149_v29 = vld [vmem:[#allocation7 + $0x130] sm:$0xff]  ;;  %91 = vst.msk [vmem:[#allocation2 + $0x1] sm:$0xff] %vm90_vm1, %v88_v27  ;;  %v144_v30 = vld [vmem:[#allocation7 + $0x108] sm:$0xff] }
  0x48   :  { %215 = vmatpush1.msra.mxu0 %v155_v19  ;;  %310 = vmatpush1.msra.mxu1 %v157_v20  ;;  %v146_v31 = vld [vmem:[#allocation7 + $0x118] sm:$0xff]  ;;  %v143_v32 = vld [vmem:[#allocation7 + $0x100] sm:$0xff]  ;;  %v145_v33 = vld [vmem:[#allocation7 + $0x110] sm:$0xff]  ;;  %p3439_p1 = pnand %p3438_p0, %p3432_p11 }
  0x49   :  { %216 = vmatprep.subr.mxu0 %v152_v21  ;;  %311 = vmatprep.subr.mxu1 %v154_v22  ;;  %v89_v34 = vld [vmem:[#allocation4 + $0x8] sm:$0xff]  ;;  %v136_v36 = vld [vmem:[#allocation7 + $0xf8] sm:$0xff]  ;;  %v96_v37 = vld [vmem:[#allocation4 + $0x10] sm:$0xff] }
  0x4a   :  { %217 = vmatpush1.msra.mxu0 %v151_v23  ;;  %312 = vmatpush1.msra.mxu1 %v153_v24  ;;  %v134_v35 = vld [vmem:[#allocation7 + $0xe8] sm:$0xff]  ;;  %92 = vst.msk [vmem:[#allocation2 + $0x9] sm:$0xff] %vm90_vm1, %v89_v34  ;;  %98 = vst.msk [vmem:[#allocation2 + $0x13] sm:$0xff] %vm90_vm1, %v96_v37  ;;  %v133_v38 = vld [vmem:[#allocation7 + $0xe0] sm:$0xff] }
  0x4b   :  { %218 = vmatprep.subr.mxu0 %v148_v25  ;;  %313 = vmatprep.subr.mxu1 %v150_v26  ;;  %v135_v39 = vld [vmem:[#allocation7 + $0xf0] sm:$0xff]  ;;  %v97_v41 = vld [vmem:[#allocation4 + $0x18] sm:$0xff]  ;;  %v130_v42 = vld [vmem:[#allocation7 + $0xc8] sm:$0xff] }
  0x4c   :  { %219 = vmatpush1.msra.mxu0 %v147_v28  ;;  %314 = vmatpush1.msra.mxu1 %v149_v29  ;;  %v132_v43 = vld [vmem:[#allocation7 + $0xd8] sm:$0xff]  ;;  %99 = vst.msk [vmem:[#allocation2 + $0x1b] sm:$0xff] %vm90_vm1, %v97_v41  ;;  %v129_v45 = vld [vmem:[#allocation7 + $0xc0] sm:$0xff]  ;;  %v131_v46 = vld [vmem:[#allocation7 + $0xd0] sm:$0xff] }
  0x4d   :  { %220 = vmatprep.subr.mxu0 %v144_v30  ;;  %315 = vmatprep.subr.mxu1 %v146_v31  ;;  %v126_v47 = vld [vmem:[#allocation7 + $0xa8] sm:$0xff]  ;;  %v128_v48 = vld [vmem:[#allocation7 + $0xb8] sm:$0xff]  ;;  %v125_v49 = vld [vmem:[#allocation7 + $0xa0] sm:$0xff] }
  0x4e   :  { %221 = vmatpush1.msra.mxu0 %v143_v32  ;;  %316 = vmatpush1.msra.mxu1 %v145_v33  ;;  %v137_v40 = vld [vmem:[#allocation2 + $0x1] sm:$0xff]  ;;  %v127_v50 = vld [vmem:[#allocation7 + $0xb0] sm:$0xff]  ;;  %v122_v52 = vld [vmem:[#allocation7 + $0x88] sm:$0xff] }
  0x4f   :  { %411 = vmatprep.subr.mxu0 %v134_v35  ;;  %506 = vmatprep.subr.mxu1 %v136_v36  ;;  %v124_v53 = vld [vmem:[#allocation7 + $0x98] sm:$0xff]  ;;  %v121_v54 = vld [vmem:[#allocation7 + $0x80] sm:$0xff]  ;;  %v123_v55 = vld [vmem:[#allocation7 + $0x90] sm:$0xff] }
  0x50   :  { %3268 = vmatmul.mubr.msk.f32.vlgmr.msra.gmra.mxu0 %vm90_vm1, %v137_v40  ;;  %3273 = vmatmul.mubr.msk.f32.vlgmr.msra.gmra.mxu1 %vm90_vm1, %v137_v40  ;;  %v118_v56 = vld [vmem:[#allocation7 + $0x68] sm:$0xff]  ;;  %v120_v57 = vld [vmem:[#allocation7 + $0x78] sm:$0xff]  ;;  %v117_v58 = vld [vmem:[#allocation7 + $0x60] sm:$0xff] }
  0x51   :  { %412 = vmatpush1.msra.mxu0 %v133_v38  ;;  %507 = vmatpush1.msra.mxu1 %v135_v39  ;;  %v138_v44 = vld [vmem:[#allocation2 + $0x9] sm:$0xff]  ;;  %v139_v51 = vld [vmem:[#allocation2 + $0x11] sm:$0xff]  ;;  %v116_v62 = vld [vmem:[#allocation7 + $0x58] sm:$0xff] }
  0x52   :  { %260 = vmatprep.mubr.f32.mxu0 %v4230_v0  ;;  %355 = vmatprep.mubr.f32.mxu1 %v4230_v0  ;;  %v119_v59 = vld [vmem:[#allocation7 + $0x70] sm:$0xff]  ;;  %v114_v61 = vld [vmem:[#allocation7 + $0x48] sm:$0xff]  ;;  %v113_v63 = vld [vmem:[#allocation7 + $0x40] sm:$0xff] }
  0x53   :  { %413 = vmatprep.subr.mxu0 %v130_v42  ;;  %508 = vmatprep.subr.mxu1 %v132_v43  ;;  %v140_v60 = vld [vmem:[#allocation2 + $0x19] sm:$0xff]  ;;  %v110_v2 = vld [vmem:[#allocation7 + $0x28] sm:$0xff]  ;;  %v141_v4 = vld [vmem:[#allocation2 + $0x21] sm:$0x3] }
  0x54   :  { %3269 = vmatmul.mubr.msk.f32.gmra.mxu0 %vm90_vm1, %v138_v44  ;;  %3274 = vmatmul.mubr.msk.f32.gmra.mxu1 %vm90_vm1, %v138_v44  ;;  %v115_v1 = vld [vmem:[#allocation7 + $0x50] sm:$0xff]  ;;  %v112_v3 = vld [vmem:[#allocation7 + $0x38] sm:$0xff]  ;;  %v109_v5 = vld [vmem:[#allocation7 + $0x20] sm:$0xff] }
  0x55   :  { %414 = vmatpush1.msra.mxu0 %v129_v45  ;;  %509 = vmatpush1.msra.mxu1 %v131_v46  ;;  %v111_v6 = vld [vmem:[#allocation7 + $0x30] sm:$0xff]  ;;  %v106_v7 = vld [vmem:[#allocation7 + $0x8] sm:$0xff]  ;;  %v108_v8 = vld [vmem:[#allocation7 + $0x18] sm:$0xff] }
  0x56   :  { %415 = vmatprep.subr.mxu0 %v126_v47  ;;  %510 = vmatprep.subr.mxu1 %v128_v48  ;;  %v105_v9 = vld [vmem:[#allocation7] sm:$0xff]  ;;  %v107_v10 = vld [vmem:[#allocation7 + $0x10] sm:$0xff]  ;;  %v100_v11 = vld [vmem:[#allocation2] sm:$0xff] }
  0x57   :  { %416 = vmatpush1.msra.mxu0 %v125_v49  ;;  %511 = vmatpush1.msra.mxu1 %v127_v50  ;;  %v620_v12 = vld [vmem:[#allocation7 + $0x2e8] sm:$0xff]  ;;  %v622_v13 = vld [vmem:[#allocation7 + $0x2f8] sm:$0xff]  ;;  %v619_v14 = vld [vmem:[#allocation7 + $0x2e0] sm:$0xff] }
  0x58   :  { %266 = vmatprep.mubr.f32.mxu0 %v4230_v0  ;;  %361 = vmatprep.mubr.f32.mxu1 %v4230_v0  ;;  %v621_v15 = vld [vmem:[#allocation7 + $0x2f0] sm:$0xff]  ;;  %v616_v16 = vld [vmem:[#allocation7 + $0x2c8] sm:$0xff]  ;;  %v618_v17 = vld [vmem:[#allocation7 + $0x2d8] sm:$0xff] }
  0x59   :  { %3270 = vmatmul.mubr.msk.f32.gmra.mxu0 %vm90_vm1, %v139_v51  ;;  %3275 = vmatmul.mubr.msk.f32.gmra.mxu1 %vm90_vm1, %v139_v51  ;;  %v101_v18 = vld [vmem:[#allocation2 + $0x8] sm:$0xff]  ;;  %v617_v20 = vld [vmem:[#allocation7 + $0x2d0] sm:$0xff]  ;;  %v612_v21 = vld [vmem:[#allocation7 + $0x2a8] sm:$0xff] }
  0x5a   :  { %417 = vmatprep.subr.mxu0 %v122_v52  ;;  %512 = vmatprep.subr.mxu1 %v124_v53  ;;  %v615_v19 = vld [vmem:[#allocation7 + $0x2c0] sm:$0xff]  ;;  %v614_v22 = vld [vmem:[#allocation7 + $0x2b8] sm:$0xff]  ;;  %v613_v24 = vld [vmem:[#allocation7 + $0x2b0] sm:$0xff] }
  0x5b   :  { %418 = vmatpush1.msra.mxu0 %v121_v54  ;;  %513 = vmatpush1.msra.mxu1 %v123_v55  ;;  %v611_v23 = vld [vmem:[#allocation7 + $0x2a0] sm:$0xff]  ;;  %v102_v25 = vld [vmem:[#allocation2 + $0x10] sm:$0xff]  ;;  %v610_v27 = vld [vmem:[#allocation7 + $0x298] sm:$0xff] }
  0x5c   :  { %419 = vmatprep.subr.mxu0 %v118_v56  ;;  %514 = vmatprep.subr.mxu1 %v120_v57  ;;  %v608_v26 = vld [vmem:[#allocation7 + $0x288] sm:$0xff]  ;;  %v607_v28 = vld [vmem:[#allocation7 + $0x280] sm:$0xff]  ;;  %v609_v29 = vld [vmem:[#allocation7 + $0x290] sm:$0xff] }
  0x5d   :  { %272 = vmatprep.mubr.f32.mxu0 %v4230_v0  ;;  %367 = vmatprep.mubr.f32.mxu1 %v4230_v0  ;;  %v604_v30 = vld [vmem:[#allocation7 + $0x268] sm:$0xff]  ;;  %v606_v31 = vld [vmem:[#allocation7 + $0x278] sm:$0xff]  ;;  %v603_v32 = vld [vmem:[#allocation7 + $0x260] sm:$0xff] }
  0x5e   :  { %420 = vmatpush1.msra.mxu0 %v117_v58  ;;  %515 = vmatpush1.msra.mxu1 %v119_v59  ;;  %v605_v33 = vld [vmem:[#allocation7 + $0x270] sm:$0xff]  ;;  %v600_v35 = vld [vmem:[#allocation7 + $0x248] sm:$0xff]  ;;  %v602_v36 = vld [vmem:[#allocation7 + $0x258] sm:$0xff] }
  0x5f   :  { %3271 = vmatmul.mubr.msk.f32.gmra.mxu0 %vm90_vm1, %v140_v60  ;;  %3276 = vmatmul.mubr.msk.f32.gmra.mxu1 %vm90_vm1, %v140_v60  ;;  %v103_v34 = vld [vmem:[#allocation2 + $0x18] sm:$0xff]  ;;  %v599_v37 = vld [vmem:[#allocation7 + $0x240] sm:$0xff]  ;;  %v596_v39 = vld [vmem:[#allocation7 + $0x228] sm:$0xff] }
  0x60   :  { %421 = vmatprep.subr.mxu0 %v114_v61  ;;  %516 = vmatprep.subr.mxu1 %v116_v62  ;;  %v601_v38 = vld [vmem:[#allocation7 + $0x250] sm:$0xff]  ;;  %v598_v40 = vld [vmem:[#allocation7 + $0x238] sm:$0xff]  ;;  %v595_v42 = vld [vmem:[#allocation7 + $0x220] sm:$0xff] }
  0x61   :  { %422 = vmatpush1.msra.mxu0 %v113_v63  ;;  %517 = vmatpush1.msra.mxu1 %v115_v1  ;;  %v104_v41 = vld [vmem:[#allocation2 + $0x20] sm:$0x3]  ;;  %v597_v43 = vld [vmem:[#allocation7 + $0x230] sm:$0xff]  ;;  %v592_v44 = vld [vmem:[#allocation7 + $0x208] sm:$0xff] }
  0x62   :  { %278 = vmatprep.mubr.f32.mxu0 %v4230_v0  ;;  %373 = vmatprep.mubr.f32.mxu1 %v4230_v0  ;;  %v594_v45 = vld [vmem:[#allocation7 + $0x218] sm:$0xff]  ;;  %v591_v46 = vld [vmem:[#allocation7 + $0x200] sm:$0xff]  ;;  %v593_v47 = vld [vmem:[#allocation7 + $0x210] sm:$0xff] }
  0x63   :  { %423 = vmatprep.subr.mxu0 %v110_v2  ;;  %518 = vmatprep.subr.mxu1 %v112_v3  ;;  %v585_v48 = vld [vmem:[#allocation2 + $0x2] sm:$0xff]  ;;  %v586_v49 = vld [vmem:[#allocation2 + $0xa] sm:$0xff]  ;;  %v587_v50 = vld [vmem:[#allocation2 + $0x12] sm:$0xff] }
  0x64   :  { %3272 = vmatmul.mubr.msk.f32.gmra.mxu0 %vm90_vm1, %v141_v4  ;;  %3277 = vmatmul.mubr.msk.f32.gmra.mxu1 %vm90_vm1, %v141_v4  ;;  %v588_v51 = vld [vmem:[#allocation2 + $0x1a] sm:$0xff]  ;;  %v589_v52 = vld [vmem:[#allocation2 + $0x22] sm:$0x3]  ;;  %v1367_v55 = vld [vmem:[#allocation10 + $0x9e0] sm:$0xff] }
  0x65   :  { %424 = vmatpush1.msra.mxu0 %v109_v5  ;;  %519 = vmatpush1.msra.mxu1 %v111_v6  ;;  %v1368_v53 = vld [vmem:[#allocation10 + $0x9e8] sm:$0xff]  ;;  %v1495_v56 = vld [vmem:[#allocation10 + $0xde0] sm:$0xff] }
  0x66   :  { %425 = vmatprep.subr.mxu0 %v106_v7  ;;  %520 = vmatprep.subr.mxu1 %v108_v8  ;;  %v1496_v54 = vld [vmem:[#allocation10 + $0xde8] sm:$0xff]  ;;  %v1363_v59 = vld [vmem:[#allocation10 + $0x9c0] sm:$0xff] }
  0x67   :  { %426 = vmatpush1.msra.mxu0 %v105_v9  ;;  %459 = vmatprep.mubr.f32.mxu0 %v4230_v0  ;;  %v1364_v57 = vld [vmem:[#allocation10 + $0x9c8] sm:$0xff]  ;;  %v1491_v60 = vld [vmem:[#allocation10 + $0xdc0] sm:$0xff] }
  0x68   :  { %521 = vmatpush1.msra.mxu1 %v107_v10  ;;  %554 = vmatprep.mubr.f32.mxu1 %v4230_v0  ;;  %v1492_v58 = vld [vmem:[#allocation10 + $0xdc8] sm:$0xff]  ;;  %v1359_v63 = vld [vmem:[#allocation10 + $0x9a0] sm:$0xff] }
  0x69   :  { %3278 = vmatmul.mubr.msk.f32.vlgmr.msra.gmra.mxu0 %vm90_vm1, %v100_v11  ;;  %3283 = vmatmul.mubr.msk.f32.vlgmr.msra.gmra.mxu1 %vm90_vm1, %v100_v11  ;;  %v1360_v61 = vld [vmem:[#allocation10 + $0x9a8] sm:$0xff]  ;;  %v1487_v1 = vld [vmem:[#allocation10 + $0xda0] sm:$0xff] }
  0x6a   :  { %654 = vmatprep.subr.mxu0 %v620_v12  ;;  %749 = vmatprep.subr.mxu1 %v622_v13  ;;  %v1488_v62 = vld [vmem:[#allocation10 + $0xda8] sm:$0xff]  ;;  %v1355_v4 = vld [vmem:[#allocation10 + $0x980] sm:$0xff] }
  0x6b   :  { %655 = vmatpush1.msra.mxu0 %v619_v14  ;;  %750 = vmatpush1.msra.mxu1 %v621_v15  ;;  %v1356_v2 = vld [vmem:[#allocation10 + $0x988] sm:$0xff]  ;;  %v1483_v5 = vld [vmem:[#allocation10 + $0xd80] sm:$0xff] }
  0x6c   :  { %465 = vmatprep.mubr.f32.mxu0 %v4230_v0  ;;  %560 = vmatprep.mubr.f32.mxu1 %v4230_v0  ;;  %v1484_v3 = vld [vmem:[#allocation10 + $0xd88] sm:$0xff]  ;;  %v1351_v8 = vld [vmem:[#allocation10 + $0x960] sm:$0xff] }
  0x6d   :  { %656 = vmatprep.subr.mxu0 %v616_v16  ;;  %751 = vmatprep.subr.mxu1 %v618_v17  ;;  %v1352_v6 = vld [vmem:[#allocation10 + $0x968] sm:$0xff]  ;;  %v1479_v9 = vld [vmem:[#allocation10 + $0xd60] sm:$0xff] }
  0x6e   :  { %3279 = vmatmul.mubr.msk.f32.gmra.mxu0 %vm90_vm1, %v101_v18  ;;  %3284 = vmatmul.mubr.msk.f32.gmra.mxu1 %vm90_vm1, %v101_v18  ;;  %v1480_v7 = vld [vmem:[#allocation10 + $0xd68] sm:$0xff]  ;;  %v1347_v12 = vld [vmem:[#allocation10 + $0x940] sm:$0xff] }
  0x6f   :  { %657 = vmatpush1.msra.mxu0 %v615_v19  ;;  %752 = vmatpush1.msra.mxu1 %v617_v20  ;;  %v1348_v10 = vld [vmem:[#allocation10 + $0x948] sm:$0xff]  ;;  %v1475_v13 = vld [vmem:[#allocation10 + $0xd40] sm:$0xff] }
  0x70   :  { %658 = vmatprep.subr.mxu0 %v612_v21  ;;  %753 = vmatprep.subr.mxu1 %v614_v22  ;;  %v1476_v11 = vld [vmem:[#allocation10 + $0xd48] sm:$0xff]  ;;  %v1343_v16 = vld [vmem:[#allocation10 + $0x920] sm:$0xff] }
  0x71   :  { %659 = vmatpush1.msra.mxu0 %v611_v23  ;;  %754 = vmatpush1.msra.mxu1 %v613_v24  ;;  %v1344_v14 = vld [vmem:[#allocation10 + $0x928] sm:$0xff]  ;;  %v1471_v17 = vld [vmem:[#allocation10 + $0xd20] sm:$0xff] }
  0x72   :  { %471 = vmatprep.mubr.f32.mxu0 %v4230_v0  ;;  %566 = vmatprep.mubr.f32.mxu1 %v4230_v0  ;;  %v1472_v15 = vld [vmem:[#allocation10 + $0xd28] sm:$0xff]  ;;  %v1339_v20 = vld [vmem:[#allocation10 + $0x900] sm:$0xff] }
  0x73   :  { %3280 = vmatmul.mubr.msk.f32.gmra.mxu0 %vm90_vm1, %v102_v25  ;;  %3285 = vmatmul.mubr.msk.f32.gmra.mxu1 %vm90_vm1, %v102_v25  ;;  %v1340_v18 = vld [vmem:[#allocation10 + $0x908] sm:$0xff]  ;;  %v1467_v21 = vld [vmem:[#allocation10 + $0xd00] sm:$0xff] }
  0x74   :  { %660 = vmatprep.subr.mxu0 %v608_v26  ;;  %755 = vmatprep.subr.mxu1 %v610_v27  ;;  %v1468_v19 = vld [vmem:[#allocation10 + $0xd08] sm:$0xff]  ;;  %v1335_v24 = vld [vmem:[#allocation10 + $0x8e0] sm:$0xff] }
  0x75   :  { %661 = vmatpush1.msra.mxu0 %v607_v28  ;;  %756 = vmatpush1.msra.mxu1 %v609_v29  ;;  %v1336_v22 = vld [vmem:[#allocation10 + $0x8e8] sm:$0xff]  ;;  %v1463_v25 = vld [vmem:[#allocation10 + $0xce0] sm:$0xff] }
  0x76   :  { %662 = vmatprep.subr.mxu0 %v604_v30  ;;  %757 = vmatprep.subr.mxu1 %v606_v31  ;;  %v1464_v23 = vld [vmem:[#allocation10 + $0xce8] sm:$0xff]  ;;  %v1331_v28 = vld [vmem:[#allocation10 + $0x8c0] sm:$0xff] }
  0x77   :  { %477 = vmatprep.mubr.f32.mxu0 %v4230_v0  ;;  %572 = vmatprep.mubr.f32.mxu1 %v4230_v0  ;;  %v1332_v26 = vld [vmem:[#allocation10 + $0x8c8] sm:$0xff]  ;;  %v1459_v29 = vld [vmem:[#allocation10 + $0xcc0] sm:$0xff] }
  0x78   :  { %663 = vmatpush1.msra.mxu0 %v603_v32  ;;  %758 = vmatpush1.msra.mxu1 %v605_v33  ;;  %v1460_v27 = vld [vmem:[#allocation10 + $0xcc8] sm:$0xff]  ;;  %v1327_v32 = vld [vmem:[#allocation10 + $0x8a0] sm:$0xff] }
  0x79   :  { %3281 = vmatmul.mubr.msk.f32.gmra.mxu0 %vm90_vm1, %v103_v34  ;;  %3286 = vmatmul.mubr.msk.f32.gmra.mxu1 %vm90_vm1, %v103_v34  ;;  %v1328_v30 = vld [vmem:[#allocation10 + $0x8a8] sm:$0xff]  ;;  %v1455_v33 = vld [vmem:[#allocation10 + $0xca0] sm:$0xff] }
  0x7a   :  { %664 = vmatprep.subr.mxu0 %v600_v35  ;;  %759 = vmatprep.subr.mxu1 %v602_v36  ;;  %v1456_v31 = vld [vmem:[#allocation10 + $0xca8] sm:$0xff]  ;;  %v1323_v36 = vld [vmem:[#allocation10 + $0x880] sm:$0xff] }
  0x7b   :  { %665 = vmatpush1.msra.mxu0 %v599_v37  ;;  %760 = vmatpush1.msra.mxu1 %v601_v38  ;;  %v1324_v34 = vld [vmem:[#allocation10 + $0x888] sm:$0xff]  ;;  %v1451_v37 = vld [vmem:[#allocation10 + $0xc80] sm:$0xff] }
  0x7c   :  { %483 = vmatprep.mubr.f32.mxu0 %v4230_v0  ;;  %578 = vmatprep.mubr.f32.mxu1 %v4230_v0  ;;  %v1452_v35 = vld [vmem:[#allocation10 + $0xc88] sm:$0xff] }
  0x7d   :  { %666 = vmatprep.subr.mxu0 %v596_v39  ;;  %761 = vmatprep.subr.mxu1 %v598_v40  ;;  %v1320_v38 = vld [vmem:[#allocation10 + $0x868] sm:$0xff]  ;;  %v1319_v40 = vld [vmem:[#allocation10 + $0x860] sm:$0xff] }
  0x7e   :  { %3282 = vmatmul.mubr.msk.f32.gmra.mxu0 %vm90_vm1, %v104_v41  ;;  %3287 = vmatmul.mubr.msk.f32.gmra.mxu1 %vm90_vm1, %v104_v41  ;;  %v1448_v39 = vld [vmem:[#allocation10 + $0xc68] sm:$0xff]  ;;  %v1447_v41 = vld [vmem:[#allocation10 + $0xc60] sm:$0xff] }
  0x7f   :  { %667 = vmatpush1.msra.mxu0 %v595_v42  ;;  %762 = vmatpush1.msra.mxu1 %v597_v43  ;;  %v1316_v42 = vld [vmem:[#allocation10 + $0x848] sm:$0xff] }
  0x80   :  { %668 = vmatprep.subr.mxu0 %v592_v44  ;;  %763 = vmatprep.subr.mxu1 %v594_v45  ;;  %v1444_v43 = vld [vmem:[#allocation10 + $0xc48] sm:$0xff]  ;;  %v1315_v44 = vld [vmem:[#allocation10 + $0x840] sm:$0xff] }
  0x81   :  { %669 = vmatpush1.msra.mxu0 %v591_v46  ;;  %702 = vmatprep.mubr.f32.mxu0 %v4230_v0  ;;  %v1443_v45 = vld [vmem:[#allocation10 + $0xc40] sm:$0xff]  ;;  %v1312_v46 = vld [vmem:[#allocation10 + $0x828] sm:$0xff] }
  0x82   :  { %764 = vmatpush1.msra.mxu1 %v593_v47  ;;  %797 = vmatprep.mubr.f32.mxu1 %v4230_v0  ;;  %v1440_v47 = vld [vmem:[#allocation10 + $0xc28] sm:$0xff] }
  0x83   :  { %3288 = vmatmul.mubr.msk.f32.vlgmr.msra.gmra.mxu0 %vm90_vm1, %v585_v48  ;;  %3293 = vmatmul.mubr.msk.f32.vlgmr.msra.gmra.mxu1 %vm90_vm1, %v585_v48  ;;  %v1311_v48 = vld [vmem:[#allocation10 + $0x820] sm:$0xff] }
  0x84   :  { %708 = vmatprep.mubr.f32.mxu0 %v4230_v0  ;;  %803 = vmatprep.mubr.f32.mxu1 %v4230_v0 }
  0x85   :  { %1640 = vmatprep.subr.mxu0 %v1368_v53  ;;  %1735 = vmatprep.subr.mxu1 %v1496_v54  ;;  %v1435_v53 = vld [vmem:[#allocation10 + $0xc00] sm:$0xff]  ;;  %v1432_v54 = vld [vmem:[#allocation10 + $0xbe8] sm:$0xff] }
  0x86   :  { %1641 = vmatpush1.msra.mxu0 %v1367_v55  ;;  %1736 = vmatpush1.msra.mxu1 %v1495_v56  ;;  %v1560_v55 = vld [vmem:[#allocation10 + $0xfe8] sm:$0xff]  ;;  %v1431_v56 = vld [vmem:[#allocation10 + $0xbe0] sm:$0xff] }
  0x87   :  { %3289 = vmatmul.mubr.msk.f32.gmra.mxu0 %vm90_vm1, %v586_v49  ;;  %3294 = vmatmul.mubr.msk.f32.gmra.mxu1 %vm90_vm1, %v586_v49  ;;  %v1439_v49 = vld [vmem:[#allocation10 + $0xc20] sm:$0xff] }
  0x88   :  { %714 = vmatprep.mubr.f32.mxu0 %v4230_v0  ;;  %809 = vmatprep.mubr.f32.mxu1 %v4230_v0 }
  0x89   :  { %1642 = vmatprep.subr.mxu0 %v1364_v57  ;;  %1737 = vmatprep.subr.mxu1 %v1492_v58  ;;  %v1559_v57 = vld [vmem:[#allocation10 + $0xfe0] sm:$0xff]  ;;  %v1428_v58 = vld [vmem:[#allocation10 + $0xbc8] sm:$0xff] }
  0x8a   :  { %1643 = vmatpush1.msra.mxu0 %v1363_v59  ;;  %1738 = vmatpush1.msra.mxu1 %v1491_v60  ;;  %v1556_v59 = vld [vmem:[#allocation10 + $0xfc8] sm:$0xff]  ;;  %v1427_v60 = vld [vmem:[#allocation10 + $0xbc0] sm:$0xff] }
  0x8b   :  { %3290 = vmatmul.mubr.msk.f32.gmra.mxu0 %vm90_vm1, %v587_v50  ;;  %3295 = vmatmul.mubr.msk.f32.gmra.mxu1 %vm90_vm1, %v587_v50  ;;  %v1308_v50 = vld [vmem:[#allocation10 + $0x808] sm:$0xff] }
  0x8c   :  { %720 = vmatprep.mubr.f32.mxu0 %v4230_v0  ;;  %815 = vmatprep.mubr.f32.mxu1 %v4230_v0 }
  0x8d   :  { %1644 = vmatprep.subr.mxu0 %v1360_v61  ;;  %1739 = vmatprep.subr.mxu1 %v1488_v62  ;;  %v1555_v61 = vld [vmem:[#allocation10 + $0xfc0] sm:$0xff]  ;;  %v1424_v62 = vld [vmem:[#allocation10 + $0xba8] sm:$0xff] }
  0x8e   :  { %1645 = vmatpush1.msra.mxu0 %v1359_v63  ;;  %1740 = vmatpush1.msra.mxu1 %v1487_v1  ;;  %v1552_v63 = vld [vmem:[#allocation10 + $0xfa8] sm:$0xff]  ;;  %v1423_v1 = vld [vmem:[#allocation10 + $0xba0] sm:$0xff] }
  0x8f   :  { %3291 = vmatmul.mubr.msk.f32.gmra.mxu0 %vm90_vm1, %v588_v51  ;;  %3296 = vmatmul.mubr.msk.f32.gmra.mxu1 %vm90_vm1, %v588_v51  ;;  %v1436_v51 = vld [vmem:[#allocation10 + $0xc08] sm:$0xff] }
  0x90   :  { %726 = vmatprep.mubr.f32.mxu0 %v4230_v0  ;;  %821 = vmatprep.mubr.f32.mxu1 %v4230_v0 }
  0x91   :  { %1646 = vmatprep.subr.mxu0 %v1356_v2  ;;  %1741 = vmatprep.subr.mxu1 %v1484_v3  ;;  %v1551_v2 = vld [vmem:[#allocation10 + $0xfa0] sm:$0xff]  ;;  %v1420_v3 = vld [vmem:[#allocation10 + $0xb88] sm:$0xff] }
  0x92   :  { %1647 = vmatpush1.msra.mxu0 %v1355_v4  ;;  %1742 = vmatpush1.msra.mxu1 %v1483_v5  ;;  %v1548_v4 = vld [vmem:[#allocation10 + $0xf88] sm:$0xff]  ;;  %v1419_v5 = vld [vmem:[#allocation10 + $0xb80] sm:$0xff] }
  0x93   :  { %3292 = vmatmul.mubr.msk.f32.gmra.mxu0 %vm90_vm1, %v589_v52  ;;  %3297 = vmatmul.mubr.msk.f32.gmra.mxu1 %vm90_vm1, %v589_v52  ;;  %v1307_v52 = vld [vmem:[#allocation10 + $0x800] sm:$0xff] }
  0x94   :  { %1648 = vmatprep.subr.mxu0 %v1352_v6  ;;  %1743 = vmatprep.subr.mxu1 %v1480_v7  ;;  %v1547_v6 = vld [vmem:[#allocation10 + $0xf80] sm:$0xff]  ;;  %v1416_v7 = vld [vmem:[#allocation10 + $0xb68] sm:$0xff] }
  0x95   :  { %1649 = vmatpush1.msra.mxu0 %v1351_v8  ;;  %1744 = vmatpush1.msra.mxu1 %v1479_v9  ;;  %v1544_v8 = vld [vmem:[#allocation10 + $0xf68] sm:$0xff]  ;;  %v1415_v9 = vld [vmem:[#allocation10 + $0xb60] sm:$0xff] }
  0x96   :  { %1650 = vmatprep.subr.mxu0 %v1348_v10  ;;  %1745 = vmatprep.subr.mxu1 %v1476_v11  ;;  %v1543_v10 = vld [vmem:[#allocation10 + $0xf60] sm:$0xff]  ;;  %v1412_v11 = vld [vmem:[#allocation10 + $0xb48] sm:$0xff] }
  0x97   :  { %1651 = vmatpush1.msra.mxu0 %v1347_v12  ;;  %1746 = vmatpush1.msra.mxu1 %v1475_v13  ;;  %v1540_v12 = vld [vmem:[#allocation10 + $0xf48] sm:$0xff]  ;;  %v1411_v13 = vld [vmem:[#allocation10 + $0xb40] sm:$0xff] }
  0x98   :  { %1652 = vmatprep.subr.mxu0 %v1344_v14  ;;  %1747 = vmatprep.subr.mxu1 %v1472_v15  ;;  %v1539_v14 = vld [vmem:[#allocation10 + $0xf40] sm:$0xff]  ;;  %v1408_v15 = vld [vmem:[#allocation10 + $0xb28] sm:$0xff] }
  0x99   :  { %1653 = vmatpush1.msra.mxu0 %v1343_v16  ;;  %1748 = vmatpush1.msra.mxu1 %v1471_v17  ;;  %v1536_v16 = vld [vmem:[#allocation10 + $0xf28] sm:$0xff]  ;;  %v1407_v17 = vld [vmem:[#allocation10 + $0xb20] sm:$0xff] }
  0x9a   :  { %1654 = vmatprep.subr.mxu0 %v1340_v18  ;;  %1749 = vmatprep.subr.mxu1 %v1468_v19  ;;  %v1535_v18 = vld [vmem:[#allocation10 + $0xf20] sm:$0xff]  ;;  %v1404_v19 = vld [vmem:[#allocation10 + $0xb08] sm:$0xff] }
  0x9b   :  { %1655 = vmatpush1.msra.mxu0 %v1339_v20  ;;  %1750 = vmatpush1.msra.mxu1 %v1467_v21  ;;  %v1532_v20 = vld [vmem:[#allocation10 + $0xf08] sm:$0xff]  ;;  %v1403_v21 = vld [vmem:[#allocation10 + $0xb00] sm:$0xff] }
  0x9c   :  { %1656 = vmatprep.subr.mxu0 %v1336_v22  ;;  %1751 = vmatprep.subr.mxu1 %v1464_v23  ;;  %v1531_v22 = vld [vmem:[#allocation10 + $0xf00] sm:$0xff]  ;;  %v850_v23 = vlaneseq }
  0x9d   :  { %1657 = vmatpush1.msra.mxu0 %v1335_v24  ;;  %1752 = vmatpush1.msra.mxu1 %v1463_v25  ;;  %v1400_v24 = vld [vmem:[#allocation10 + $0xae8] sm:$0xff] }
  0x9e   :  { %1658 = vmatprep.subr.mxu0 %v1332_v26  ;;  %1753 = vmatprep.subr.mxu1 %v1460_v27  ;;  %v1528_v25 = vld [vmem:[#allocation10 + $0xee8] sm:$0xff]  ;;  %vm3590_vm2 = vcmp.lt.s32.totalorder %v850_v23, 512  ;;  %v4234_v26 = vmov 0  ;;  %v1399_v27 = vld [vmem:[#allocation10 + $0xae0] sm:$0xff] }
  0x9f   :  { %1659 = vmatpush1.msra.mxu0 %v1331_v28  ;;  %1754 = vmatpush1.msra.mxu1 %v1459_v29  ;;  %v4235_v26 = vsel %vm3590_vm2, 4294967295, %v4234_v26  ;;  %1011 = vst.msk [vmem:[#allocation3] ss:$8 sm:$0xf] %vm3590_vm2, %v4230_v0  ;;  %v1527_v28 = vld [vmem:[#allocation10 + $0xee0] sm:$0xff]  ;;  %v1396_v29 = vld [vmem:[#allocation10 + $0xac8] sm:$0xff] }
  0xa0   :  { %1660 = vmatprep.subr.mxu0 %v1328_v30  ;;  %1755 = vmatprep.subr.mxu1 %v1456_v31  ;;  %4236 = vst [vmem:[#allocation18_spill] sm:$0xff] %v4235_v26  ;;  %1020 = vst.msk [vmem:[#allocation3 + $0x83] ss:$8 sm:$0xf] %vm3590_vm2, %v4230_v0  ;;  %v1524_v30 = vld [vmem:[#allocation10 + $0xec8] sm:$0xff]  ;;  %v1395_v31 = vld [vmem:[#allocation10 + $0xac0] sm:$0xff] }
  0xa1   :  { %1661 = vmatpush1.msra.mxu0 %v1327_v32  ;;  %1756 = vmatpush1.msra.mxu1 %v1455_v33  ;;  %v1523_v32 = vld [vmem:[#allocation10 + $0xec0] sm:$0xff]  ;;  %v1392_v33 = vld [vmem:[#allocation10 + $0xaa8] sm:$0xff] }
  0xa2   :  { %1662 = vmatprep.subr.mxu0 %v1324_v34  ;;  %1757 = vmatprep.subr.mxu1 %v1452_v35  ;;  %v1520_v34 = vld [vmem:[#allocation10 + $0xea8] sm:$0xff]  ;;  %v1391_v35 = vld [vmem:[#allocation10 + $0xaa0] sm:$0xff] }
  0xa3   :  { %1663 = vmatpush1.msra.mxu0 %v1323_v36  ;;  %1758 = vmatpush1.msra.mxu1 %v1451_v37  ;;  %v1519_v36 = vld [vmem:[#allocation10 + $0xea0] sm:$0xff]  ;;  %v1388_v37 = vld [vmem:[#allocation10 + $0xa88] sm:$0xff] }
  0xa4   :  { %1664 = vmatprep.subr.mxu0 %v1320_v38  ;;  %1759 = vmatprep.subr.mxu1 %v1448_v39  ;;  %v1516_v38 = vld [vmem:[#allocation10 + $0xe88] sm:$0xff]  ;;  %v1387_v39 = vld [vmem:[#allocation10 + $0xa80] sm:$0xff] }
  0xa5   :  { %1665 = vmatpush1.msra.mxu0 %v1319_v40  ;;  %1760 = vmatpush1.msra.mxu1 %v1447_v41  ;;  %v1515_v40 = vld [vmem:[#allocation10 + $0xe80] sm:$0xff]  ;;  %v1384_v41 = vld [vmem:[#allocation10 + $0xa68] sm:$0xff] }
  0xa6   :  { %1666 = vmatprep.subr.mxu0 %v1316_v42  ;;  %1761 = vmatprep.subr.mxu1 %v1444_v43  ;;  %v1512_v42 = vld [vmem:[#allocation10 + $0xe68] sm:$0xff]  ;;  %v1383_v43 = vld [vmem:[#allocation10 + $0xa60] sm:$0xff] }
  0xa7   :  { %1667 = vmatpush1.msra.mxu0 %v1315_v44  ;;  %1762 = vmatpush1.msra.mxu1 %v1443_v45  ;;  %v1511_v44 = vld [vmem:[#allocation10 + $0xe60] sm:$0xff]  ;;  %v1380_v45 = vld [vmem:[#allocation10 + $0xa48] sm:$0xff] }
  0xa8   :  { %1668 = vmatprep.subr.mxu0 %v1312_v46  ;;  %1763 = vmatprep.subr.mxu1 %v1440_v47  ;;  %v1508_v46 = vld [vmem:[#allocation10 + $0xe48] sm:$0xff]  ;;  %v1379_v47 = vld [vmem:[#allocation10 + $0xa40] sm:$0xff] }
  0xa9   :  { %1669 = vmatpush1.msra.mxu0 %v1311_v48  ;;  %1764 = vmatpush1.msra.mxu1 %v1439_v49  ;;  %v1507_v48 = vld [vmem:[#allocation10 + $0xe40] sm:$0xff]  ;;  %v1376_v49 = vld [vmem:[#allocation10 + $0xa28] sm:$0xff] }
  0xaa   :  { %1670 = vmatprep.subr.mxu0 %v1308_v50  ;;  %1765 = vmatprep.subr.mxu1 %v1436_v51  ;;  %v1504_v50 = vld [vmem:[#allocation10 + $0xe28] sm:$0xff]  ;;  %v1375_v51 = vld [vmem:[#allocation10 + $0xa20] sm:$0xff] }
  0xab   :  { %1671 = vmatpush1.msra.mxu0 %v1307_v52  ;;  %1766 = vmatpush1.msra.mxu1 %v1435_v53  ;;  %v1503_v52 = vld [vmem:[#allocation10 + $0xe20] sm:$0xff]  ;;  %v1372_v53 = vld [vmem:[#allocation10 + $0xa08] sm:$0xff] }
  0xac   :  { %1672 = vmatprep.subr.mxu0 %v1432_v54  ;;  %1767 = vmatprep.subr.mxu1 %v1560_v55  ;;  %v1500_v54 = vld [vmem:[#allocation10 + $0xe08] sm:$0xff]  ;;  %v1371_v55 = vld [vmem:[#allocation10 + $0xa00] sm:$0xff] }
  0xad   :  { %1673 = vmatpush2.msra.mxu0 %v1431_v56  ;;  %1768 = vmatpush2.msra.mxu1 %v1559_v57  ;;  %v1499_v56 = vld [vmem:[#allocation10 + $0xe00] sm:$0xff]  ;;  %v1370_v57 = vld [vmem:[#allocation10 + $0x9f8] sm:$0xff] }
  0xae   :  { %1674 = vmatprep.subr.mxu0 %v1428_v58  ;;  %1769 = vmatprep.subr.mxu1 %v1556_v59  ;;  %v1498_v58 = vld [vmem:[#allocation10 + $0xdf8] sm:$0xff] }
  0xaf   :  { %1675 = vmatpush2.msra.mxu0 %v1427_v60  ;;  %1770 = vmatpush2.msra.mxu1 %v1555_v61 }
  0xb0   :  { %1676 = vmatprep.subr.mxu0 %v1424_v62  ;;  %1771 = vmatprep.subr.mxu1 %v1552_v63 }
  0xb1   :  { %1677 = vmatpush2.msra.mxu0 %v1423_v1  ;;  %1772 = vmatpush2.msra.mxu1 %v1551_v2 }
  0xb2   :  { %1678 = vmatprep.subr.mxu0 %v1420_v3  ;;  %1773 = vmatprep.subr.mxu1 %v1548_v4 }
  0xb3   :  { %1679 = vmatpush2.msra.mxu0 %v1419_v5  ;;  %1774 = vmatpush2.msra.mxu1 %v1547_v6 }
  0xb4   :  { %1680 = vmatprep.subr.mxu0 %v1416_v7  ;;  %1775 = vmatprep.subr.mxu1 %v1544_v8 }
  0xb5   :  { %1681 = vmatpush2.msra.mxu0 %v1415_v9  ;;  %1776 = vmatpush2.msra.mxu1 %v1543_v10 }
  0xb6   :  { %1682 = vmatprep.subr.mxu0 %v1412_v11  ;;  %1777 = vmatprep.subr.mxu1 %v1540_v12 }
  0xb7   :  { %1683 = vmatpush2.msra.mxu0 %v1411_v13  ;;  %1778 = vmatpush2.msra.mxu1 %v1539_v14 }
  0xb8   :  { %1684 = vmatprep.subr.mxu0 %v1408_v15  ;;  %1779 = vmatprep.subr.mxu1 %v1536_v16 }
  0xb9   :  { %1685 = vmatpush2.msra.mxu0 %v1407_v17  ;;  %1780 = vmatpush2.msra.mxu1 %v1535_v18 }
  0xba   :  { %1686 = vmatprep.subr.mxu0 %v1404_v19  ;;  %1781 = vmatprep.subr.mxu1 %v1532_v20 }
  0xbb   :  { %1687 = vmatpush2.msra.mxu0 %v1403_v21  ;;  %1782 = vmatpush2.msra.mxu1 %v1531_v22 }
  0xbc   :  { %1688 = vmatprep.subr.mxu0 %v1400_v24  ;;  %1783 = vmatprep.subr.mxu1 %v1528_v25 }
  0xbd   :  { %1689 = vmatpush2.msra.mxu0 %v1399_v27  ;;  %1784 = vmatpush2.msra.mxu1 %v1527_v28 }
  0xbe   :  { %1690 = vmatprep.subr.mxu0 %v1396_v29  ;;  %1785 = vmatprep.subr.mxu1 %v1524_v30 }
  0xbf   :  { %1691 = vmatpush2.msra.mxu0 %v1395_v31  ;;  %1786 = vmatpush2.msra.mxu1 %v1523_v32  ;;  %v3605_v32 = vshrl.u32 %v850_v23, 7 }
  0xc0   :  { %1692 = vmatprep.subr.mxu0 %v1392_v33  ;;  %1787 = vmatprep.subr.mxu1 %v1520_v34 }
  0xc1   :  { %1693 = vmatpush2.msra.mxu0 %v1391_v35  ;;  %1788 = vmatpush2.msra.mxu1 %v1519_v36  ;;  %v4228_v35 = vsub.s32 0, %v3605_v32  ;;  %v4227_v36 = vsub.s32 2, %v3605_v32 }
  0xc2   :  { %1694 = vmatprep.subr.mxu0 %v1388_v37  ;;  %1789 = vmatprep.subr.mxu1 %v1516_v38  ;;  %v4229_v37 = vsub.s32 1, %v3605_v32  ;;  %v864_v38 = vsub.s32 3, %v3605_v32 }
  0xc3   :  { %1695 = vmatpush2.msra.mxu0 %v1387_v39  ;;  %1790 = vmatpush2.msra.mxu1 %v1515_v40 }
  0xc4   :  { %1696 = vmatprep.subr.mxu0 %v1384_v41  ;;  %1791 = vmatprep.subr.mxu1 %v1512_v42  ;;  %v848_v41 = vld [vmem:[#allocation9] sm:$0xf] }
  0xc5   :  { %1697 = vmatpush2.msra.mxu0 %v1383_v43  ;;  %1792 = vmatpush2.msra.mxu1 %v1511_v44  ;;  %v3613_v44 = vrot.slane %v848_v41, %v4228_v35  ;;  %v3617_v23 = vrot.slane %v848_v41, %v4227_v36 }
  0xc6   :  { %1698 = vmatprep.subr.mxu0 %v1380_v45  ;;  %1793 = vmatprep.subr.mxu1 %v1508_v46  ;;  %v3621_v45 = vrot.slane %v848_v41, %v4229_v37  ;;  %v3625_v46 = vrot.slane %v848_v41, %v864_v38 }
  0xc7   :  { %1699 = vmatpush2.msra.mxu0 %v1379_v47  ;;  %1794 = vmatpush2.msra.mxu1 %v1507_v48 }
  0xc8   :  { %1700 = vmatprep.subr.mxu0 %v1376_v49  ;;  %1795 = vmatprep.subr.mxu1 %v1504_v50 }
  0xc9   :  { %1701 = vmatpush2.msra.mxu0 %v1375_v51  ;;  %1796 = vmatpush2.msra.mxu1 %v1503_v52 }
  0xca   :  { %1702 = vmatprep.subr.mxu0 %v1372_v53  ;;  %1797 = vmatprep.subr.mxu1 %v1500_v54 }
  0xcb   :  { %1703 = vmatpush2.msra.mxu0 %v1371_v55  ;;  %1798 = vmatpush2.msra.mxu1 %v1499_v56 }
  0xcc   :  { %1830 = vmatprep.subr.mxu0 %v1370_v57  ;;  %1925 = vmatprep.subr.mxu1 %v1498_v58 }
 0x110   :  { %v256_v59 = vpop.f32.mrf.mxu0  ;;  %v351_v60 = vpop.f32.mrf.mxu1 }
 0x112   :  { %v258_v61 = vpop.f32.mrf.mxu0  ;;  %v353_v62 = vpop.f32.mrf.mxu1 }
 0x114   :  { %v262_v63 = vpop.f32.mrf.mxu0  ;;  %v357_v1 = vpop.f32.mrf.mxu1 }
 0x116   :  { %v264_v2 = vpop.f32.mrf.mxu0  ;;  %v359_v3 = vpop.f32.mrf.mxu1 }
 0x119   :  { %v268_v4 = vpop.f32.mrf.mxu0  ;;  %v363_v5 = vpop.f32.mrf.mxu1 }
 0x11b   :  { %v270_v6 = vpop.f32.mrf.mxu0  ;;  %v365_v7 = vpop.f32.mrf.mxu1 }
 0x11f   :  { %v274_v8 = vpop.f32.mrf.mxu0  ;;  %v369_v9 = vpop.f32.mrf.mxu1 }
 0x121   :  { %v276_v10 = vpop.f32.mrf.mxu0  ;;  %v371_v11 = vpop.f32.mrf.mxu1 }
 0x124   :  { %v280_v12 = vpop.f32.mrf.mxu0  ;;  %v375_v13 = vpop.f32.mrf.mxu1 }
 0x126   :  { %v3600_v14 = vpop.f32.mrf.mxu0  ;;  %v3602_v15 = vpop.f32.mrf.mxu1 }
 0x129   :  { %v461_v16 = vpop.f32.mrf.mxu0  ;;  %v556_v17 = vpop.f32.mrf.mxu1 }
 0x12a   :  { %v462_v47 = vadd.f32 %v461_v16, %v256_v59  ;;  %v557_v48 = vadd.f32 %v556_v17, %v351_v60 }
 0x12b   :  { %v463_v18 = vpop.f32.mrf.mxu0  ;;  %v558_v19 = vpop.f32.mrf.mxu1 }
 0x12c   :  { %v464_v49 = vadd.f32 %v463_v18, %v258_v61  ;;  %v559_v50 = vadd.f32 %v558_v19, %v353_v62 }
 0x12e   :  { %v467_v20 = vpop.f32.mrf.mxu0  ;;  %v562_v21 = vpop.f32.mrf.mxu1 }
 0x12f   :  { %v468_v51 = vadd.f32 %v467_v20, %v262_v63  ;;  %v563_v52 = vadd.f32 %v562_v21, %v357_v1 }
 0x130   :  { %v469_v22 = vpop.f32.mrf.mxu0  ;;  %v564_v24 = vpop.f32.mrf.mxu1 }
 0x131   :  { %v470_v53 = vadd.f32 %v469_v22, %v264_v2  ;;  %v565_v54 = vadd.f32 %v564_v24, %v359_v3 }
 0x133   :  { %v473_v25 = vpop.f32.mrf.mxu0  ;;  %v568_v27 = vpop.f32.mrf.mxu1 }
 0x134   :  { %v474_v57 = vadd.f32 %v473_v25, %v268_v4  ;;  %v569_v58 = vadd.f32 %v568_v27, %v363_v5 }
 0x135   :  { %v475_v28 = vpop.f32.mrf.mxu0  ;;  %v570_v29 = vpop.f32.mrf.mxu1 }
 0x136   :  { %v476_v37 = vadd.f32 %v475_v28, %v270_v6  ;;  %v571_v0 = vadd.f32 %v570_v29, %v365_v7 }
 0x139   :  { %v479_v30 = vpop.f32.mrf.mxu0  ;;  %v574_v31 = vpop.f32.mrf.mxu1 }
 0x13a   :  { %v3627_v26 = vadd.f32 %v479_v30, %v274_v8  ;;  %v3629_v41 = vadd.f32 %v574_v31, %v369_v9 }
 0x13b   :  { %v481_v33 = vpop.f32.mrf.mxu0  ;;  %v576_v34 = vpop.f32.mrf.mxu1 }
 0x13c   :  { %v3633_v2 = vadd.f32 %v481_v33, %v276_v10  ;;  %v3635_v3 = vadd.f32 %v576_v34, %v371_v11 }
 0x13e   :  { %v485_v39 = vpop.f32.mrf.mxu0  ;;  %v580_v40 = vpop.f32.mrf.mxu1 }
 0x13f   :  { %v3637_v4 = vadd.f32 %v485_v39, %v280_v12  ;;  %v3639_v5 = vadd.f32 %v580_v40, %v375_v13 }
 0x140   :  { %v487_v42 = vpop.f32.mrf.mxu0  ;;  %v582_v43 = vpop.f32.mrf.mxu1 }
 0x141   :  { %v3644_v18 = vadd.f32 %v487_v42, %v3600_v14  ;;  %v3647_v10 = vadd.f32 %v582_v43, %v3602_v15 }
 0x143   :  { %v704_v55 = vpop.f32.mrf.mxu0  ;;  %v799_v56 = vpop.f32.mrf.mxu1 }
 0x144   :  { %v828_v36 = vadd.f32 %v704_v55, %v462_v47  ;;  %v830_v35 = vadd.f32 %v799_v56, %v557_v48 }
 0x145   :  { %v706_v59 = vpop.f32.mrf.mxu0  ;;  %v801_v60 = vpop.f32.mrf.mxu1 }
 0x146   :  { %v870_v61 = vadd.f32 %v3613_v44, %v828_v36  ;;  %v872_v62 = vadd.f32 %v3617_v23, %v830_v35  ;;  %v829_v63 = vadd.f32 %v706_v59, %v464_v49  ;;  %v831_v1 = vadd.f32 %v801_v60, %v559_v50 }
 0x147   :  { %v710_v6 = vpop.f32.mrf.mxu0  ;;  %v805_v7 = vpop.f32.mrf.mxu1 }
 0x148   :  { %v890_v8 = vmax.f32 %v870_v61, 0.0  ;;  %v892_v9 = vmax.f32 %v872_v62, 0.0  ;;  %v871_v16 = vadd.f32 %v3621_v45, %v829_v63  ;;  %v873_v17 = vadd.f32 %v3625_v46, %v831_v1 }
 0x149   :  { %v832_v11 = vadd.f32 %v710_v6, %v468_v51  ;;  %v834_v19 = vadd.f32 %v805_v7, %v563_v52  ;;  %v712_v12 = vpop.f32.mrf.mxu0  ;;  %v807_v20 = vpop.f32.mrf.mxu1 }
 0x14a   :  { %v931_v13 = vrot.slane %v890_v8, 7  ;;  %v933_v21 = vrot.slane %v892_v9, 7  ;;  %v891_v22 = vmax.f32 %v871_v16, 0.0  ;;  %v893_v24 = vmax.f32 %v873_v17, 0.0 }
 0x14b   :  { %v874_v25 = vadd.f32 %v3613_v44, %v832_v11  ;;  %v876_v27 = vadd.f32 %v3617_v23, %v834_v19  ;;  %v833_v28 = vadd.f32 %v712_v12, %v470_v53  ;;  %v835_v29 = vadd.f32 %v807_v20, %v565_v54  ;;  %v716_v30 = vpop.f32.mrf.mxu0  ;;  %v811_v14 = vpop.f32.mrf.mxu1 }
 0x14c   :  { %987 = vst [vmem:[#allocation3] sm:$0xfe] %v931_v13  ;;  %989 = vst [vmem:[#allocation3 + $0x10] sm:$0xfe] %v933_v21  ;;  %v932_v15 = vrot.slane %v891_v22, 7  ;;  %v934_v31 = vrot.slane %v893_v24, 7  ;;  %v836_v33 = vadd.f32 %v716_v30, %v474_v57  ;;  %v838_v34 = vadd.f32 %v811_v14, %v569_v58 }
 0x14d   :  { %v894_v35 = vmax.f32 %v874_v25, 0.0  ;;  %v896_v36 = vmax.f32 %v876_v27, 0.0  ;;  %v875_v39 = vadd.f32 %v3621_v45, %v833_v28  ;;  %v877_v40 = vadd.f32 %v3625_v46, %v835_v29  ;;  %v718_v42 = vpop.f32.mrf.mxu0  ;;  %v813_v43 = vpop.f32.mrf.mxu1 }
 0x14e   :  { %988 = vst [vmem:[#allocation3 + $0x8] sm:$0xfe] %v932_v15  ;;  %990 = vst [vmem:[#allocation3 + $0x18] sm:$0xfe] %v934_v31  ;;  %v878_v47 = vadd.f32 %v3613_v44, %v836_v33  ;;  %v880_v48 = vadd.f32 %v3617_v23, %v838_v34  ;;  %v837_v49 = vadd.f32 %v718_v42, %v476_v37 }
 0x14f   :  { %v839_v50 = vadd.f32 %v813_v43, %v571_v0  ;;  %v935_v51 = vrot.slane %v894_v35, 7  ;;  %v939_v52 = vrot.slane %v896_v36, 7  ;;  %v895_v53 = vmax.f32 %v875_v39, 0.0  ;;  %v722_v55 = vpop.f32.mrf.mxu0  ;;  %v817_v56 = vpop.f32.mrf.mxu1 }
 0x150   :  { %v897_v54 = vmax.f32 %v877_v40, 0.0  ;;  %v898_v57 = vmax.f32 %v878_v47, 0.0  ;;  %v900_v58 = vmax.f32 %v880_v48, 0.0  ;;  %v879_v59 = vadd.f32 %v3621_v45, %v837_v49 }
 0x151   :  { %v881_v60 = vadd.f32 %v3625_v46, %v839_v50  ;;  %v3658_v61 = vsel %vm930_vm3, %v931_v13, %v935_v51  ;;  %v3661_v62 = vsel %vm930_vm3, %v933_v21, %v939_v52  ;;  %v937_v37 = vrot.slane %v895_v53, 7  ;;  %v724_v63 = vpop.f32.mrf.mxu0  ;;  %v819_v1 = vpop.f32.mrf.mxu1 }
 0x152   :  { %v941_v0 = vrot.slane %v897_v54, 7  ;;  %991 = vst [vmem:[#allocation3 + $0x20] sm:$0xff] %v3658_v61  ;;  %993 = vst [vmem:[#allocation3 + $0x30] sm:$0xff] %v3661_v62  ;;  %v943_v6 = vrot.slane %v898_v57, 7  ;;  %v947_v7 = vrot.slane %v900_v58, 7  ;;  %v899_v8 = vmax.f32 %v879_v59, 0.0 }
 0x153   :  { %v901_v9 = vmax.f32 %v881_v60, 0.0  ;;  %v3666_v16 = vsel %vm930_vm3, %v932_v15, %v937_v37  ;;  %v840_v11 = vadd.f32 %v722_v55, %v3627_v26  ;;  %v842_v19 = vadd.f32 %v817_v56, %v3629_v41  ;;  %v728_v12 = vpop.f32.mrf.mxu0  ;;  %v823_v20 = vpop.f32.mrf.mxu1 }
 0x154   :  { %v3669_v17 = vsel %vm930_vm3, %v934_v31, %v941_v0  ;;  %992 = vst [vmem:[#allocation3 + $0x28] sm:$0xff] %v3666_v16  ;;  %v944_v13 = vsel %vm930_vm3, %v935_v51, %v943_v6  ;;  %v948_v21 = vsel %vm930_vm3, %v939_v52, %v947_v7  ;;  %v945_v22 = vrot.slane %v899_v8, 7 }
 0x155   :  { %994 = vst [vmem:[#allocation3 + $0x38] sm:$0xff] %v3669_v17  ;;  %v949_v24 = vrot.slane %v901_v9, 7  ;;  %995 = vst [vmem:[#allocation3 + $0x40] sm:$0xff] %v944_v13  ;;  %v882_v25 = vadd.f32 %v3613_v44, %v840_v11  ;;  %v884_v26 = vadd.f32 %v3617_v23, %v842_v19  ;;  %v841_v41 = vadd.f32 %v724_v63, %v3633_v2  ;;  %v730_v28 = vpop.f32.mrf.mxu0  ;;  %v825_v29 = vpop.f32.mrf.mxu1  ;;  %v1299_v53 = vld [vmem:[#allocation3 + $0x8] sm:$0xfe] }
 0x156   :  { %997 = vst [vmem:[#allocation3 + $0x50] sm:$0xff] %v948_v21  ;;  %v843_v27 = vadd.f32 %v819_v1, %v3635_v3  ;;  %v946_v30 = vsel %vm930_vm3, %v937_v37, %v945_v22  ;;  %v844_v15 = vadd.f32 %v728_v12, %v3637_v4  ;;  %v846_v31 = vadd.f32 %v823_v20, %v3639_v5  ;;  %v1301_v58 = vld [vmem:[#allocation3 + $0x18] sm:$0xfe] }
 0x157   :  { %v950_v14 = vsel %vm930_vm3, %v941_v0, %v949_v24  ;;  %996 = vst [vmem:[#allocation3 + $0x48] sm:$0xff] %v946_v30  ;;  %v902_v33 = vmax.f32 %v882_v25, 0.0  ;;  %v904_v34 = vmax.f32 %v884_v26, 0.0  ;;  %v883_v35 = vadd.f32 %v3621_v45, %v841_v41  ;;  %v1300_v0 = vld [vmem:[#allocation3 + $0x10] sm:$0xfe] }
 0x158   :  { %998 = vst [vmem:[#allocation3 + $0x58] sm:$0xff] %v950_v14  ;;  %v885_v2 = vadd.f32 %v3625_v46, %v843_v27  ;;  %v4237_v3 = vmov 0.0   ;;  %v886_v4 = vadd.f32 %v3613_v44, %v844_v15  ;;  %v888_v5 = vadd.f32 %v3617_v23, %v846_v31  ;;  %v1369_v26 = vld [vmem:[#allocation10 + $0x9f0] sm:$0xff] }
 0x159   :  { %1014 = vst.msk [vmem:[#allocation3 + $0x41] ss:$8 sm:$0xf] %vm3590_vm2, %v4237_v3  ;;  %1017 = vst.msk [vmem:[#allocation3 + $0x42] ss:$8 sm:$0xf] %vm3590_vm2, %v4237_v3  ;;  %v845_v39 = vadd.f32 %v730_v28, %v3644_v18  ;;  %v847_v40 = vadd.f32 %v825_v29, %v3647_v10 }
 0x15a   :  { %v951_v42 = vrot.slane %v902_v33, 7  ;;  %v955_v43 = vrot.slane %v904_v34, 7  ;;  %v903_v47 = vmax.f32 %v883_v35, 0.0  ;;  %v905_v48 = vmax.f32 %v885_v2, 0.0  ;;  %v1298_v10 = vld [vmem:[#allocation3] sm:$0xfe] }
 0x15b   :  { %v906_v49 = vmax.f32 %v886_v4, 0.0  ;;  %v908_v50 = vmax.f32 %v888_v5, 0.0  ;;  %v887_v51 = vadd.f32 %v3621_v45, %v845_v39  ;;  %v889_v52 = vadd.f32 %v3625_v46, %v847_v40  ;;  %v1366_v29 = vld [vmem:[#allocation10 + $0x9d8] sm:$0xff]  ;;  %v1365_v15 = vld [vmem:[#allocation10 + $0x9d0] sm:$0xff] }
 0x15c   :  { %v3700_v54 = vsel %vm930_vm3, %v943_v6, %v951_v42  ;;  %v3703_v44 = vsel %vm930_vm3, %v947_v7, %v955_v43  ;;  %v953_v23 = vrot.slane %v903_v47, 7  ;;  %v957_v18 = vrot.slane %v905_v48, 7  ;;  %v1493_v33 = vld [vmem:[#allocation10 + $0xdd0] sm:$0xff]  ;;  %v1362_v34 = vld [vmem:[#allocation10 + $0x9b8] sm:$0xff] }
 0x15d   :  { %999 = vst [vmem:[#allocation3 + $0x60] sm:$0xff] %v3700_v54  ;;  %1001 = vst [vmem:[#allocation3 + $0x70] sm:$0xff] %v3703_v44  ;;  %v959_v55 = vrot.slane %v906_v49, 7  ;;  %v963_v56 = vrot.slane %v908_v50, 7  ;;  %v907_v57 = vmax.f32 %v887_v51, 0.0  ;;  %v909_v45 = vmax.f32 %v889_v52, 0.0 }
 0x15e   :  { %v3708_v46 = vsel %vm930_vm3, %v945_v22, %v953_v23  ;;  %v3711_v59 = vsel %vm930_vm3, %v949_v24, %v957_v18  ;;  %v1587_v60 = vrot.slane %v1299_v53, 1  ;;  %v1588_v37 = vrot.slane %v3666_v16, 1  ;;  %v1490_v2 = vld [vmem:[#allocation10 + $0xdb8] sm:$0xff]  ;;  %v1361_v4 = vld [vmem:[#allocation10 + $0x9b0] sm:$0xff] }
 0x15f   :  { %1000 = vst [vmem:[#allocation3 + $0x68] sm:$0xff] %v3708_v46  ;;  %1002 = vst [vmem:[#allocation3 + $0x78] sm:$0xff] %v3711_v59  ;;  %v960_v63 = vsel %vm930_vm3, %v951_v42, %v959_v55  ;;  %v964_v1 = vsel %vm930_vm3, %v955_v43, %v963_v56  ;;  %v961_v6 = vrot.slane %v907_v57, 7  ;;  %v965_v7 = vrot.slane %v909_v45, 7  ;;  %v1489_v5 = vld [vmem:[#allocation10 + $0xdb0] sm:$0xff]  ;;  %v1358_v42 = vld [vmem:[#allocation10 + $0x998] sm:$0xff] }
 0x160   :  { %1003 = vst [vmem:[#allocation3 + $0x80] sm:$0x7] %v960_v63  ;;  %1005 = vst [vmem:[#allocation3 + $0x90] sm:$0x7] %v964_v1  ;;  %v3719_v8 = vsel %vm1583_vm4, %v1587_v60, %v1588_v37  ;;  %v1593_v9 = vrot.slane %v1301_v58, 1  ;;  %v1594_v11 = vrot.slane %v3669_v17, 1 }
 0x161   :  { %v1584_v16 = vrot.slane %v1298_v10, 1  ;;  %v3722_v19 = vld [vmem:[#allocation3 + $0x48] sm:$0xff]  ;;  %v3724_v12 = vld [vmem:[#allocation3 + $0x58] sm:$0xff]  ;;  %v962_v20 = vsel %vm930_vm3, %v953_v23, %v961_v6  ;;  %v966_v13 = vsel %vm930_vm3, %v957_v18, %v965_v7  ;;  %1704 = vmatprep.mubr.f32.mxu0 %v3719_v8  ;;  %v1585_v21 = vrot.slane %v3658_v61, 1  ;;  %v3730_v24 = vld [vmem:[#allocation3 + $0x40] sm:$0xff] }
 0x162   :  { %v1590_v22 = vrot.slane %v1300_v0, 1  ;;  %1004 = vst [vmem:[#allocation3 + $0x88] sm:$0x7] %v962_v20  ;;  %1006 = vst [vmem:[#allocation3 + $0x98] sm:$0x7] %v966_v13  ;;  %v3733_v17 = vsel %vm1583_vm4, %v1593_v9, %v1594_v11  ;;  %v1591_v25 = vrot.slane %v3661_v62, 1 }
 0x163   :  { %v1598_v41 = vrot.slane %v3722_v19, 1  ;;  %v3737_v27 = vld [vmem:[#allocation3 + $0x50] sm:$0xff]  ;;  %1799 = vmatprep.mubr.f32.mxu1 %v3733_v17  ;;  %v3741_v28 = vsel %vm1583_vm4, %v1584_v16, %v1585_v21  ;;  %v1602_v30 = vrot.slane %v3724_v12, 1  ;;  %v1494_v62 = vld [vmem:[#allocation10 + $0xdd8] sm:$0xff]  ;;  %v1596_v31 = vrot.slane %v3730_v24, 1 }
 0x164   :  { %v1497_v61 = vld [vmem:[#allocation10 + $0xdf0] sm:$0xff]  ;;  %1705 = vmatmul.mubr.f32.vlgmr.msra.gmra.mxu0 %v3741_v28  ;;  %v3746_v14 = vsel %vm1583_vm4, %v1590_v22, %v1591_v25  ;;  %v1600_v35 = vrot.slane %v3737_v27, 1  ;;  %v1486_v43 = vld [vmem:[#allocation10 + $0xd98] sm:$0xff]  ;;  %v1606_v50 = vrot.slane %v3708_v46, 1  ;;  %v1610_v52 = vrot.slane %v3711_v59, 1 }
 0x165   :  { %1800 = vmatmul.mubr.f32.vlgmr.msra.gmra.mxu1 %v3746_v14  ;;  %1831 = vmatpush1.msra.mxu0 %v1369_v26  ;;  %v3752_v3 = vsel %vm1583_vm4, %v1588_v37, %v1598_v41  ;;  %v3755_v36 = vsel %vm1583_vm4, %v1594_v11, %v1602_v30  ;;  %v3758_v39 = vsel %vm1583_vm4, %v1585_v21, %v1596_v31  ;;  %v1357_v47 = vld [vmem:[#allocation10 + $0x990] sm:$0xff]  ;;  %v1354_v53 = vld [vmem:[#allocation10 + $0x978] sm:$0xff]  ;;  %v1604_v45 = vrot.slane %v3700_v54, 1 }
 0x166   :  { %1926 = vmatpush1.msra.mxu1 %v1497_v61  ;;  %1832 = vmatprep.subr.mxu0 %v1366_v29  ;;  %v3762_v40 = vsel %vm1583_vm4, %v1591_v25, %v1600_v35  ;;  %v1485_v49 = vld [vmem:[#allocation10 + $0xd90] sm:$0xff]  ;;  %v3770_v23 = vsel %vm1583_vm4, %v1598_v41, %v1606_v50  ;;  %v1482_v18 = vld [vmem:[#allocation10 + $0xd78] sm:$0xff]  ;;  %v3776_v56 = vsel %vm1583_vm4, %v1602_v30, %v1610_v52  ;;  %v1608_v46 = vrot.slane %v3703_v44, 1 }
 0x167   :  { %1927 = vmatprep.subr.mxu1 %v1494_v62  ;;  %1833 = vmatpush1.msra.mxu0 %v1365_v15  ;;  %v1353_v10 = vld [vmem:[#allocation10 + $0x970] sm:$0xff]  ;;  %v1350_v59 = vld [vmem:[#allocation10 + $0x958] sm:$0xff]  ;;  %v3784_v37 = vsel %vm1583_vm4, %v1596_v31, %v1604_v45  ;;  %v1304_v1 = vld [vmem:[#allocation3 + $0x90] sm:$0x7] }
 0x168   :  { %1928 = vmatpush1.msra.mxu1 %v1493_v33  ;;  %1834 = vmatprep.subr.mxu0 %v1362_v34  ;;  %v1481_v57 = vld [vmem:[#allocation10 + $0xd70] sm:$0xff]  ;;  %v1302_v60 = vld [vmem:[#allocation3 + $0x80] sm:$0x7]  ;;  %v3788_v54 = vsel %vm1583_vm4, %v1600_v35, %v1608_v46  ;;  %v3801_v12 = vrot.slane %v1304_v1, 1 }
 0x169   :  { %1929 = vmatprep.subr.mxu1 %v1490_v2  ;;  %1710 = vmatprep.mubr.f32.mxu0 %v3752_v3  ;;  %v1303_v48 = vld [vmem:[#allocation3 + $0x88] sm:$0x7]  ;;  %v1305_v51 = vld [vmem:[#allocation3 + $0x98] sm:$0x7]  ;;  %v1478_v0 = vld [vmem:[#allocation10 + $0xd58] sm:$0xff]  ;;  %v3799_v11 = vrot.slane %v1302_v60, 1 }
 0x16a   :  { %1805 = vmatprep.mubr.f32.mxu1 %v3755_v36  ;;  %1835 = vmatpush1.msra.mxu0 %v1361_v4  ;;  %v3772_v55 = vrot.slane %v1303_v48, 1  ;;  %v3779_v58 = vrot.slane %v1305_v51, 1  ;;  %v1349_v63 = vld [vmem:[#allocation10 + $0x950] sm:$0xff]  ;;  %v1346_v9 = vld [vmem:[#allocation10 + $0x938] sm:$0xff]  ;;  %v3812_v24 = vsel %vm1583_vm4, %v1608_v46, %v3801_v12 }
 0x16b   :  { %1930 = vmatpush1.msra.mxu1 %v1489_v5  ;;  %1711 = vmatmul.mubr.f32.gmra.mxu0 %v3758_v39  ;;  %v1477_v6 = vld [vmem:[#allocation10 + $0xd50] sm:$0xff]  ;;  %v1474_v16 = vld [vmem:[#allocation10 + $0xd38] sm:$0xff]  ;;  %v3807_v21 = vsel %vm1583_vm4, %v1604_v45, %v3799_v11 }
 0x16c   :  { %1806 = vmatmul.mubr.f32.gmra.mxu1 %v3762_v40  ;;  %1836 = vmatprep.subr.mxu0 %v1358_v42  ;;  %v3792_v44 = vsel %vm1583_vm4, %v1606_v50, %v3772_v55  ;;  %v3797_v7 = vsel %vm1583_vm4, %v1610_v52, %v3779_v58  ;;  %v1345_v19 = vld [vmem:[#allocation10 + $0x930] sm:$0xff]  ;;  %v1342_v13 = vld [vmem:[#allocation10 + $0x918] sm:$0xff] }
 0x16d   :  { %1931 = vmatprep.subr.mxu1 %v1486_v43  ;;  %1837 = vmatpush1.msra.mxu0 %v1357_v47  ;;  %v1473_v20 = vld [vmem:[#allocation10 + $0xd30] sm:$0xff]  ;;  %v1470_v22 = vld [vmem:[#allocation10 + $0xd18] sm:$0xff] }
 0x16e   :  { %1932 = vmatpush1.msra.mxu1 %v1485_v49  ;;  %1716 = vmatprep.mubr.f32.mxu0 %v3770_v23  ;;  %v1341_v25 = vld [vmem:[#allocation10 + $0x910] sm:$0xff]  ;;  %v1338_v41 = vld [vmem:[#allocation10 + $0x8f8] sm:$0xff] }
 0x16f   :  { %1811 = vmatprep.mubr.f32.mxu1 %v3776_v56  ;;  %1838 = vmatprep.subr.mxu0 %v1354_v53  ;;  %v1469_v26 = vld [vmem:[#allocation10 + $0xd10] sm:$0xff]  ;;  %v1466_v27 = vld [vmem:[#allocation10 + $0xcf8] sm:$0xff] }
 0x170   :  { %1933 = vmatprep.subr.mxu1 %v1482_v18  ;;  %1839 = vmatpush1.msra.mxu0 %v1353_v10  ;;  %v1337_v61 = vld [vmem:[#allocation10 + $0x8f0] sm:$0xff]  ;;  %v1334_v30 = vld [vmem:[#allocation10 + $0x8d8] sm:$0xff] }
 0x171   :  { %1934 = vmatpush1.msra.mxu1 %v1481_v57  ;;  %1717 = vmatmul.mubr.f32.gmra.mxu0 %v3784_v37  ;;  %v1465_v29 = vld [vmem:[#allocation10 + $0xcf0] sm:$0xff]  ;;  %v1462_v62 = vld [vmem:[#allocation10 + $0xcd8] sm:$0xff] }
 0x172   :  { %1812 = vmatmul.mubr.f32.gmra.mxu1 %v3788_v54  ;;  %1840 = vmatprep.subr.mxu0 %v1350_v59  ;;  %v1333_v15 = vld [vmem:[#allocation10 + $0x8d0] sm:$0xff]  ;;  %v1330_v33 = vld [vmem:[#allocation10 + $0x8b8] sm:$0xff] }
 0x173   :  { %1935 = vmatprep.subr.mxu1 %v1478_v0  ;;  %1841 = vmatpush1.msra.mxu0 %v1349_v63  ;;  %v1461_v31 = vld [vmem:[#allocation10 + $0xcd0] sm:$0xff]  ;;  %v1458_v34 = vld [vmem:[#allocation10 + $0xcb8] sm:$0xff] }
 0x174   :  { %1936 = vmatpush1.msra.mxu1 %v1477_v6  ;;  %1722 = vmatprep.mubr.f32.mxu0 %v3792_v44  ;;  %v1329_v35 = vld [vmem:[#allocation10 + $0x8b0] sm:$0xff]  ;;  %v1326_v4 = vld [vmem:[#allocation10 + $0x898] sm:$0xff] }
 0x175   :  { %1817 = vmatprep.mubr.f32.mxu1 %v3797_v7  ;;  %1842 = vmatprep.subr.mxu0 %v1346_v9  ;;  %v1457_v2 = vld [vmem:[#allocation10 + $0xcb0] sm:$0xff]  ;;  %v1454_v5 = vld [vmem:[#allocation10 + $0xc98] sm:$0xff] }
 0x176   :  { %1937 = vmatprep.subr.mxu1 %v1474_v16  ;;  %1843 = vmatpush1.msra.mxu0 %v1345_v19  ;;  %v1325_v42 = vld [vmem:[#allocation10 + $0x890] sm:$0xff]  ;;  %v1322_v47 = vld [vmem:[#allocation10 + $0x878] sm:$0xff] }
 0x177   :  { %1938 = vmatpush1.msra.mxu1 %v1473_v20  ;;  %1723 = vmatmul.mubr.f32.gmra.mxu0 %v3807_v21  ;;  %v1453_v43 = vld [vmem:[#allocation10 + $0xc90] sm:$0xff]  ;;  %v1450_v48 = vld [vmem:[#allocation10 + $0xc78] sm:$0xff] }
 0x178   :  { %1818 = vmatmul.mubr.f32.gmra.mxu1 %v3812_v24  ;;  %1844 = vmatprep.subr.mxu0 %v1342_v13  ;;  %v1321_v49 = vld [vmem:[#allocation10 + $0x870] sm:$0xff]  ;;  %v1446_v51 = vld [vmem:[#allocation10 + $0xc58] sm:$0xff] }
 0x179   :  { %1939 = vmatprep.subr.mxu1 %v1470_v22  ;;  %1728 = vmatprep.mubr.f32.mxu0 %v3772_v55  ;;  %v1449_v50 = vld [vmem:[#allocation10 + $0xc70] sm:$0xff]  ;;  %v1314_v53 = vld [vmem:[#allocation10 + $0x838] sm:$0xff] }
 0x17a   :  { %1823 = vmatprep.mubr.f32.mxu1 %v3779_v58  ;;  %1845 = vmatpush1.msra.mxu0 %v1341_v25  ;;  %v1317_v52 = vld [vmem:[#allocation10 + $0x850] sm:$0xff]  ;;  %v1442_v18 = vld [vmem:[#allocation10 + $0xc38] sm:$0xff] }
 0x17b   :  { %1940 = vmatpush1.msra.mxu1 %v1469_v26  ;;  %1846 = vmatprep.subr.mxu0 %v1338_v41  ;;  %v1313_v10 = vld [vmem:[#allocation10 + $0x830] sm:$0xff]  ;;  %v1310_v45 = vld [vmem:[#allocation10 + $0x818] sm:$0xff] }
 0x17c   :  { %1941 = vmatprep.subr.mxu1 %v1466_v27  ;;  %1847 = vmatpush1.msra.mxu0 %v1337_v61  ;;  %v1441_v57 = vld [vmem:[#allocation10 + $0xc30] sm:$0xff]  ;;  %v1438_v46 = vld [vmem:[#allocation10 + $0xc18] sm:$0xff] }
 0x17d   :  { %1942 = vmatpush1.msra.mxu1 %v1465_v29  ;;  %1729 = vmatmul.mubr.f32.gmra.mxu0 %v3799_v11  ;;  %v1309_v59 = vld [vmem:[#allocation10 + $0x810] sm:$0xff]  ;;  %v1434_v0 = vld [vmem:[#allocation10 + $0xbf8] sm:$0xff] }
 0x17e   :  { %1824 = vmatmul.mubr.f32.gmra.mxu1 %v3801_v12  ;;  %1848 = vmatprep.subr.mxu0 %v1334_v30  ;;  %v1437_v60 = vld [vmem:[#allocation10 + $0xc10] sm:$0xff]  ;;  %v1562_v63 = vld [vmem:[#allocation10 + $0xff8] sm:$0xff] }
 0x17f   :  { %1943 = vmatprep.subr.mxu1 %v1462_v62  ;;  %1849 = vmatpush1.msra.mxu0 %v1333_v15  ;;  %v1433_v1 = vld [vmem:[#allocation10 + $0xbf0] sm:$0xff]  ;;  %v1430_v9 = vld [vmem:[#allocation10 + $0xbd8] sm:$0xff] }
 0x180   :  { %1894 = vmatprep.mubr.f32.mxu0 %v3719_v8  ;;  %1944 = vmatpush1.msra.mxu1 %v1461_v31  ;;  %v1318_v8 = vld [vmem:[#allocation10 + $0x858] sm:$0xff]  ;;  %v1561_v6 = vld [vmem:[#allocation10 + $0xff0] sm:$0xff] }
 0x181   :  { %1989 = vmatprep.mubr.f32.mxu1 %v3733_v17  ;;  %1850 = vmatprep.subr.mxu0 %v1330_v33  ;;  %v1445_v17 = vld [vmem:[#allocation10 + $0xc50] sm:$0xff]  ;;  %v1558_v16 = vld [vmem:[#allocation10 + $0xfd8] sm:$0xff] }
 0x182   :  { %1945 = vmatprep.subr.mxu1 %v1458_v34  ;;  %1851 = vmatpush1.msra.mxu0 %v1329_v35  ;;  %v1429_v19 = vld [vmem:[#allocation10 + $0xbd0] sm:$0xff]  ;;  %v1426_v13 = vld [vmem:[#allocation10 + $0xbb8] sm:$0xff] }
 0x183   :  { %1946 = vmatpush1.msra.mxu1 %v1457_v2  ;;  %1852 = vmatprep.subr.mxu0 %v1326_v4  ;;  %v1557_v20 = vld [vmem:[#allocation10 + $0xfd0] sm:$0xff]  ;;  %v1554_v22 = vld [vmem:[#allocation10 + $0xfb8] sm:$0xff] }
 0x184   :  { %1947 = vmatprep.subr.mxu1 %v1454_v5  ;;  %1853 = vmatpush1.msra.mxu0 %v1325_v42  ;;  %v1425_v25 = vld [vmem:[#allocation10 + $0xbb0] sm:$0xff]  ;;  %v1422_v41 = vld [vmem:[#allocation10 + $0xb98] sm:$0xff] }
 0x185   :  { %1948 = vmatpush1.msra.mxu1 %v1453_v43  ;;  %1854 = vmatprep.subr.mxu0 %v1322_v47  ;;  %v1553_v26 = vld [vmem:[#allocation10 + $0xfb0] sm:$0xff]  ;;  %v1550_v27 = vld [vmem:[#allocation10 + $0xf98] sm:$0xff] }
 0x186   :  { %1949 = vmatprep.subr.mxu1 %v1450_v48  ;;  %1855 = vmatpush1.msra.mxu0 %v1321_v49  ;;  %v1421_v61 = vld [vmem:[#allocation10 + $0xb90] sm:$0xff]  ;;  %v1418_v30 = vld [vmem:[#allocation10 + $0xb78] sm:$0xff] }
 0x187   :  { %1950 = vmatpush1.msra.mxu1 %v1449_v50  ;;  %1856 = vmatprep.subr.mxu0 %v1318_v8  ;;  %v1549_v29 = vld [vmem:[#allocation10 + $0xf90] sm:$0xff]  ;;  %v1546_v62 = vld [vmem:[#allocation10 + $0xf78] sm:$0xff] }
 0x188   :  { %1951 = vmatprep.subr.mxu1 %v1446_v51  ;;  %1857 = vmatpush1.msra.mxu0 %v1317_v52  ;;  %v1417_v15 = vld [vmem:[#allocation10 + $0xb70] sm:$0xff]  ;;  %v1414_v33 = vld [vmem:[#allocation10 + $0xb58] sm:$0xff] }
 0x189   :  { %1952 = vmatpush1.msra.mxu1 %v1445_v17  ;;  %1858 = vmatprep.subr.mxu0 %v1314_v53  ;;  %v1545_v31 = vld [vmem:[#allocation10 + $0xf70] sm:$0xff]  ;;  %v1542_v34 = vld [vmem:[#allocation10 + $0xf58] sm:$0xff] }
 0x18a   :  { %1953 = vmatprep.subr.mxu1 %v1442_v18  ;;  %1859 = vmatpush1.msra.mxu0 %v1313_v10  ;;  %v1413_v35 = vld [vmem:[#allocation10 + $0xb50] sm:$0xff]  ;;  %v1410_v4 = vld [vmem:[#allocation10 + $0xb38] sm:$0xff] }
 0x18b   :  { %1954 = vmatpush1.msra.mxu1 %v1441_v57  ;;  %1860 = vmatprep.subr.mxu0 %v1310_v45  ;;  %v1541_v2 = vld [vmem:[#allocation10 + $0xf50] sm:$0xff]  ;;  %v1538_v5 = vld [vmem:[#allocation10 + $0xf38] sm:$0xff] }
 0x18c   :  { %1955 = vmatprep.subr.mxu1 %v1438_v46  ;;  %1861 = vmatpush1.msra.mxu0 %v1309_v59  ;;  %v1409_v42 = vld [vmem:[#allocation10 + $0xb30] sm:$0xff]  ;;  %v1406_v47 = vld [vmem:[#allocation10 + $0xb18] sm:$0xff] }
 0x18d   :  { %1956 = vmatpush1.msra.mxu1 %v1437_v60  ;;  %1862 = vmatprep.subr.mxu0 %v1434_v0  ;;  %v1537_v43 = vld [vmem:[#allocation10 + $0xf30] sm:$0xff]  ;;  %v1534_v48 = vld [vmem:[#allocation10 + $0xf18] sm:$0xff] }
 0x18e   :  { %1957 = vmatprep.subr.mxu1 %v1562_v63  ;;  %1863 = vmatpush2.msra.mxu0 %v1433_v1  ;;  %v1405_v49 = vld [vmem:[#allocation10 + $0xb10] sm:$0xff]  ;;  %v1402_v8 = vld [vmem:[#allocation10 + $0xaf8] sm:$0xff] }
 0x18f   :  { %1958 = vmatpush2.msra.mxu1 %v1561_v6  ;;  %1864 = vmatprep.subr.mxu0 %v1430_v9  ;;  %v1533_v50 = vld [vmem:[#allocation10 + $0xf10] sm:$0xff]  ;;  %v1530_v51 = vld [vmem:[#allocation10 + $0xef8] sm:$0xff] }
 0x190   :  { %1959 = vmatprep.subr.mxu1 %v1558_v16  ;;  %1865 = vmatpush2.msra.mxu0 %v1429_v19  ;;  %v1401_v52 = vld [vmem:[#allocation10 + $0xaf0] sm:$0xff]  ;;  %v1398_v53 = vld [vmem:[#allocation10 + $0xad8] sm:$0xff] }
 0x191   :  { %1960 = vmatpush2.msra.mxu1 %v1557_v20  ;;  %1866 = vmatprep.subr.mxu0 %v1426_v13  ;;  %v1529_v17 = vld [vmem:[#allocation10 + $0xef0] sm:$0xff]  ;;  %v1526_v18 = vld [vmem:[#allocation10 + $0xed8] sm:$0xff] }
 0x192   :  { %1961 = vmatprep.subr.mxu1 %v1554_v22  ;;  %1867 = vmatpush2.msra.mxu0 %v1425_v25  ;;  %v1397_v10 = vld [vmem:[#allocation10 + $0xad0] sm:$0xff]  ;;  %v1394_v45 = vld [vmem:[#allocation10 + $0xab8] sm:$0xff] }
 0x193   :  { %1962 = vmatpush2.msra.mxu1 %v1553_v26  ;;  %1868 = vmatprep.subr.mxu0 %v1422_v41  ;;  %v1525_v57 = vld [vmem:[#allocation10 + $0xed0] sm:$0xff]  ;;  %v1522_v46 = vld [vmem:[#allocation10 + $0xeb8] sm:$0xff] }
 0x194   :  { %1963 = vmatprep.subr.mxu1 %v1550_v27  ;;  %1869 = vmatpush2.msra.mxu0 %v1421_v61  ;;  %v1393_v59 = vld [vmem:[#allocation10 + $0xab0] sm:$0xff]  ;;  %v1390_v0 = vld [vmem:[#allocation10 + $0xa98] sm:$0xff] }
 0x195   :  { %1964 = vmatpush2.msra.mxu1 %v1549_v29  ;;  %1870 = vmatprep.subr.mxu0 %v1418_v30  ;;  %v1521_v60 = vld [vmem:[#allocation10 + $0xeb0] sm:$0xff]  ;;  %v1518_v63 = vld [vmem:[#allocation10 + $0xe98] sm:$0xff] }
 0x196   :  { %1965 = vmatprep.subr.mxu1 %v1546_v62  ;;  %1871 = vmatpush2.msra.mxu0 %v1417_v15  ;;  %v1389_v1 = vld [vmem:[#allocation10 + $0xa90] sm:$0xff]  ;;  %v1386_v9 = vld [vmem:[#allocation10 + $0xa78] sm:$0xff] }
 0x197   :  { %1966 = vmatpush2.msra.mxu1 %v1545_v31  ;;  %1872 = vmatprep.subr.mxu0 %v1414_v33  ;;  %v1517_v6 = vld [vmem:[#allocation10 + $0xe90] sm:$0xff]  ;;  %v1514_v16 = vld [vmem:[#allocation10 + $0xe78] sm:$0xff]  ;;  %v1103_v33 = vld [vmem:[#allocation10 + $0x1e8] sm:$0xff] }
 0x198   :  { %1967 = vmatprep.subr.mxu1 %v1542_v34  ;;  %1873 = vmatpush2.msra.mxu0 %v1413_v35  ;;  %v1385_v19 = vld [vmem:[#allocation10 + $0xa70] sm:$0xff]  ;;  %v1382_v13 = vld [vmem:[#allocation10 + $0xa58] sm:$0xff]  ;;  %v1231_v34 = vld [vmem:[#allocation10 + $0x5e8] sm:$0xff] }
 0x199   :  { %1968 = vmatpush2.msra.mxu1 %v1541_v2  ;;  %1874 = vmatprep.subr.mxu0 %v1410_v4  ;;  %v1513_v20 = vld [vmem:[#allocation10 + $0xe70] sm:$0xff]  ;;  %v1510_v22 = vld [vmem:[#allocation10 + $0xe58] sm:$0xff]  ;;  %v1102_v35 = vld [vmem:[#allocation10 + $0x1e0] sm:$0xff] }
 0x19a   :  { %1969 = vmatprep.subr.mxu1 %v1538_v5  ;;  %1875 = vmatpush2.msra.mxu0 %v1409_v42  ;;  %v1381_v25 = vld [vmem:[#allocation10 + $0xa50] sm:$0xff]  ;;  %v1378_v41 = vld [vmem:[#allocation10 + $0xa38] sm:$0xff]  ;;  %v1230_v2 = vld [vmem:[#allocation10 + $0x5e0] sm:$0xff] }
 0x19b   :  { %1970 = vmatpush2.msra.mxu1 %v1537_v43  ;;  %1876 = vmatprep.subr.mxu0 %v1406_v47  ;;  %v1509_v26 = vld [vmem:[#allocation10 + $0xe50] sm:$0xff]  ;;  %v1506_v27 = vld [vmem:[#allocation10 + $0xe38] sm:$0xff]  ;;  %v1099_v4 = vld [vmem:[#allocation10 + $0x1c8] sm:$0xff] }
 0x19c   :  { %1971 = vmatprep.subr.mxu1 %v1534_v48  ;;  %1877 = vmatpush2.msra.mxu0 %v1405_v49  ;;  %v1377_v61 = vld [vmem:[#allocation10 + $0xa30] sm:$0xff]  ;;  %v1374_v30 = vld [vmem:[#allocation10 + $0xa18] sm:$0xff]  ;;  %v1227_v5 = vld [vmem:[#allocation10 + $0x5c8] sm:$0xff] }
 0x19d   :  { %1972 = vmatpush2.msra.mxu1 %v1533_v50  ;;  %1878 = vmatprep.subr.mxu0 %v1402_v8  ;;  %v1505_v29 = vld [vmem:[#allocation10 + $0xe30] sm:$0xff]  ;;  %v1502_v62 = vld [vmem:[#allocation10 + $0xe18] sm:$0xff]  ;;  %v1098_v42 = vld [vmem:[#allocation10 + $0x1c0] sm:$0xff] }
 0x19e   :  { %1973 = vmatprep.subr.mxu1 %v1530_v51  ;;  %1879 = vmatpush2.msra.mxu0 %v1401_v52  ;;  %v1373_v15 = vld [vmem:[#allocation10 + $0xa10] sm:$0xff]  ;;  %v1226_v43 = vld [vmem:[#allocation10 + $0x5c0] sm:$0xff]  ;;  %v1095_v47 = vld [vmem:[#allocation10 + $0x1a8] sm:$0xff] }
 0x19f   :  { %1974 = vmatpush2.msra.mxu1 %v1529_v17  ;;  %1880 = vmatprep.subr.mxu0 %v1398_v53  ;;  %v1501_v31 = vld [vmem:[#allocation10 + $0xe10] sm:$0xff]  ;;  %v1091_v48 = vld [vmem:[#allocation10 + $0x188] sm:$0xff]  ;;  %v1090_v49 = vld [vmem:[#allocation10 + $0x180] sm:$0xff] }
 0x1a0   :  { %1975 = vmatprep.subr.mxu1 %v1526_v18  ;;  %1881 = vmatpush2.msra.mxu0 %v1397_v10  ;;  %v1218_v50 = vld [vmem:[#allocation10 + $0x580] sm:$0xff]  ;;  %v1087_v8 = vld [vmem:[#allocation10 + $0x168] sm:$0xff] }
 0x1a1   :  { %1976 = vmatpush2.msra.mxu1 %v1525_v57  ;;  %1882 = vmatprep.subr.mxu0 %v1394_v45  ;;  %v1083_v51 = vld [vmem:[#allocation10 + $0x148] sm:$0xff]  ;;  %v1082_v52 = vld [vmem:[#allocation10 + $0x140] sm:$0xff] }
 0x1a2   :  { %1977 = vmatprep.subr.mxu1 %v1522_v46  ;;  %1883 = vmatpush2.msra.mxu0 %v1393_v59  ;;  %v1210_v17 = vld [vmem:[#allocation10 + $0x540] sm:$0xff]  ;;  %v1079_v53 = vld [vmem:[#allocation10 + $0x128] sm:$0xff] }
 0x1a3   :  { %1978 = vmatpush2.msra.mxu1 %v1521_v60  ;;  %1884 = vmatprep.subr.mxu0 %v1390_v0  ;;  %v1075_v18 = vld [vmem:[#allocation10 + $0x108] sm:$0xff]  ;;  %v1074_v10 = vld [vmem:[#allocation10 + $0x100] sm:$0xff]  ;;  %v3842_v0 = vld [vmem:[#allocation3 + $0x18] sm:$0xff] }
 0x1a4   :  { %1979 = vmatprep.subr.mxu1 %v1518_v63  ;;  %1885 = vmatpush2.msra.mxu0 %v1389_v1  ;;  %v1202_v57 = vld [vmem:[#allocation10 + $0x500] sm:$0xff]  ;;  %v1071_v45 = vld [vmem:[#allocation10 + $0xe8] sm:$0xff] }
 0x1a5   :  { %1980 = vmatpush2.msra.mxu1 %v1517_v6  ;;  %1886 = vmatprep.subr.mxu0 %v1386_v9  ;;  %v1070_v46 = vld [vmem:[#allocation10 + $0xe0] sm:$0xff]  ;;  %v1195_v59 = vld [vmem:[#allocation10 + $0x4c8] sm:$0xff] }
 0x1a6   :  { %1981 = vmatprep.subr.mxu1 %v1514_v16  ;;  %1887 = vmatpush2.msra.mxu0 %v1385_v19  ;;  %v1066_v60 = vld [vmem:[#allocation10 + $0xc0] sm:$0xff]  ;;  %v1063_v1 = vld [vmem:[#allocation10 + $0xa8] sm:$0xff] }
 0x1a7   :  { %1982 = vmatpush2.msra.mxu1 %v1513_v20  ;;  %1888 = vmatprep.subr.mxu0 %v1382_v13  ;;  %v1194_v63 = vld [vmem:[#allocation10 + $0x4c0] sm:$0xff]  ;;  %v1059_v9 = vld [vmem:[#allocation10 + $0x88] sm:$0xff] }
 0x1a8   :  { %1983 = vmatprep.subr.mxu1 %v1510_v22  ;;  %1889 = vmatpush2.msra.mxu0 %v1381_v25  ;;  %v1190_v6 = vld [vmem:[#allocation10 + $0x4a0] sm:$0xff]  ;;  %v1187_v16 = vld [vmem:[#allocation10 + $0x488] sm:$0xff] }
 0x1a9   :  { %1984 = vmatpush2.msra.mxu1 %v1509_v26  ;;  %1890 = vmatprep.subr.mxu0 %v1378_v41  ;;  %v1058_v19 = vld [vmem:[#allocation10 + $0x80] sm:$0xff]  ;;  %v1055_v13 = vld [vmem:[#allocation10 + $0x68] sm:$0xff] }
 0x1aa   :  { %1985 = vmatprep.subr.mxu1 %v1506_v27  ;;  %1891 = vmatpush2.msra.mxu0 %v1377_v61  ;;  %v1186_v20 = vld [vmem:[#allocation10 + $0x480] sm:$0xff]  ;;  %v1183_v22 = vld [vmem:[#allocation10 + $0x468] sm:$0xff] }
 0x1ab   :  { %1986 = vmatpush2.msra.mxu1 %v1505_v29  ;;  %1892 = vmatprep.subr.mxu0 %v1374_v30  ;;  %v1054_v25 = vld [vmem:[#allocation10 + $0x60] sm:$0xff]  ;;  %v1051_v41 = vld [vmem:[#allocation10 + $0x48] sm:$0xff] }
 0x1ac   :  { %1987 = vmatprep.subr.mxu1 %v1502_v62  ;;  %1893 = vmatpush2.msra.mxu0 %v1373_v15  ;;  %v1182_v26 = vld [vmem:[#allocation10 + $0x460] sm:$0xff]  ;;  %v1179_v27 = vld [vmem:[#allocation10 + $0x448] sm:$0xff] }
 0x1ad   :  { %1988 = vmatpush2.msra.mxu1 %v1501_v31  ;;  %1895 = vmatmul.mubr.f32.vlgmr.msra.gmra.mxu0 %v3741_v28  ;;  %v1223_v28 = vld [vmem:[#allocation10 + $0x5a8] sm:$0xff]  ;;  %v1050_v61 = vld [vmem:[#allocation10 + $0x40] sm:$0xff] }
 0x1ae   :  { %1990 = vmatmul.mubr.f32.vlgmr.msra.gmra.mxu1 %v3746_v14  ;;  %2020 = vmatprep.subr.mxu0 %v1103_v33  ;;  %v1094_v14 = vld [vmem:[#allocation10 + $0x1a0] sm:$0xff]  ;;  %v1047_v30 = vld [vmem:[#allocation10 + $0x28] sm:$0xff] }
 0x1af   :  { %2115 = vmatprep.subr.mxu1 %v1231_v34  ;;  %1900 = vmatprep.mubr.f32.mxu0 %v3752_v3  ;;  %v1222_v3 = vld [vmem:[#allocation10 + $0x5a0] sm:$0xff]  ;;  %v1175_v62 = vld [vmem:[#allocation10 + $0x428] sm:$0xff] }
 0x1b0   :  { %1995 = vmatprep.mubr.f32.mxu1 %v3755_v36  ;;  %2021 = vmatpush1.msra.mxu0 %v1102_v35  ;;  %v1219_v36 = vld [vmem:[#allocation10 + $0x588] sm:$0xff]  ;;  %v1178_v29 = vld [vmem:[#allocation10 + $0x440] sm:$0xff] }
 0x1b1   :  { %2116 = vmatpush1.msra.mxu1 %v1230_v2  ;;  %2022 = vmatprep.subr.mxu0 %v1099_v4  ;;  %v1046_v15 = vld [vmem:[#allocation10 + $0x20] sm:$0xff]  ;;  %v1043_v33 = vld [vmem:[#allocation10 + $0x8] sm:$0xff] }
 0x1b2   :  { %2117 = vmatprep.subr.mxu1 %v1227_v5  ;;  %2023 = vmatpush1.msra.mxu0 %v1098_v42  ;;  %v1174_v31 = vld [vmem:[#allocation10 + $0x420] sm:$0xff]  ;;  %v1171_v34 = vld [vmem:[#allocation10 + $0x408] sm:$0xff] }
 0x1b3   :  { %2118 = vmatpush1.msra.mxu1 %v1226_v43  ;;  %1901 = vmatmul.mubr.f32.gmra.mxu0 %v3758_v39  ;;  %v1215_v39 = vld [vmem:[#allocation10 + $0x568] sm:$0xff]  ;;  %v1042_v35 = vld [vmem:[#allocation10] sm:$0xff] }
 0x1b4   :  { %1996 = vmatmul.mubr.f32.gmra.mxu1 %v3762_v40  ;;  %2024 = vmatprep.subr.mxu0 %v1095_v47  ;;  %v1086_v40 = vld [vmem:[#allocation10 + $0x160] sm:$0xff]  ;;  %v1167_v4 = vld [vmem:[#allocation10 + $0x3e8] sm:$0xff] }
 0x1b5   :  { %2119 = vmatprep.subr.mxu1 %v1223_v28  ;;  %1906 = vmatprep.mubr.f32.mxu0 %v3770_v23  ;;  %v1214_v23 = vld [vmem:[#allocation10 + $0x560] sm:$0xff]  ;;  %v1295_v5 = vld [vmem:[#allocation10 + $0x7e8] sm:$0xff] }
 0x1b6   :  { %2001 = vmatprep.mubr.f32.mxu1 %v3776_v56  ;;  %2025 = vmatpush1.msra.mxu0 %v1094_v14  ;;  %v1211_v56 = vld [vmem:[#allocation10 + $0x548] sm:$0xff]  ;;  %v1170_v2 = vld [vmem:[#allocation10 + $0x400] sm:$0xff] }
 0x1b7   :  { %2120 = vmatpush1.msra.mxu1 %v1222_v3  ;;  %2026 = vmatprep.subr.mxu0 %v1091_v48  ;;  %v1166_v42 = vld [vmem:[#allocation10 + $0x3e0] sm:$0xff]  ;;  %v1163_v47 = vld [vmem:[#allocation10 + $0x3c8] sm:$0xff] }
 0x1b8   :  { %2121 = vmatprep.subr.mxu1 %v1219_v36  ;;  %2027 = vmatpush1.msra.mxu0 %v1090_v49  ;;  %v1294_v43 = vld [vmem:[#allocation10 + $0x7e0] sm:$0xff]  ;;  %v1291_v28 = vld [vmem:[#allocation10 + $0x7c8] sm:$0xff] }
 0x1b9   :  { %2122 = vmatpush1.msra.mxu1 %v1218_v50  ;;  %1907 = vmatmul.mubr.f32.gmra.mxu0 %v3784_v37  ;;  %v1207_v37 = vld [vmem:[#allocation10 + $0x528] sm:$0xff]  ;;  %v1162_v14 = vld [vmem:[#allocation10 + $0x3c0] sm:$0xff] }
 0x1ba   :  { %2002 = vmatmul.mubr.f32.gmra.mxu1 %v3788_v54  ;;  %2028 = vmatprep.subr.mxu0 %v1087_v8  ;;  %v1078_v54 = vld [vmem:[#allocation10 + $0x120] sm:$0xff]  ;;  %v1159_v48 = vld [vmem:[#allocation10 + $0x3a8] sm:$0xff] }
 0x1bb   :  { %2123 = vmatprep.subr.mxu1 %v1215_v39  ;;  %1912 = vmatprep.mubr.f32.mxu0 %v3792_v44  ;;  %v1206_v44 = vld [vmem:[#allocation10 + $0x520] sm:$0xff]  ;;  %v1287_v36 = vld [vmem:[#allocation10 + $0x7a8] sm:$0xff] }
 0x1bc   :  { %2007 = vmatprep.mubr.f32.mxu1 %v3797_v7  ;;  %2029 = vmatpush1.msra.mxu0 %v1086_v40  ;;  %v1203_v7 = vld [vmem:[#allocation10 + $0x508] sm:$0xff]  ;;  %v1290_v3 = vld [vmem:[#allocation10 + $0x7c0] sm:$0xff] }
 0x1bd   :  { %2124 = vmatpush1.msra.mxu1 %v1214_v23  ;;  %2030 = vmatprep.subr.mxu0 %v1083_v51  ;;  %v1158_v49 = vld [vmem:[#allocation10 + $0x3a0] sm:$0xff]  ;;  %v1155_v8 = vld [vmem:[#allocation10 + $0x388] sm:$0xff] }
 0x1be   :  { %2125 = vmatprep.subr.mxu1 %v1211_v56  ;;  %2031 = vmatpush1.msra.mxu0 %v1082_v52  ;;  %v1286_v50 = vld [vmem:[#allocation10 + $0x7a0] sm:$0xff]  ;;  %v1283_v39 = vld [vmem:[#allocation10 + $0x788] sm:$0xff] }
 0x1bf   :  { %2126 = vmatpush1.msra.mxu1 %v1210_v17  ;;  %1913 = vmatmul.mubr.f32.gmra.mxu0 %v3807_v21  ;;  %v1199_v21 = vld [vmem:[#allocation10 + $0x4e8] sm:$0xff]  ;;  %v1154_v40 = vld [vmem:[#allocation10 + $0x380] sm:$0xff] }
 0x1c0   :  { %2008 = vmatmul.mubr.f32.gmra.mxu1 %v3812_v24  ;;  %2032 = vmatprep.subr.mxu0 %v1079_v53  ;;  %v1198_v24 = vld [vmem:[#allocation10 + $0x4e0] sm:$0xff]  ;;  %v1151_v51 = vld [vmem:[#allocation10 + $0x368] sm:$0xff] }
 0x1c1   :  { %2127 = vmatprep.subr.mxu1 %v1207_v37  ;;  %1918 = vmatprep.mubr.f32.mxu0 %v3772_v55  ;;  %v1067_v55 = vld [vmem:[#allocation10 + $0xc8] sm:$0xff]  ;;  %v1282_v23 = vld [vmem:[#allocation10 + $0x780] sm:$0xff] }
 0x1c2   :  { %2013 = vmatprep.mubr.f32.mxu1 %v3779_v58  ;;  %2033 = vmatpush1.msra.mxu0 %v1078_v54  ;;  %v3839_v58 = vld [vmem:[#allocation3 + $0x8] sm:$0xff] }
 0x1c3   :  { %2128 = vmatpush1.msra.mxu1 %v1206_v44  ;;  %2034 = vmatprep.subr.mxu0 %v1075_v18  ;;  %v1279_v56 = vld [vmem:[#allocation10 + $0x768] sm:$0xff]  ;;  %v1150_v52 = vld [vmem:[#allocation10 + $0x360] sm:$0xff] }
 0x1c4   :  { %2129 = vmatprep.subr.mxu1 %v1203_v7  ;;  %2035 = vmatpush1.msra.mxu0 %v1074_v10  ;;  %v1278_v17 = vld [vmem:[#allocation10 + $0x760] sm:$0xff]  ;;  %v1147_v53 = vld [vmem:[#allocation10 + $0x348] sm:$0xff] }
 0x1c5   :  { %2130 = vmatpush1.msra.mxu1 %v1202_v57  ;;  %1919 = vmatmul.mubr.f32.gmra.mxu0 %v3799_v11  ;;  %v1191_v11 = vld [vmem:[#allocation10 + $0x4a8] sm:$0xff]  ;;  %v1146_v54 = vld [vmem:[#allocation10 + $0x340] sm:$0xff] }
 0x1c6   :  { %2014 = vmatmul.mubr.f32.gmra.mxu1 %v3801_v12  ;;  %2036 = vmatprep.subr.mxu0 %v1071_v45  ;;  %v1062_v12 = vld [vmem:[#allocation10 + $0xa0] sm:$0xff]  ;;  %v1275_v37 = vld [vmem:[#allocation10 + $0x748] sm:$0xff] }
 0x1c7   :  { %2131 = vmatprep.subr.mxu1 %v1199_v21  ;;  %2037 = vmatpush1.msra.mxu0 %v1070_v46  ;;  %v1274_v44 = vld [vmem:[#allocation10 + $0x740] sm:$0xff]  ;;  %v1143_v18 = vld [vmem:[#allocation10 + $0x328] sm:$0xff] }
 0x1c8   :  { %2084 = vmatprep.mubr.f32.mxu0 %v3839_v58  ;;  %2132 = vmatpush1.msra.mxu1 %v1198_v24  ;;  %v1271_v7 = vld [vmem:[#allocation10 + $0x728] sm:$0xff]  ;;  %v1142_v10 = vld [vmem:[#allocation10 + $0x320] sm:$0xff] }
 0x1c9   :  { %2179 = vmatprep.mubr.f32.mxu1 %v3842_v0  ;;  %2038 = vmatprep.subr.mxu0 %v1067_v55  ;;  %v1270_v57 = vld [vmem:[#allocation10 + $0x720] sm:$0xff]  ;;  %v1139_v45 = vld [vmem:[#allocation10 + $0x308] sm:$0xff] }
 0x1ca   :  { %2133 = vmatprep.subr.mxu1 %v1195_v59  ;;  %2039 = vmatpush1.msra.mxu0 %v1066_v60  ;;  %v1267_v21 = vld [vmem:[#allocation10 + $0x708] sm:$0xff]  ;;  %v1138_v46 = vld [vmem:[#allocation10 + $0x300] sm:$0xff] }
 0x1cb   :  { %2134 = vmatpush1.msra.mxu1 %v1194_v63  ;;  %2040 = vmatprep.subr.mxu0 %v1063_v1  ;;  %v1266_v24 = vld [vmem:[#allocation10 + $0x700] sm:$0xff]  ;;  %v1135_v55 = vld [vmem:[#allocation10 + $0x2e8] sm:$0xff] }
 0x1cc   :  { %2135 = vmatprep.subr.mxu1 %v1191_v11  ;;  %2041 = vmatpush1.msra.mxu0 %v1062_v12  ;;  %v1263_v59 = vld [vmem:[#allocation10 + $0x6e8] sm:$0xff]  ;;  %v1134_v60 = vld [vmem:[#allocation10 + $0x2e0] sm:$0xff] }
 0x1cd   :  { %2136 = vmatpush1.msra.mxu1 %v1190_v6  ;;  %2042 = vmatprep.subr.mxu0 %v1059_v9  ;;  %v1262_v63 = vld [vmem:[#allocation10 + $0x6e0] sm:$0xff]  ;;  %v1131_v1 = vld [vmem:[#allocation10 + $0x2c8] sm:$0xff] }
 0x1ce   :  { %2137 = vmatprep.subr.mxu1 %v1187_v16  ;;  %2043 = vmatpush1.msra.mxu0 %v1058_v19  ;;  %v1259_v11 = vld [vmem:[#allocation10 + $0x6c8] sm:$0xff]  ;;  %v1130_v12 = vld [vmem:[#allocation10 + $0x2c0] sm:$0xff] }
 0x1cf   :  { %2138 = vmatpush1.msra.mxu1 %v1186_v20  ;;  %2044 = vmatprep.subr.mxu0 %v1055_v13  ;;  %v1258_v6 = vld [vmem:[#allocation10 + $0x6c0] sm:$0xff]  ;;  %v1127_v9 = vld [vmem:[#allocation10 + $0x2a8] sm:$0xff] }
 0x1d0   :  { %2139 = vmatprep.subr.mxu1 %v1183_v22  ;;  %2045 = vmatpush1.msra.mxu0 %v1054_v25  ;;  %v1255_v16 = vld [vmem:[#allocation10 + $0x6a8] sm:$0xff]  ;;  %v1126_v19 = vld [vmem:[#allocation10 + $0x2a0] sm:$0xff] }
 0x1d1   :  { %2140 = vmatpush1.msra.mxu1 %v1182_v26  ;;  %2046 = vmatprep.subr.mxu0 %v1051_v41  ;;  %v1254_v20 = vld [vmem:[#allocation10 + $0x6a0] sm:$0xff]  ;;  %v1123_v13 = vld [vmem:[#allocation10 + $0x288] sm:$0xff] }
 0x1d2   :  { %2141 = vmatprep.subr.mxu1 %v1179_v27  ;;  %2047 = vmatpush1.msra.mxu0 %v1050_v61  ;;  %v1251_v22 = vld [vmem:[#allocation10 + $0x688] sm:$0xff]  ;;  %v1122_v25 = vld [vmem:[#allocation10 + $0x280] sm:$0xff] }
 0x1d3   :  { %2142 = vmatpush1.msra.mxu1 %v1178_v29  ;;  %2048 = vmatprep.subr.mxu0 %v1047_v30  ;;  %v1250_v26 = vld [vmem:[#allocation10 + $0x680] sm:$0xff]  ;;  %v1119_v41 = vld [vmem:[#allocation10 + $0x268] sm:$0xff] }
 0x1d4   :  { %2143 = vmatprep.subr.mxu1 %v1175_v62  ;;  %2049 = vmatpush1.msra.mxu0 %v1046_v15  ;;  %v1247_v27 = vld [vmem:[#allocation10 + $0x668] sm:$0xff]  ;;  %v1118_v61 = vld [vmem:[#allocation10 + $0x260] sm:$0xff] }
 0x1d5   :  { %2144 = vmatpush1.msra.mxu1 %v1174_v31  ;;  %2050 = vmatprep.subr.mxu0 %v1043_v33  ;;  %v1246_v29 = vld [vmem:[#allocation10 + $0x660] sm:$0xff]  ;;  %v1115_v30 = vld [vmem:[#allocation10 + $0x248] sm:$0xff] }
 0x1d6   :  { %2145 = vmatprep.subr.mxu1 %v1171_v34  ;;  %2051 = vmatpush1.msra.mxu0 %v1042_v35  ;;  %v1243_v62 = vld [vmem:[#allocation10 + $0x648] sm:$0xff]  ;;  %v1114_v15 = vld [vmem:[#allocation10 + $0x240] sm:$0xff] }
 0x1d7   :  { %2146 = vmatpush1.msra.mxu1 %v1170_v2  ;;  %2052 = vmatprep.subr.mxu0 %v1167_v4  ;;  %v1242_v31 = vld [vmem:[#allocation10 + $0x640] sm:$0xff]  ;;  %v1111_v33 = vld [vmem:[#allocation10 + $0x228] sm:$0xff] }
 0x1d8   :  { %2147 = vmatprep.subr.mxu1 %v1295_v5  ;;  %2053 = vmatpush2.msra.mxu0 %v1166_v42  ;;  %v1239_v34 = vld [vmem:[#allocation10 + $0x628] sm:$0xff]  ;;  %v1110_v35 = vld [vmem:[#allocation10 + $0x220] sm:$0xff] }
 0x1d9   :  { %2148 = vmatpush2.msra.mxu1 %v1294_v43  ;;  %2054 = vmatprep.subr.mxu0 %v1163_v47  ;;  %v1238_v2 = vld [vmem:[#allocation10 + $0x620] sm:$0xff]  ;;  %v1107_v4 = vld [vmem:[#allocation10 + $0x208] sm:$0xff]  ;;  %v1105_v47 = vld [vmem:[#allocation10 + $0x1f8] sm:$0xff] }
 0x1da   :  { %2149 = vmatprep.subr.mxu1 %v1291_v28  ;;  %2055 = vmatpush2.msra.mxu0 %v1162_v14  ;;  %v1235_v5 = vld [vmem:[#allocation10 + $0x608] sm:$0xff]  ;;  %v1106_v42 = vld [vmem:[#allocation10 + $0x200] sm:$0xff]  ;;  %v1233_v14 = vld [vmem:[#allocation10 + $0x5f8] sm:$0xff] }
 0x1db   :  { %2150 = vmatpush2.msra.mxu1 %v1290_v3  ;;  %2056 = vmatprep.subr.mxu0 %v1159_v48  ;;  %v1234_v43 = vld [vmem:[#allocation10 + $0x600] sm:$0xff]  ;;  %v3848_v3 = vld [vmem:[#allocation3 + $0x10] sm:$0xff] }
 0x1dc   :  { %2151 = vmatprep.subr.mxu1 %v1287_v36  ;;  %2057 = vmatpush2.msra.mxu0 %v1158_v49  ;;  %v3845_v28 = vld [vmem:[#allocation3] sm:$0xff]  ;;  %v1104_v48 = vld [vmem:[#allocation10 + $0x1f0] sm:$0xff] }
 0x1dd   :  { %2152 = vmatpush2.msra.mxu1 %v1286_v50  ;;  %2058 = vmatprep.subr.mxu0 %v1155_v8  ;;  %v1232_v36 = vld [vmem:[#allocation10 + $0x5f0] sm:$0xff]  ;;  %v1101_v49 = vld [vmem:[#allocation10 + $0x1d8] sm:$0xff]  ;;  %v3851_v50 = vld [vmem:[#allocation3 + $0x28] sm:$0xff] }
 0x1de   :  { %2153 = vmatprep.subr.mxu1 %v1283_v39  ;;  %2059 = vmatpush2.msra.mxu0 %v1154_v40  ;;  %v1229_v8 = vld [vmem:[#allocation10 + $0x5d8] sm:$0xff]  ;;  %v1100_v39 = vld [vmem:[#allocation10 + $0x1d0] sm:$0xff] }
 0x1df   :  { %2154 = vmatpush2.msra.mxu1 %v1282_v23  ;;  %2060 = vmatprep.subr.mxu0 %v1151_v51  ;;  %v3854_v40 = vld [vmem:[#allocation3 + $0x38] sm:$0xff] }
 0x1e0   :  { %2155 = vmatprep.subr.mxu1 %v1279_v56  ;;  %2061 = vmatpush2.msra.mxu0 %v1150_v52  ;;  %v1228_v23 = vld [vmem:[#allocation10 + $0x5d0] sm:$0xff]  ;;  %v1097_v51 = vld [vmem:[#allocation10 + $0x1b8] sm:$0xff] }
 0x1e1   :  { %2156 = vmatpush2.msra.mxu1 %v1278_v17  ;;  %2062 = vmatprep.subr.mxu0 %v1147_v53  ;;  %v1225_v56 = vld [vmem:[#allocation10 + $0x5b8] sm:$0xff]  ;;  %v1096_v17 = vld [vmem:[#allocation10 + $0x1b0] sm:$0xff] }
 0x1e2   :  { %2157 = vmatprep.subr.mxu1 %v1275_v37  ;;  %2063 = vmatpush2.msra.mxu0 %v1146_v54  ;;  %v3857_v52 = vld [vmem:[#allocation3 + $0x20] sm:$0xff]  ;;  %v3860_v53 = vld [vmem:[#allocation3 + $0x30] sm:$0xff] }
 0x1e3   :  { %2158 = vmatpush2.msra.mxu1 %v1274_v44  ;;  %2064 = vmatprep.subr.mxu0 %v1143_v18  ;;  %v1224_v37 = vld [vmem:[#allocation10 + $0x5b0] sm:$0xff]  ;;  %v1093_v54 = vld [vmem:[#allocation10 + $0x198] sm:$0xff]  ;;  %v3863_v44 = vld [vmem:[#allocation3 + $0x48] sm:$0xff] }
 0x1e4   :  { %2159 = vmatprep.subr.mxu1 %v1271_v7  ;;  %2065 = vmatpush2.msra.mxu0 %v1142_v10  ;;  %v1221_v18 = vld [vmem:[#allocation10 + $0x598] sm:$0xff]  ;;  %v1092_v7 = vld [vmem:[#allocation10 + $0x190] sm:$0xff] }
 0x1e5   :  { %2160 = vmatpush2.msra.mxu1 %v1270_v57  ;;  %2066 = vmatprep.subr.mxu0 %v1139_v45  ;;  %v3866_v10 = vld [vmem:[#allocation3 + $0x58] sm:$0xff] }
 0x1e6   :  { %2161 = vmatprep.subr.mxu1 %v1267_v21  ;;  %2067 = vmatpush2.msra.mxu0 %v1138_v46  ;;  %v1220_v57 = vld [vmem:[#allocation10 + $0x590] sm:$0xff]  ;;  %v1089_v45 = vld [vmem:[#allocation10 + $0x178] sm:$0xff] }
 0x1e7   :  { %2162 = vmatpush2.msra.mxu1 %v1266_v24  ;;  %2068 = vmatprep.subr.mxu0 %v1135_v55  ;;  %v1217_v21 = vld [vmem:[#allocation10 + $0x578] sm:$0xff]  ;;  %v1088_v24 = vld [vmem:[#allocation10 + $0x170] sm:$0xff] }
 0x1e8   :  { %2163 = vmatprep.subr.mxu1 %v1263_v59  ;;  %2069 = vmatpush2.msra.mxu0 %v1134_v60  ;;  %v3869_v46 = vld [vmem:[#allocation3 + $0x40] sm:$0xff]  ;;  %v3872_v55 = vld [vmem:[#allocation3 + $0x50] sm:$0xff] }
 0x1e9   :  { %2164 = vmatpush2.msra.mxu1 %v1262_v63  ;;  %2070 = vmatprep.subr.mxu0 %v1131_v1  ;;  %v1216_v59 = vld [vmem:[#allocation10 + $0x570] sm:$0xff]  ;;  %v1085_v60 = vld [vmem:[#allocation10 + $0x158] sm:$0xff]  ;;  %v3875_v63 = vld [vmem:[#allocation3 + $0x68] sm:$0xff] }
 0x1ea   :  { %2165 = vmatprep.subr.mxu1 %v1259_v11  ;;  %2071 = vmatpush2.msra.mxu0 %v1130_v12  ;;  %v1213_v1 = vld [vmem:[#allocation10 + $0x558] sm:$0xff]  ;;  %v1084_v11 = vld [vmem:[#allocation10 + $0x150] sm:$0xff] }
 0x1eb   :  { %2166 = vmatpush2.msra.mxu1 %v1258_v6  ;;  %2072 = vmatprep.subr.mxu0 %v1127_v9  ;;  %v3878_v12 = vld [vmem:[#allocation3 + $0x78] sm:$0xff] }
 0x1ec   :  { %2167 = vmatprep.subr.mxu1 %v1255_v16  ;;  %2073 = vmatpush2.msra.mxu0 %v1126_v19  ;;  %v1212_v6 = vld [vmem:[#allocation10 + $0x550] sm:$0xff]  ;;  %v1081_v9 = vld [vmem:[#allocation10 + $0x138] sm:$0xff] }
 0x1ed   :  { %2168 = vmatpush2.msra.mxu1 %v1254_v20  ;;  %2074 = vmatprep.subr.mxu0 %v1123_v13  ;;  %v1209_v16 = vld [vmem:[#allocation10 + $0x538] sm:$0xff]  ;;  %v1080_v20 = vld [vmem:[#allocation10 + $0x130] sm:$0xff] }
 0x1ee   :  { %2169 = vmatprep.subr.mxu1 %v1251_v22  ;;  %2075 = vmatpush2.msra.mxu0 %v1122_v25  ;;  %v3881_v19 = vld [vmem:[#allocation3 + $0x60] sm:$0xff]  ;;  %v3884_v13 = vld [vmem:[#allocation3 + $0x70] sm:$0xff]  ;;  %v3887_v22 = vld [vmem:[#allocation3 + $0x88] sm:$0x3] }
 0x1ef   :  { %2170 = vmatpush2.msra.mxu1 %v1250_v26  ;;  %2076 = vmatprep.subr.mxu0 %v1119_v41  ;;  %v1208_v25 = vld [vmem:[#allocation10 + $0x530] sm:$0xff]  ;;  %v1077_v26 = vld [vmem:[#allocation10 + $0x118] sm:$0xff] }
 0x1f0   :  { %2171 = vmatprep.subr.mxu1 %v1247_v27  ;;  %2077 = vmatpush2.msra.mxu0 %v1118_v61  ;;  %v3890_v41 = vld [vmem:[#allocation3 + $0x98] sm:$0x3]  ;;  %v1205_v27 = vld [vmem:[#allocation10 + $0x518] sm:$0xff] }
 0x1f1   :  { %2172 = vmatpush2.msra.mxu1 %v1246_v29  ;;  %2078 = vmatprep.subr.mxu0 %v1115_v30  ;;  %v1076_v61 = vld [vmem:[#allocation10 + $0x110] sm:$0xff]  ;;  %v1073_v30 = vld [vmem:[#allocation10 + $0xf8] sm:$0xff] }
 0x1f2   :  { %2173 = vmatprep.subr.mxu1 %v1243_v62  ;;  %2079 = vmatpush2.msra.mxu0 %v1114_v15  ;;  %v1204_v29 = vld [vmem:[#allocation10 + $0x510] sm:$0xff]  ;;  %v3893_v62 = vld [vmem:[#allocation3 + $0x80] sm:$0x3] }
 0x1f3   :  { %2174 = vmatpush2.msra.mxu1 %v1242_v31  ;;  %2080 = vmatprep.subr.mxu0 %v1111_v33  ;;  %v1201_v15 = vld [vmem:[#allocation10 + $0x4f8] sm:$0xff]  ;;  %v1072_v31 = vld [vmem:[#allocation10 + $0xf0] sm:$0xff]  ;;  %v3896_v33 = vld [vmem:[#allocation3 + $0x90] sm:$0x3] }
 0x1f4   :  { %2175 = vmatprep.subr.mxu1 %v1239_v34  ;;  %2081 = vmatpush2.msra.mxu0 %v1110_v35  ;;  %v1200_v34 = vld [vmem:[#allocation10 + $0x4f0] sm:$0xff]  ;;  %v1069_v35 = vld [vmem:[#allocation10 + $0xd8] sm:$0xff] }
 0x1f5   :  { %2176 = vmatpush2.msra.mxu1 %v1238_v2  ;;  %2082 = vmatprep.subr.mxu0 %v1107_v4  ;;  %v1197_v2 = vld [vmem:[#allocation10 + $0x4d8] sm:$0xff]  ;;  %v1068_v4 = vld [vmem:[#allocation10 + $0xd0] sm:$0xff] }
 0x1f6   :  { %2177 = vmatprep.subr.mxu1 %v1235_v5  ;;  %2083 = vmatpush2.msra.mxu0 %v1106_v42  ;;  %v1196_v5 = vld [vmem:[#allocation10 + $0x4d0] sm:$0xff]  ;;  %v1065_v42 = vld [vmem:[#allocation10 + $0xb8] sm:$0xff] }
 0x1f7   :  { %2178 = vmatpush2.msra.mxu1 %v1234_v43  ;;  %2085 = vmatmul.mubr.f32.vlgmr.msra.gmra.mxu0 %v3845_v28  ;;  %v1193_v43 = vld [vmem:[#allocation10 + $0x4b8] sm:$0xff] }
 0x1f8   :  { %2180 = vmatmul.mubr.f32.vlgmr.msra.gmra.mxu1 %v3848_v3  ;;  %2210 = vmatprep.subr.mxu0 %v1105_v47  ;;  %v1064_v47 = vld [vmem:[#allocation10 + $0xb0] sm:$0xff] }
 0x1f9   :  { %2305 = vmatprep.subr.mxu1 %v1233_v14  ;;  %2090 = vmatprep.mubr.f32.mxu0 %v3851_v50  ;;  %v1192_v14 = vld [vmem:[#allocation10 + $0x4b0] sm:$0xff] }
 0x1fa   :  { %2185 = vmatprep.mubr.f32.mxu1 %v3854_v40  ;;  %2211 = vmatpush1.msra.mxu0 %v1104_v48  ;;  %v1061_v48 = vld [vmem:[#allocation10 + $0x98] sm:$0xff] }
 0x1fb   :  { %2306 = vmatpush1.msra.mxu1 %v1232_v36  ;;  %2212 = vmatprep.subr.mxu0 %v1101_v49  ;;  %v1189_v36 = vld [vmem:[#allocation10 + $0x498] sm:$0xff]  ;;  %v1060_v49 = vld [vmem:[#allocation10 + $0x90] sm:$0xff] }
 0x1fc   :  { %2307 = vmatprep.subr.mxu1 %v1229_v8  ;;  %2213 = vmatpush1.msra.mxu0 %v1100_v39  ;;  %v1188_v8 = vld [vmem:[#allocation10 + $0x490] sm:$0xff]  ;;  %v1185_v39 = vld [vmem:[#allocation10 + $0x478] sm:$0xff] }
 0x1fd   :  { %2308 = vmatpush1.msra.mxu1 %v1228_v23  ;;  %2091 = vmatmul.mubr.f32.gmra.mxu0 %v3857_v52  ;;  %v1056_v23 = vld [vmem:[#allocation10 + $0x70] sm:$0xff] }
 0x1fe   :  { %2186 = vmatmul.mubr.f32.gmra.mxu1 %v3860_v53  ;;  %2214 = vmatprep.subr.mxu0 %v1097_v51  ;;  %v1053_v51 = vld [vmem:[#allocation10 + $0x58] sm:$0xff] }
 0x1ff   :  { %2309 = vmatprep.subr.mxu1 %v1225_v56  ;;  %2096 = vmatprep.mubr.f32.mxu0 %v3863_v44  ;;  %v1181_v56 = vld [vmem:[#allocation10 + $0x458] sm:$0xff] }
 0x200   :  { %2191 = vmatprep.mubr.f32.mxu1 %v3866_v10  ;;  %2215 = vmatpush1.msra.mxu0 %v1096_v17  ;;  %v1052_v17 = vld [vmem:[#allocation10 + $0x50] sm:$0xff] }
 0x201   :  { %2310 = vmatpush1.msra.mxu1 %v1224_v37  ;;  %2216 = vmatprep.subr.mxu0 %v1093_v54  ;;  %v1180_v37 = vld [vmem:[#allocation10 + $0x450] sm:$0xff]  ;;  %v1049_v54 = vld [vmem:[#allocation10 + $0x38] sm:$0xff] }
 0x202   :  { %2311 = vmatprep.subr.mxu1 %v1221_v18  ;;  %2217 = vmatpush1.msra.mxu0 %v1092_v7  ;;  %v1177_v18 = vld [vmem:[#allocation10 + $0x438] sm:$0xff]  ;;  %v1048_v7 = vld [vmem:[#allocation10 + $0x30] sm:$0xff] }
 0x203   :  { %2312 = vmatpush1.msra.mxu1 %v1220_v57  ;;  %2097 = vmatmul.mubr.f32.gmra.mxu0 %v3869_v46  ;;  %v1176_v57 = vld [vmem:[#allocation10 + $0x430] sm:$0xff] }
 0x204   :  { %2192 = vmatmul.mubr.f32.gmra.mxu1 %v3872_v55  ;;  %2218 = vmatprep.subr.mxu0 %v1089_v45  ;;  %v1045_v45 = vld [vmem:[#allocation10 + $0x18] sm:$0xff] }
 0x205   :  { %2313 = vmatprep.subr.mxu1 %v1217_v21  ;;  %2102 = vmatprep.mubr.f32.mxu0 %v3875_v63  ;;  %v1173_v21 = vld [vmem:[#allocation10 + $0x418] sm:$0xff] }
 0x206   :  { %2197 = vmatprep.mubr.f32.mxu1 %v3878_v12  ;;  %2219 = vmatpush1.msra.mxu0 %v1088_v24  ;;  %v1044_v24 = vld [vmem:[#allocation10 + $0x10] sm:$0xff] }
 0x207   :  { %2314 = vmatpush1.msra.mxu1 %v1216_v59  ;;  %2220 = vmatprep.subr.mxu0 %v1085_v60  ;;  %v1172_v59 = vld [vmem:[#allocation10 + $0x410] sm:$0xff]  ;;  %v1169_v60 = vld [vmem:[#allocation10 + $0x3f8] sm:$0xff] }
 0x208   :  { %2315 = vmatprep.subr.mxu1 %v1213_v1  ;;  %2221 = vmatpush1.msra.mxu0 %v1084_v11  ;;  %v1297_v1 = vld [vmem:[#allocation10 + $0x7f8] sm:$0xff]  ;;  %v1168_v11 = vld [vmem:[#allocation10 + $0x3f0] sm:$0xff] }
 0x209   :  { %2316 = vmatpush1.msra.mxu1 %v1212_v6  ;;  %2103 = vmatmul.mubr.f32.gmra.mxu0 %v3881_v19  ;;  %v1296_v6 = vld [vmem:[#allocation10 + $0x7f0] sm:$0xff] }
 0x20a   :  { %2198 = vmatmul.mubr.f32.gmra.mxu1 %v3884_v13  ;;  %2222 = vmatprep.subr.mxu0 %v1081_v9  ;;  %v1165_v9 = vld [vmem:[#allocation10 + $0x3d8] sm:$0xff] }
 0x20b   :  { %2317 = vmatprep.subr.mxu1 %v1209_v16  ;;  %2108 = vmatprep.mubr.f32.mxu0 %v3887_v22  ;;  %v1293_v16 = vld [vmem:[#allocation10 + $0x7d8] sm:$0xff] }
 0x20c   :  { %2203 = vmatprep.mubr.f32.mxu1 %v3890_v41  ;;  %2223 = vmatpush1.msra.mxu0 %v1080_v20  ;;  %v1164_v20 = vld [vmem:[#allocation10 + $0x3d0] sm:$0xff] }
 0x20d   :  { %2318 = vmatpush1.msra.mxu1 %v1208_v25  ;;  %2224 = vmatprep.subr.mxu0 %v1077_v26  ;;  %v1292_v25 = vld [vmem:[#allocation10 + $0x7d0] sm:$0xff]  ;;  %v1161_v26 = vld [vmem:[#allocation10 + $0x3b8] sm:$0xff] }
 0x20e   :  { %2319 = vmatprep.subr.mxu1 %v1205_v27  ;;  %2225 = vmatpush1.msra.mxu0 %v1076_v61  ;;  %v1289_v27 = vld [vmem:[#allocation10 + $0x7b8] sm:$0xff]  ;;  %v1160_v61 = vld [vmem:[#allocation10 + $0x3b0] sm:$0xff] }
 0x20f   :  { %2320 = vmatpush1.msra.mxu1 %v1204_v29  ;;  %2109 = vmatmul.mubr.f32.gmra.mxu0 %v3893_v62  ;;  %v1288_v29 = vld [vmem:[#allocation10 + $0x7b0] sm:$0xff] }
 0x210   :  { %2204 = vmatmul.mubr.f32.gmra.mxu1 %v3896_v33  ;;  %2226 = vmatprep.subr.mxu0 %v1073_v30  ;;  %v1157_v30 = vld [vmem:[#allocation10 + $0x398] sm:$0xff] }
 0x211   :  { %2321 = vmatprep.subr.mxu1 %v1201_v15  ;;  %2227 = vmatpush1.msra.mxu0 %v1072_v31  ;;  %v1285_v31 = vld [vmem:[#allocation10 + $0x798] sm:$0xff] }
 0x212   :  { %2274 = vmatprep.mubr.f32.mxu0 %v3839_v58  ;;  %2322 = vmatpush1.msra.mxu1 %v1200_v34  ;;  %v1057_v58 = vld [vmem:[#allocation10 + $0x78] sm:$0xff]  ;;  %v1156_v34 = vld [vmem:[#allocation10 + $0x390] sm:$0xff] }
 0x213   :  { %2369 = vmatprep.mubr.f32.mxu1 %v3842_v0  ;;  %2228 = vmatprep.subr.mxu0 %v1069_v35  ;;  %v1184_v0 = vld [vmem:[#allocation10 + $0x470] sm:$0xff] }
 0x214   :  { %2323 = vmatprep.subr.mxu1 %v1197_v2  ;;  %2229 = vmatpush1.msra.mxu0 %v1068_v4  ;;  %v1284_v2 = vld [vmem:[#allocation10 + $0x790] sm:$0xff]  ;;  %v1153_v4 = vld [vmem:[#allocation10 + $0x378] sm:$0xff] }
 0x215   :  { %2324 = vmatpush1.msra.mxu1 %v1196_v5  ;;  %2230 = vmatprep.subr.mxu0 %v1065_v42 }
 0x216   :  { %2325 = vmatprep.subr.mxu1 %v1193_v43  ;;  %2231 = vmatpush1.msra.mxu0 %v1064_v47  ;;  %v1281_v43 = vld [vmem:[#allocation10 + $0x778] sm:$0xff]  ;;  %v1152_v47 = vld [vmem:[#allocation10 + $0x370] sm:$0xff] }
 0x217   :  { %2326 = vmatpush1.msra.mxu1 %v1192_v14  ;;  %2232 = vmatprep.subr.mxu0 %v1061_v48  ;;  %v1280_v48 = vld [vmem:[#allocation10 + $0x770] sm:$0xff] }
 0x218   :  { %2327 = vmatprep.subr.mxu1 %v1189_v36  ;;  %2233 = vmatpush1.msra.mxu0 %v1060_v49  ;;  %v1149_v36 = vld [vmem:[#allocation10 + $0x358] sm:$0xff] }
 0x219   :  { %2328 = vmatpush1.msra.mxu1 %v1188_v8  ;;  %2234 = vmatprep.subr.mxu0 %v1057_v58  ;;  %v1277_v8 = vld [vmem:[#allocation10 + $0x758] sm:$0xff]  ;;  %v1148_v58 = vld [vmem:[#allocation10 + $0x350] sm:$0xff] }
 0x21a   :  { %2329 = vmatprep.subr.mxu1 %v1185_v39  ;;  %2235 = vmatpush1.msra.mxu0 %v1056_v23  ;;  %v1276_v39 = vld [vmem:[#allocation10 + $0x750] sm:$0xff]  ;;  %v1145_v23 = vld [vmem:[#allocation10 + $0x338] sm:$0xff] }
 0x21b   :  { %2330 = vmatpush1.msra.mxu1 %v1184_v0  ;;  %2236 = vmatprep.subr.mxu0 %v1053_v51  ;;  %v1273_v0 = vld [vmem:[#allocation10 + $0x738] sm:$0xff]  ;;  %v1144_v51 = vld [vmem:[#allocation10 + $0x330] sm:$0xff] }
 0x21c   :  { %2331 = vmatprep.subr.mxu1 %v1181_v56  ;;  %2237 = vmatpush1.msra.mxu0 %v1052_v17  ;;  %v1272_v17 = vld [vmem:[#allocation10 + $0x730] sm:$0xff] }
 0x21d   :  { %2332 = vmatpush1.msra.mxu1 %v1180_v37  ;;  %2238 = vmatprep.subr.mxu0 %v1049_v54  ;;  %v1141_v37 = vld [vmem:[#allocation10 + $0x318] sm:$0xff] }
 0x21e   :  { %2333 = vmatprep.subr.mxu1 %v1177_v18  ;;  %2239 = vmatpush1.msra.mxu0 %v1048_v7  ;;  %v1269_v18 = vld [vmem:[#allocation10 + $0x718] sm:$0xff]  ;;  %v1140_v7 = vld [vmem:[#allocation10 + $0x310] sm:$0xff] }
 0x21f   :  { %2334 = vmatpush1.msra.mxu1 %v1176_v57  ;;  %2240 = vmatprep.subr.mxu0 %v1045_v45 }
 0x220   :  { %2335 = vmatprep.subr.mxu1 %v1173_v21  ;;  %2241 = vmatpush1.msra.mxu0 %v1044_v24  ;;  %v1268_v21 = vld [vmem:[#allocation10 + $0x710] sm:$0xff]  ;;  %v1137_v24 = vld [vmem:[#allocation10 + $0x2f8] sm:$0xff] }
 0x221   :  { %2336 = vmatpush1.msra.mxu1 %v1172_v59  ;;  %2242 = vmatprep.subr.mxu0 %v1169_v60  ;;  %v1265_v60 = vld [vmem:[#allocation10 + $0x6f8] sm:$0xff] }
 0x222   :  { %2337 = vmatprep.subr.mxu1 %v1297_v1  ;;  %2243 = vmatpush2.msra.mxu0 %v1168_v11  ;;  %v1136_v1 = vld [vmem:[#allocation10 + $0x2f0] sm:$0xff] }
 0x223   :  { %2338 = vmatpush2.msra.mxu1 %v1296_v6  ;;  %2244 = vmatprep.subr.mxu0 %v1165_v9  ;;  %v1264_v6 = vld [vmem:[#allocation10 + $0x6f0] sm:$0xff]  ;;  %v1133_v9 = vld [vmem:[#allocation10 + $0x2d8] sm:$0xff] }
 0x224   :  { %2339 = vmatprep.subr.mxu1 %v1293_v16  ;;  %2245 = vmatpush2.msra.mxu0 %v1164_v20  ;;  %v1706_v15 = vpop.f32.mrf.mxu0  ;;  %v1261_v16 = vld [vmem:[#allocation10 + $0x6d8] sm:$0xff]  ;;  %v1132_v20 = vld [vmem:[#allocation10 + $0x2d0] sm:$0xff] }
 0x225   :  { %2340 = vmatpush2.msra.mxu1 %v1292_v25  ;;  %2246 = vmatprep.subr.mxu0 %v1161_v26  ;;  %v1801_v35 = vpop.f32.mrf.mxu1  ;;  %v1260_v26 = vld [vmem:[#allocation10 + $0x6d0] sm:$0xff] }
 0x226   :  { %2341 = vmatprep.subr.mxu1 %v1289_v27  ;;  %2247 = vmatpush2.msra.mxu0 %v1160_v61  ;;  %v3901_v5 = vadd.f32 %v1801_v35, %v1706_v15  ;;  %v1708_v42 = vpop.f32.mrf.mxu0  ;;  %v1129_v27 = vld [vmem:[#allocation10 + $0x2b8] sm:$0xff] }
 0x227   :  { %2342 = vmatpush2.msra.mxu1 %v1288_v29  ;;  %2248 = vmatprep.subr.mxu0 %v1157_v30  ;;  %v1803_v14 = vpop.f32.mrf.mxu1  ;;  %v1257_v29 = vld [vmem:[#allocation10 + $0x6b8] sm:$0xff]  ;;  %v1128_v30 = vld [vmem:[#allocation10 + $0x2b0] sm:$0xff] }
 0x228   :  { %2343 = vmatprep.subr.mxu1 %v1285_v31  ;;  %2249 = vmatpush2.msra.mxu0 %v1156_v34  ;;  %v3903_v49 = vadd.f32 %v1803_v14, %v1708_v42  ;;  %v1256_v34 = vld [vmem:[#allocation10 + $0x6b0] sm:$0xff]  ;;  %v1125_v35 = vld [vmem:[#allocation10 + $0x298] sm:$0xff] }
 0x229   :  { %2344 = vmatpush2.msra.mxu1 %v1284_v2  ;;  %2250 = vmatprep.subr.mxu0 %v1153_v4  ;;  %v1253_v4 = vld [vmem:[#allocation10 + $0x698] sm:$0xff]  ;;  %v1124_v42 = vld [vmem:[#allocation10 + $0x290] sm:$0xff] }
 0x22a   :  { %2345 = vmatprep.subr.mxu1 %v1281_v43  ;;  %2251 = vmatpush2.msra.mxu0 %v1152_v47  ;;  %v1252_v47 = vld [vmem:[#allocation10 + $0x690] sm:$0xff]  ;;  %v1121_v14 = vld [vmem:[#allocation10 + $0x278] sm:$0xff] }
 0x22b   :  { %2346 = vmatpush2.msra.mxu1 %v1280_v48  ;;  %2252 = vmatprep.subr.mxu0 %v1149_v36  ;;  %v1712_v56 = vpop.f32.mrf.mxu0  ;;  %v1249_v48 = vld [vmem:[#allocation10 + $0x678] sm:$0xff]  ;;  %v1120_v36 = vld [vmem:[#allocation10 + $0x270] sm:$0xff] }
 0x22c   :  { %2347 = vmatprep.subr.mxu1 %v1277_v8  ;;  %2253 = vmatpush2.msra.mxu0 %v1148_v58  ;;  %v1807_v54 = vpop.f32.mrf.mxu1  ;;  %v1248_v58 = vld [vmem:[#allocation10 + $0x670] sm:$0xff] }
 0x22d   :  { %2348 = vmatpush2.msra.mxu1 %v1276_v39  ;;  %2254 = vmatprep.subr.mxu0 %v1145_v23  ;;  %v3905_v57 = vadd.f32 %v1807_v54, %v1712_v56  ;;  %v1714_v45 = vpop.f32.mrf.mxu0  ;;  %v1117_v39 = vld [vmem:[#allocation10 + $0x258] sm:$0xff] }
 0x22e   :  { %2349 = vmatprep.subr.mxu1 %v1273_v0  ;;  %2255 = vmatpush2.msra.mxu0 %v1144_v51  ;;  %v1809_v59 = vpop.f32.mrf.mxu1  ;;  %v1245_v0 = vld [vmem:[#allocation10 + $0x658] sm:$0xff]  ;;  %v1116_v51 = vld [vmem:[#allocation10 + $0x250] sm:$0xff] }
 0x22f   :  { %2350 = vmatpush2.msra.mxu1 %v1272_v17  ;;  %2256 = vmatprep.subr.mxu0 %v1141_v37  ;;  %v3907_v11 = vadd.f32 %v1809_v59, %v1714_v45  ;;  %v1244_v37 = vld [vmem:[#allocation10 + $0x650] sm:$0xff]  ;;  %v1113_v54 = vld [vmem:[#allocation10 + $0x238] sm:$0xff] }
 0x230   :  { %2351 = vmatprep.subr.mxu1 %v1269_v18  ;;  %2257 = vmatpush2.msra.mxu0 %v1140_v7  ;;  %v1241_v7 = vld [vmem:[#allocation10 + $0x638] sm:$0xff]  ;;  %v1112_v45 = vld [vmem:[#allocation10 + $0x230] sm:$0xff] }
 0x231   :  { %2352 = vmatpush2.msra.mxu1 %v1268_v21  ;;  %2258 = vmatprep.subr.mxu0 %v1137_v24  ;;  %v1718_v25 = vpop.f32.mrf.mxu0  ;;  %v1240_v24 = vld [vmem:[#allocation10 + $0x630] sm:$0xff]  ;;  %v1109_v59 = vld [vmem:[#allocation10 + $0x218] sm:$0xff] }
 0x232   :  { %2353 = vmatprep.subr.mxu1 %v1265_v60  ;;  %2259 = vmatpush2.msra.mxu0 %v1136_v1  ;;  %v1813_v61 = vpop.f32.mrf.mxu1  ;;  %v1237_v60 = vld [vmem:[#allocation10 + $0x618] sm:$0xff]  ;;  %v1108_v1 = vld [vmem:[#allocation10 + $0x210] sm:$0xff] }
 0x233   :  { %2354 = vmatpush2.msra.mxu1 %v1264_v6  ;;  %2260 = vmatprep.subr.mxu0 %v1133_v9  ;;  %v3909_v15 = vadd.f32 %v1813_v61, %v1718_v25  ;;  %v1720_v31 = vpop.f32.mrf.mxu0  ;;  %v1236_v9 = vld [vmem:[#allocation10 + $0x610] sm:$0xff] }
 0x234   :  { %2355 = vmatprep.subr.mxu1 %v1261_v16  ;;  %2261 = vmatpush2.msra.mxu0 %v1132_v20  ;;  %v1815_v2 = vpop.f32.mrf.mxu1  ;;  %v2470_v20 = vld [vmem:[#allocation10 + $0x11e8] sm:$0xff] }
 0x235   :  { %2356 = vmatpush2.msra.mxu1 %v1260_v26  ;;  %2262 = vmatprep.subr.mxu0 %v1129_v27  ;;  %v3911_v43 = vadd.f32 %v1815_v2, %v1720_v31  ;;  %v2598_v27 = vld [vmem:[#allocation10 + $0x15e8] sm:$0xff]  ;;  %v2597_v31 = vld [vmem:[#allocation10 + $0x15e0] sm:$0xff] }
 0x236   :  { %2357 = vmatprep.subr.mxu1 %v1257_v29  ;;  %2263 = vmatpush2.msra.mxu0 %v1128_v30  ;;  %v2469_v29 = vld [vmem:[#allocation10 + $0x11e0] sm:$0xff] }
 0x237   :  { %2358 = vmatpush2.msra.mxu1 %v1256_v34  ;;  %2264 = vmatprep.subr.mxu0 %v1125_v35  ;;  %v1724_v8 = vpop.f32.mrf.mxu0  ;;  %v2466_v34 = vld [vmem:[#allocation10 + $0x11c8] sm:$0xff]  ;;  %v2465_v2 = vld [vmem:[#allocation10 + $0x11c0] sm:$0xff] }
 0x238   :  { %2359 = vmatprep.subr.mxu1 %v1253_v4  ;;  %2265 = vmatpush2.msra.mxu0 %v1124_v42  ;;  %v1819_v23 = vpop.f32.mrf.mxu1  ;;  %v2594_v35 = vld [vmem:[#allocation10 + $0x15c8] sm:$0xff]  ;;  %v2593_v4 = vld [vmem:[#allocation10 + $0x15c0] sm:$0xff] }
 0x239   :  { %2360 = vmatpush2.msra.mxu1 %v1252_v47  ;;  %2266 = vmatprep.subr.mxu0 %v1121_v14  ;;  %v3913_v56 = vadd.f32 %v1819_v23, %v1724_v8  ;;  %v1726_v17 = vpop.f32.mrf.mxu0  ;;  %v2590_v42 = vld [vmem:[#allocation10 + $0x15a8] sm:$0xff]  ;;  %v2589_v47 = vld [vmem:[#allocation10 + $0x15a0] sm:$0xff] }
 0x23a   :  { %2361 = vmatprep.subr.mxu1 %v1249_v48  ;;  %2267 = vmatpush2.msra.mxu0 %v1120_v36  ;;  %v1821_v18 = vpop.f32.mrf.mxu1  ;;  %v2458_v14 = vld [vmem:[#allocation10 + $0x1188] sm:$0xff]  ;;  %v2457_v36 = vld [vmem:[#allocation10 + $0x1180] sm:$0xff] }
 0x23b   :  { %2362 = vmatpush2.msra.mxu1 %v1248_v58  ;;  %2268 = vmatprep.subr.mxu0 %v1117_v39  ;;  %v3915_v21 = vadd.f32 %v1821_v18, %v1726_v17  ;;  %v2586_v48 = vld [vmem:[#allocation10 + $0x1588] sm:$0xff]  ;;  %v2585_v8 = vld [vmem:[#allocation10 + $0x1580] sm:$0xff]  ;;  %v2403_v18 = vld [vmem:[#allocation3 + $0x18] sm:$0xfc] }
 0x23c   :  { %2363 = vmatprep.subr.mxu1 %v1245_v0  ;;  %2269 = vmatpush2.msra.mxu0 %v1116_v51  ;;  %v2454_v58 = vld [vmem:[#allocation10 + $0x1168] sm:$0xff]  ;;  %v2449_v23 = vld [vmem:[#allocation10 + $0x1140] sm:$0xff] }
 0x23d   :  { %2364 = vmatpush2.msra.mxu1 %v1244_v37  ;;  %2270 = vmatprep.subr.mxu0 %v1113_v54  ;;  %v1730_v6 = vpop.f32.mrf.mxu0  ;;  %v2450_v39 = vld [vmem:[#allocation10 + $0x1148] sm:$0xff]  ;;  %v2577_v0 = vld [vmem:[#allocation10 + $0x1540] sm:$0xff] }
 0x23e   :  { %2365 = vmatprep.subr.mxu1 %v1241_v7  ;;  %2271 = vmatpush2.msra.mxu0 %v1112_v45  ;;  %v1825_v16 = vpop.f32.mrf.mxu1  ;;  %v2446_v51 = vld [vmem:[#allocation10 + $0x1128] sm:$0xff]  ;;  %v2441_v54 = vld [vmem:[#allocation10 + $0x1100] sm:$0xff] }
 0x23f   :  { %2366 = vmatpush2.msra.mxu1 %v1240_v24  ;;  %2272 = vmatprep.subr.mxu0 %v1109_v59  ;;  %v3917_v25 = vadd.f32 %v1825_v16, %v1730_v6  ;;  %v1732_v26 = vpop.f32.mrf.mxu0  ;;  %v2442_v17 = vld [vmem:[#allocation10 + $0x1108] sm:$0xff]  ;;  %v2569_v7 = vld [vmem:[#allocation10 + $0x1500] sm:$0xff]  ;;  %v2683_v59 = vrot.slane %v2403_v18, 2 }
 0x240   :  { %2367 = vmatprep.subr.mxu1 %v1237_v60  ;;  %2273 = vmatpush2.msra.mxu0 %v1108_v1  ;;  %v1827_v61 = vpop.f32.mrf.mxu1  ;;  %v2401_v37 = vld [vmem:[#allocation3 + $0x8] sm:$0xfc] }
 0x241   :  { %2368 = vmatpush2.msra.mxu1 %v1236_v9  ;;  %2275 = vmatmul.mubr.f32.vlgmr.msra.gmra.mxu0 %v3845_v28  ;;  %v3920_v30 = vadd.f32 %v1827_v61, %v1732_v26  ;;  %v2462_v28 = vld [vmem:[#allocation10 + $0x11a8] sm:$0xff]  ;;  %v2677_v45 = vrot.slane %v2401_v37, 2  ;;  %v2437_v24 = vld [vmem:[#allocation10 + $0x10e0] sm:$0xff] }
 0x242   :  { %2370 = vmatmul.mubr.f32.vlgmr.msra.gmra.mxu1 %v3848_v3  ;;  %2730 = vmatprep.subr.mxu0 %v2470_v20  ;;  %v2461_v3 = vld [vmem:[#allocation10 + $0x11a0] sm:$0xff]  ;;  %v2434_v1 = vld [vmem:[#allocation10 + $0x10c8] sm:$0xff] }
 0x243   :  { %2825 = vmatprep.subr.mxu1 %v2598_v27  ;;  %2280 = vmatprep.mubr.f32.mxu0 %v3851_v50  ;;  %v2565_v60 = vld [vmem:[#allocation10 + $0x14e0] sm:$0xff]  ;;  %v2562_v9 = vld [vmem:[#allocation10 + $0x14c8] sm:$0xff] }
 0x244   :  { %2375 = vmatprep.mubr.f32.mxu1 %v3854_v40  ;;  %2731 = vmatpush1.msra.mxu0 %v2469_v29  ;;  %v2433_v16 = vld [vmem:[#allocation10 + $0x10c0] sm:$0xff]  ;;  %v2430_v20 = vld [vmem:[#allocation10 + $0x10a8] sm:$0xff] }
 0x245   :  { %2826 = vmatpush1.msra.mxu1 %v2597_v31  ;;  %2732 = vmatprep.subr.mxu0 %v2466_v34  ;;  %v2558_v26 = vld [vmem:[#allocation10 + $0x14a8] sm:$0xff]  ;;  %v2429_v27 = vld [vmem:[#allocation10 + $0x10a0] sm:$0xff] }
 0x246   :  { %2827 = vmatprep.subr.mxu1 %v2594_v35  ;;  %2733 = vmatpush1.msra.mxu0 %v2465_v2  ;;  %v2557_v61 = vld [vmem:[#allocation10 + $0x14a0] sm:$0xff]  ;;  %v2426_v29 = vld [vmem:[#allocation10 + $0x1088] sm:$0xff] }
 0x247   :  { %2828 = vmatpush1.msra.mxu1 %v2593_v4  ;;  %2281 = vmatmul.mubr.f32.gmra.mxu0 %v3857_v52  ;;  %v2582_v52 = vld [vmem:[#allocation10 + $0x1568] sm:$0xff]  ;;  %v2425_v34 = vld [vmem:[#allocation10 + $0x1080] sm:$0xff] }
 0x248   :  { %2376 = vmatmul.mubr.f32.gmra.mxu1 %v3860_v53  ;;  %2734 = vmatprep.subr.mxu0 %v2462_v28  ;;  %v2453_v53 = vld [vmem:[#allocation10 + $0x1160] sm:$0xff]  ;;  %v2554_v31 = vld [vmem:[#allocation10 + $0x1488] sm:$0xff] }
 0x249   :  { %2829 = vmatprep.subr.mxu1 %v2590_v42  ;;  %2286 = vmatprep.mubr.f32.mxu0 %v3863_v44  ;;  %v2581_v44 = vld [vmem:[#allocation10 + $0x1560] sm:$0xff]  ;;  %v2422_v2 = vld [vmem:[#allocation10 + $0x1068] sm:$0xff] }
 0x24a   :  { %2381 = vmatprep.mubr.f32.mxu1 %v3866_v10  ;;  %2735 = vmatpush1.msra.mxu0 %v2461_v3  ;;  %v2578_v10 = vld [vmem:[#allocation10 + $0x1548] sm:$0xff]  ;;  %v2553_v35 = vld [vmem:[#allocation10 + $0x1480] sm:$0xff] }
 0x24b   :  { %2830 = vmatpush1.msra.mxu1 %v2589_v47  ;;  %2736 = vmatprep.subr.mxu0 %v2458_v14  ;;  %v2550_v4 = vld [vmem:[#allocation10 + $0x1468] sm:$0xff]  ;;  %v2421_v28 = vld [vmem:[#allocation10 + $0x1060] sm:$0xff] }
 0x24c   :  { %2831 = vmatprep.subr.mxu1 %v2586_v48  ;;  %2737 = vmatpush1.msra.mxu0 %v2457_v36  ;;  %v2549_v42 = vld [vmem:[#allocation10 + $0x1460] sm:$0xff]  ;;  %v2418_v3 = vld [vmem:[#allocation10 + $0x1048] sm:$0xff] }
 0x24d   :  { %2832 = vmatpush1.msra.mxu1 %v2585_v8  ;;  %2287 = vmatmul.mubr.f32.gmra.mxu0 %v3869_v46  ;;  %v2574_v46 = vld [vmem:[#allocation10 + $0x1528] sm:$0xff]  ;;  %v2417_v14 = vld [vmem:[#allocation10 + $0x1040] sm:$0xff] }
 0x24e   :  { %2382 = vmatmul.mubr.f32.gmra.mxu1 %v3872_v55  ;;  %2738 = vmatprep.subr.mxu0 %v2454_v58  ;;  %v2445_v55 = vld [vmem:[#allocation10 + $0x1120] sm:$0xff]  ;;  %v2546_v47 = vld [vmem:[#allocation10 + $0x1448] sm:$0xff] }
 0x24f   :  { %2833 = vmatprep.subr.mxu1 %v2582_v52  ;;  %2292 = vmatprep.mubr.f32.mxu0 %v3875_v63  ;;  %v2573_v63 = vld [vmem:[#allocation10 + $0x1520] sm:$0xff]  ;;  %v2414_v36 = vld [vmem:[#allocation10 + $0x1028] sm:$0xff] }
 0x250   :  { %2387 = vmatprep.mubr.f32.mxu1 %v3878_v12  ;;  %2739 = vmatpush1.msra.mxu0 %v2453_v53  ;;  %v2570_v12 = vld [vmem:[#allocation10 + $0x1508] sm:$0xff]  ;;  %v2545_v48 = vld [vmem:[#allocation10 + $0x1440] sm:$0xff] }
 0x251   :  { %2834 = vmatpush1.msra.mxu1 %v2581_v44  ;;  %2740 = vmatprep.subr.mxu0 %v2450_v39  ;;  %v2542_v8 = vld [vmem:[#allocation10 + $0x1428] sm:$0xff]  ;;  %v2413_v58 = vld [vmem:[#allocation10 + $0x1020] sm:$0xff] }
 0x252   :  { %2835 = vmatprep.subr.mxu1 %v2578_v10  ;;  %2741 = vmatpush1.msra.mxu0 %v2449_v23  ;;  %v2541_v52 = vld [vmem:[#allocation10 + $0x1420] sm:$0xff]  ;;  %v2410_v53 = vld [vmem:[#allocation10 + $0x1008] sm:$0xff] }
 0x253   :  { %2836 = vmatpush1.msra.mxu1 %v2577_v0  ;;  %2293 = vmatmul.mubr.f32.gmra.mxu0 %v3881_v19  ;;  %v2438_v19 = vld [vmem:[#allocation10 + $0x10e8] sm:$0xff]  ;;  %v2409_v39 = vld [vmem:[#allocation10 + $0x1000] sm:$0xff] }
 0x254   :  { %2388 = vmatmul.mubr.f32.gmra.mxu1 %v3884_v13  ;;  %2742 = vmatprep.subr.mxu0 %v2446_v51  ;;  %v2566_v13 = vld [vmem:[#allocation10 + $0x14e8] sm:$0xff]  ;;  %v2537_v10 = vld [vmem:[#allocation10 + $0x1400] sm:$0xff] }
 0x255   :  { %2837 = vmatprep.subr.mxu1 %v2574_v46  ;;  %2298 = vmatprep.mubr.f32.mxu0 %v3887_v22  ;;  %v2678_v22 = vrot.slane %v3851_v50, 2  ;;  %v2538_v44 = vld [vmem:[#allocation10 + $0x1408] sm:$0xff]  ;;  %v2533_v51 = vld [vmem:[#allocation10 + $0x13e0] sm:$0xff]  ;;  %v2595_v50 = vld [vmem:[#allocation10 + $0x15d0] sm:$0xff] }
 0x256   :  { %2393 = vmatprep.mubr.f32.mxu1 %v3890_v41  ;;  %2743 = vmatpush1.msra.mxu0 %v2445_v55  ;;  %v2684_v41 = vrot.slane %v3854_v40, 2  ;;  %v2534_v23 = vld [vmem:[#allocation10 + $0x13e8] sm:$0xff]  ;;  %v2661_v46 = vld [vmem:[#allocation10 + $0x17e0] sm:$0xff]  ;;  %v2592_v40 = vld [vmem:[#allocation10 + $0x15b8] sm:$0xff] }
 0x257   :  { %2838 = vmatpush1.msra.mxu1 %v2573_v63  ;;  %2744 = vmatprep.subr.mxu0 %v2442_v17  ;;  %v3944_v6 = vsel %vm2673_vm5, %v2677_v45, %v2678_v22  ;;  %v2662_v0 = vld [vmem:[#allocation10 + $0x17e8] sm:$0xff]  ;;  %v2529_v17 = vld [vmem:[#allocation10 + $0x13c0] sm:$0xff] }
 0x258   :  { %2839 = vmatprep.subr.mxu1 %v2570_v12  ;;  %2745 = vmatpush1.msra.mxu0 %v2441_v54  ;;  %v2530_v55 = vld [vmem:[#allocation10 + $0x13c8] sm:$0xff]  ;;  %v2657_v37 = vld [vmem:[#allocation10 + $0x17c0] sm:$0xff] }
 0x259   :  { %2840 = vmatpush1.msra.mxu1 %v2569_v7  ;;  %2299 = vmatmul.mubr.f32.gmra.mxu0 %v3893_v62  ;;  %v3950_v62 = vsel %vm2673_vm5, %v2683_v59, %v2684_v41  ;;  %v2658_v63 = vld [vmem:[#allocation10 + $0x17c8] sm:$0xff]  ;;  %v2525_v18 = vld [vmem:[#allocation10 + $0x13a0] sm:$0xff] }
 0x25a   :  { %2394 = vmatmul.mubr.f32.gmra.mxu1 %v3896_v33  ;;  %2746 = vmatprep.subr.mxu0 %v2438_v19  ;;  %v2561_v33 = vld [vmem:[#allocation10 + $0x14c0] sm:$0xff]  ;;  %v2526_v12 = vld [vmem:[#allocation10 + $0x13a8] sm:$0xff] }
 0x25b   :  { %2841 = vmatprep.subr.mxu1 %v2566_v13  ;;  %2747 = vmatpush1.msra.mxu0 %v2437_v24  ;;  %v2654_v54 = vld [vmem:[#allocation10 + $0x17a8] sm:$0xff]  ;;  %v2653_v19 = vld [vmem:[#allocation10 + $0x17a0] sm:$0xff] }
 0x25c   :  { %2794 = vmatprep.mubr.f32.mxu0 %v3944_v6  ;;  %2842 = vmatpush1.msra.mxu1 %v2565_v60  ;;  %v2522_v45 = vld [vmem:[#allocation10 + $0x1388] sm:$0xff]  ;;  %v2521_v59 = vld [vmem:[#allocation10 + $0x1380] sm:$0xff] }
 0x25d   :  { %2889 = vmatprep.mubr.f32.mxu1 %v3950_v62  ;;  %2748 = vmatprep.subr.mxu0 %v2434_v1  ;;  %v2650_v24 = vld [vmem:[#allocation10 + $0x1788] sm:$0xff] }
 0x25e   :  { %2843 = vmatprep.subr.mxu1 %v2562_v9  ;;  %2749 = vmatpush1.msra.mxu0 %v2433_v16  ;;  %v2649_v9 = vld [vmem:[#allocation10 + $0x1780] sm:$0xff]  ;;  %v2518_v16 = vld [vmem:[#allocation10 + $0x1368] sm:$0xff] }
 0x25f   :  { %2844 = vmatpush1.msra.mxu1 %v2561_v33  ;;  %2750 = vmatprep.subr.mxu0 %v2430_v20  ;;  %v2646_v20 = vld [vmem:[#allocation10 + $0x1768] sm:$0xff] }
 0x260   :  { %2845 = vmatprep.subr.mxu1 %v2558_v26  ;;  %2751 = vmatpush1.msra.mxu0 %v2429_v27  ;;  %v2517_v26 = vld [vmem:[#allocation10 + $0x1360] sm:$0xff] }
 0x261   :  { %2846 = vmatpush1.msra.mxu1 %v2557_v61  ;;  %2752 = vmatprep.subr.mxu0 %v2426_v29  ;;  %v2645_v61 = vld [vmem:[#allocation10 + $0x1760] sm:$0xff]  ;;  %v2514_v29 = vld [vmem:[#allocation10 + $0x1348] sm:$0xff] }
 0x262   :  { %2847 = vmatprep.subr.mxu1 %v2554_v31  ;;  %2753 = vmatpush1.msra.mxu0 %v2425_v34  ;;  %v2642_v31 = vld [vmem:[#allocation10 + $0x1748] sm:$0xff]  ;;  %v2513_v34 = vld [vmem:[#allocation10 + $0x1340] sm:$0xff] }
 0x263   :  { %2848 = vmatpush1.msra.mxu1 %v2553_v35  ;;  %2754 = vmatprep.subr.mxu0 %v2422_v2  ;;  %v2641_v2 = vld [vmem:[#allocation10 + $0x1740] sm:$0xff] }
 0x264   :  { %2849 = vmatprep.subr.mxu1 %v2550_v4  ;;  %2755 = vmatpush1.msra.mxu0 %v2421_v28  ;;  %v2510_v4 = vld [vmem:[#allocation10 + $0x1328] sm:$0xff] }
 0x265   :  { %2850 = vmatpush1.msra.mxu1 %v2549_v42  ;;  %2756 = vmatprep.subr.mxu0 %v2418_v3  ;;  %v2638_v42 = vld [vmem:[#allocation10 + $0x1728] sm:$0xff]  ;;  %v2509_v3 = vld [vmem:[#allocation10 + $0x1320] sm:$0xff] }
 0x266   :  { %2851 = vmatprep.subr.mxu1 %v2546_v47  ;;  %2757 = vmatpush1.msra.mxu0 %v2417_v14 }
 0x267   :  { %2852 = vmatpush1.msra.mxu1 %v2545_v48  ;;  %2758 = vmatprep.subr.mxu0 %v2414_v36  ;;  %v2637_v48 = vld [vmem:[#allocation10 + $0x1720] sm:$0xff]  ;;  %v2506_v36 = vld [vmem:[#allocation10 + $0x1308] sm:$0xff] }
 0x268   :  { %2853 = vmatprep.subr.mxu1 %v2542_v8  ;;  %2759 = vmatpush1.msra.mxu0 %v2413_v58  ;;  %v2634_v58 = vld [vmem:[#allocation10 + $0x1708] sm:$0xff] }
 0x269   :  { %2854 = vmatpush1.msra.mxu1 %v2541_v52  ;;  %2760 = vmatprep.subr.mxu0 %v2410_v53  ;;  %v2505_v52 = vld [vmem:[#allocation10 + $0x1300] sm:$0xff] }
 0x26a   :  { %2855 = vmatprep.subr.mxu1 %v2538_v44  ;;  %2761 = vmatpush1.msra.mxu0 %v2409_v39  ;;  %v2633_v44 = vld [vmem:[#allocation10 + $0x1700] sm:$0xff]  ;;  %v2502_v39 = vld [vmem:[#allocation10 + $0x12e8] sm:$0xff] }
 0x26b   :  { %2856 = vmatpush1.msra.mxu1 %v2537_v10  ;;  %2762 = vmatprep.subr.mxu0 %v2534_v23  ;;  %v2630_v10 = vld [vmem:[#allocation10 + $0x16e8] sm:$0xff]  ;;  %v2501_v23 = vld [vmem:[#allocation10 + $0x12e0] sm:$0xff] }
 0x26c   :  { %2857 = vmatprep.subr.mxu1 %v2662_v0  ;;  %2763 = vmatpush2.msra.mxu0 %v2533_v51  ;;  %v2629_v51 = vld [vmem:[#allocation10 + $0x16e0] sm:$0xff] }
 0x26d   :  { %2858 = vmatpush2.msra.mxu1 %v2661_v46  ;;  %2764 = vmatprep.subr.mxu0 %v2530_v55  ;;  %v1896_v7 = vpop.f32.mrf.mxu0  ;;  %v2498_v46 = vld [vmem:[#allocation10 + $0x12c8] sm:$0xff] }
 0x26e   :  { %2859 = vmatprep.subr.mxu1 %v2658_v63  ;;  %2765 = vmatpush2.msra.mxu0 %v2529_v17  ;;  %v1991_v13 = vpop.f32.mrf.mxu1  ;;  %v2626_v63 = vld [vmem:[#allocation10 + $0x16c8] sm:$0xff]  ;;  %v2497_v17 = vld [vmem:[#allocation10 + $0x12c0] sm:$0xff] }
 0x26f   :  { %2860 = vmatpush2.msra.mxu1 %v2657_v37  ;;  %2766 = vmatprep.subr.mxu0 %v2526_v12  ;;  %v3953_v60 = vadd.f32 %v1991_v13, %v1896_v7  ;;  %v1898_v1 = vpop.f32.mrf.mxu0 }
 0x270   :  { %2861 = vmatprep.subr.mxu1 %v2654_v54  ;;  %2767 = vmatpush2.msra.mxu0 %v2525_v18  ;;  %v1993_v33 = vpop.f32.mrf.mxu1  ;;  %v2625_v54 = vld [vmem:[#allocation10 + $0x16c0] sm:$0xff]  ;;  %v2494_v18 = vld [vmem:[#allocation10 + $0x12a8] sm:$0xff] }
 0x271   :  { %2862 = vmatpush2.msra.mxu1 %v2653_v19  ;;  %2768 = vmatprep.subr.mxu0 %v2522_v45  ;;  %v3955_v27 = vadd.f32 %v1993_v33, %v1898_v1  ;;  %v2622_v19 = vld [vmem:[#allocation10 + $0x16a8] sm:$0xff]  ;;  %v2493_v45 = vld [vmem:[#allocation10 + $0x12a0] sm:$0xff] }
 0x272   :  { %2863 = vmatprep.subr.mxu1 %v2650_v24  ;;  %2769 = vmatpush2.msra.mxu0 %v2521_v59  ;;  %v2621_v24 = vld [vmem:[#allocation10 + $0x16a0] sm:$0xff]  ;;  %v2490_v59 = vld [vmem:[#allocation10 + $0x1288] sm:$0xff] }
 0x273   :  { %2864 = vmatpush2.msra.mxu1 %v2649_v9  ;;  %2770 = vmatprep.subr.mxu0 %v2518_v16  ;;  %v1902_v35 = vpop.f32.mrf.mxu0  ;;  %v2618_v1 = vld [vmem:[#allocation10 + $0x1688] sm:$0xff]  ;;  %v2489_v9 = vld [vmem:[#allocation10 + $0x1280] sm:$0xff] }
 0x274   :  { %2865 = vmatprep.subr.mxu1 %v2646_v20  ;;  %2771 = vmatpush2.msra.mxu0 %v2517_v26  ;;  %v1997_v28 = vpop.f32.mrf.mxu1  ;;  %v2617_v33 = vld [vmem:[#allocation10 + $0x1680] sm:$0xff]  ;;  %v2486_v20 = vld [vmem:[#allocation10 + $0x1268] sm:$0xff] }
 0x275   :  { %2866 = vmatpush2.msra.mxu1 %v2645_v61  ;;  %2772 = vmatprep.subr.mxu0 %v2514_v29  ;;  %v3957_v47 = vadd.f32 %v1997_v28, %v1902_v35  ;;  %v1904_v14 = vpop.f32.mrf.mxu0  ;;  %v2614_v61 = vld [vmem:[#allocation10 + $0x1668] sm:$0xff]  ;;  %v2485_v29 = vld [vmem:[#allocation10 + $0x1260] sm:$0xff] }
 0x276   :  { %2867 = vmatprep.subr.mxu1 %v2642_v31  ;;  %2773 = vmatpush2.msra.mxu0 %v2513_v34  ;;  %v1999_v8 = vpop.f32.mrf.mxu1  ;;  %v2613_v35 = vld [vmem:[#allocation10 + $0x1660] sm:$0xff]  ;;  %v2610_v28 = vld [vmem:[#allocation10 + $0x1648] sm:$0xff] }
 0x277   :  { %2868 = vmatpush2.msra.mxu1 %v2641_v2  ;;  %2774 = vmatprep.subr.mxu0 %v2510_v4  ;;  %v3959_v53 = vadd.f32 %v1999_v8, %v1904_v14  ;;  %v2482_v2 = vld [vmem:[#allocation10 + $0x1248] sm:$0xff] }
 0x278   :  { %2869 = vmatprep.subr.mxu1 %v2638_v42  ;;  %2775 = vmatpush2.msra.mxu0 %v2509_v3  ;;  %v2481_v42 = vld [vmem:[#allocation10 + $0x1240] sm:$0xff]  ;;  %v2402_v8 = vld [vmem:[#allocation3 + $0x10] sm:$0xfc] }
 0x279   :  { %2870 = vmatpush2.msra.mxu1 %v2637_v48  ;;  %2776 = vmatprep.subr.mxu0 %v2506_v36  ;;  %v1908_v0 = vpop.f32.mrf.mxu0  ;;  %v2400_v3 = vld [vmem:[#allocation3] sm:$0xfc]  ;;  %v2478_v36 = vld [vmem:[#allocation10 + $0x1228] sm:$0xff] }
 0x27a   :  { %2871 = vmatprep.subr.mxu1 %v2634_v58  ;;  %2777 = vmatpush2.msra.mxu0 %v2505_v52  ;;  %v2003_v55 = vpop.f32.mrf.mxu1  ;;  %v2609_v48 = vld [vmem:[#allocation10 + $0x1640] sm:$0xff]  ;;  %v2606_v58 = vld [vmem:[#allocation10 + $0x1628] sm:$0xff] }
 0x27b   :  { %2872 = vmatpush2.msra.mxu1 %v2633_v44  ;;  %2778 = vmatprep.subr.mxu0 %v2502_v39  ;;  %v3961_v37 = vadd.f32 %v2003_v55, %v1908_v0  ;;  %v1910_v12 = vpop.f32.mrf.mxu0  ;;  %v2477_v52 = vld [vmem:[#allocation10 + $0x1220] sm:$0xff]  ;;  %v2680_v55 = vrot.slane %v2402_v8, 2 }
 0x27c   :  { %2873 = vmatprep.subr.mxu1 %v2630_v10  ;;  %2779 = vmatpush2.msra.mxu0 %v2501_v23  ;;  %v2005_v7 = vpop.f32.mrf.mxu1  ;;  %v2605_v39 = vld [vmem:[#allocation10 + $0x1620] sm:$0xff]  ;;  %v2474_v10 = vld [vmem:[#allocation10 + $0x1208] sm:$0xff]  ;;  %v2674_v23 = vrot.slane %v2400_v3, 2  ;;  %v2596_v3 = vld [vmem:[#allocation10 + $0x15d8] sm:$0xff] }
 0x27d   :  { %2874 = vmatpush2.msra.mxu1 %v2629_v51  ;;  %2780 = vmatprep.subr.mxu0 %v2498_v46  ;;  %v3963_v13 = vadd.f32 %v2005_v7, %v1910_v12  ;;  %v2602_v51 = vld [vmem:[#allocation10 + $0x1608] sm:$0xff]  ;;  %v2473_v46 = vld [vmem:[#allocation10 + $0x1200] sm:$0xff] }
 0x27e   :  { %2875 = vmatprep.subr.mxu1 %v2626_v63  ;;  %2781 = vmatpush2.msra.mxu0 %v2497_v17  ;;  %v2601_v12 = vld [vmem:[#allocation10 + $0x1600] sm:$0xff] }
 0x27f   :  { %2876 = vmatpush2.msra.mxu1 %v2625_v54  ;;  %2782 = vmatprep.subr.mxu0 %v2494_v18  ;;  %v1914_v16 = vpop.f32.mrf.mxu0  ;;  %v3321_v54 = vld [vmem:[#allocation3 + $0x20] sm:$0xff]  ;;  %v3322_v7 = vld [vmem:[#allocation3 + $0x48] sm:$0xff] }
 0x280   :  { %2877 = vmatprep.subr.mxu1 %v2622_v19  ;;  %2783 = vmatpush2.msra.mxu0 %v2493_v45  ;;  %v2009_v26 = vpop.f32.mrf.mxu1  ;;  %v2675_v18 = vrot.slane %v3321_v54, 2  ;;  %v2688_v19 = vrot.slane %v3322_v7, 2  ;;  %v2588_v54 = vld [vmem:[#allocation10 + $0x1598] sm:$0xff]  ;;  %v2587_v7 = vld [vmem:[#allocation10 + $0x1590] sm:$0xff] }
 0x281   :  { %2878 = vmatpush2.msra.mxu1 %v2621_v24  ;;  %2784 = vmatprep.subr.mxu0 %v2490_v59  ;;  %v3965_v31 = vadd.f32 %v2009_v26, %v1914_v16  ;;  %v1916_v34 = vpop.f32.mrf.mxu0  ;;  %v3323_v24 = vld [vmem:[#allocation3 + $0x30] sm:$0xff]  ;;  %v2600_v26 = vld [vmem:[#allocation10 + $0x15f8] sm:$0xff] }
 0x282   :  { %2879 = vmatprep.subr.mxu1 %v2618_v1  ;;  %2785 = vmatpush2.msra.mxu0 %v2489_v9  ;;  %v2011_v4 = vpop.f32.mrf.mxu1  ;;  %v2681_v59 = vrot.slane %v3323_v24, 2  ;;  %v2472_v1 = vld [vmem:[#allocation10 + $0x11f8] sm:$0xff] }
 0x283   :  { %2880 = vmatpush2.msra.mxu1 %v2617_v33  ;;  %2786 = vmatprep.subr.mxu0 %v2486_v20  ;;  %v3967_v14 = vadd.f32 %v2011_v4, %v1916_v34  ;;  %v3324_v9 = vld [vmem:[#allocation3 + $0x58] sm:$0xff]  ;;  %v3974_v20 = vsel %vm2673_vm5, %v2674_v23, %v2675_v18  ;;  %v3984_v34 = vsel %vm2673_vm5, %v2678_v22, %v2688_v19  ;;  %v3325_v4 = vld [vmem:[#allocation3 + $0x40] sm:$0xff] }
 0x284   :  { %2881 = vmatprep.subr.mxu1 %v2614_v61  ;;  %2787 = vmatpush2.msra.mxu0 %v2485_v29  ;;  %v2692_v16 = vrot.slane %v3324_v9, 2  ;;  %v3978_v61 = vsel %vm2673_vm5, %v2680_v55, %v2681_v59  ;;  %v2471_v29 = vld [vmem:[#allocation10 + $0x11f0] sm:$0xff]  ;;  %v2464_v22 = vld [vmem:[#allocation10 + $0x11b8] sm:$0xff] }
 0x285   :  { %2882 = vmatpush2.msra.mxu1 %v2613_v35  ;;  %2788 = vmatprep.subr.mxu0 %v2482_v2  ;;  %v1920_v44 = vpop.f32.mrf.mxu0  ;;  %v2599_v35 = vld [vmem:[#allocation10 + $0x15f0] sm:$0xff]  ;;  %v2468_v2 = vld [vmem:[#allocation10 + $0x11d8] sm:$0xff] }
 0x286   :  { %2883 = vmatprep.subr.mxu1 %v2610_v28  ;;  %2789 = vmatpush2.msra.mxu0 %v2481_v42  ;;  %v2015_v0 = vpop.f32.mrf.mxu1  ;;  %v2686_v28 = vrot.slane %v3325_v4, 2  ;;  %v3990_v42 = vsel %vm2673_vm5, %v2684_v41, %v2692_v16  ;;  %v2463_v23 = vld [vmem:[#allocation10 + $0x11b0] sm:$0xff]  ;;  %v2460_v55 = vld [vmem:[#allocation10 + $0x1198] sm:$0xff] }
 0x287   :  { %2884 = vmatpush2.msra.mxu1 %v2609_v48  ;;  %2790 = vmatprep.subr.mxu0 %v2478_v36  ;;  %v3969_v63 = vadd.f32 %v2015_v0, %v1920_v44  ;;  %v1922_v17 = vpop.f32.mrf.mxu0  ;;  %v2467_v48 = vld [vmem:[#allocation10 + $0x11d0] sm:$0xff]  ;;  %v2405_v0 = vld [vmem:[#allocation3 + $0x88] sm:$0xf]  ;;  %v2456_v9 = vld [vmem:[#allocation10 + $0x1178] sm:$0xff] }
 0x288   :  { %2885 = vmatprep.subr.mxu1 %v2606_v58  ;;  %2791 = vmatpush2.msra.mxu0 %v2477_v52  ;;  %v2017_v45 = vpop.f32.mrf.mxu1  ;;  %v3326_v36 = vld [vmem:[#allocation3 + $0x50] sm:$0xff]  ;;  %v3994_v58 = vsel %vm2673_vm5, %v2675_v18, %v2686_v28  ;;  %v3327_v52 = vld [vmem:[#allocation3 + $0x68] sm:$0xff] }
 0x289   :  { %2886 = vmatpush2.msra.mxu1 %v2605_v39  ;;  %2792 = vmatprep.subr.mxu0 %v2474_v10  ;;  %v3971_v33 = vadd.f32 %v2017_v45, %v1922_v17  ;;  %v2690_v8 = vrot.slane %v3326_v36, 2  ;;  %v2696_v41 = vrot.slane %v3327_v52, 2  ;;  %v3328_v39 = vld [vmem:[#allocation3 + $0x78] sm:$0xff]  ;;  %v3329_v45 = vld [vmem:[#allocation3 + $0x60] sm:$0xff] }
 0x28a   :  { %2887 = vmatprep.subr.mxu1 %v2602_v51  ;;  %2793 = vmatpush2.msra.mxu0 %v2473_v46  ;;  %v2700_v10 = vrot.slane %v3328_v39, 2  ;;  %v2591_v46 = vld [vmem:[#allocation10 + $0x15b0] sm:$0xff]  ;;  %v2694_v24 = vrot.slane %v3329_v45, 2  ;;  %v2448_v39 = vld [vmem:[#allocation10 + $0x1138] sm:$0xff] }
 0x28b   :  { %2888 = vmatpush2.msra.mxu1 %v2601_v12  ;;  %2795 = vmatmul.mubr.f32.vlgmr.msra.gmra.mxu0 %v3974_v20  ;;  %v3998_v44 = vsel %vm2673_vm5, %v2681_v59, %v2690_v8  ;;  %v4002_v51 = vsel %vm2673_vm5, %v2688_v19, %v2696_v41  ;;  %v2407_v17 = vld [vmem:[#allocation3 + $0x98] sm:$0xf]  ;;  %v4009_v59 = vrot.slane %v2405_v0, 2  ;;  %v3330_v19 = vld [vmem:[#allocation3 + $0x70] sm:$0xff]  ;;  %v2576_v0 = vld [vmem:[#allocation10 + $0x1538] sm:$0xff] }
 0x28c   :  { %2890 = vmatmul.mubr.f32.vlgmr.msra.gmra.mxu1 %v3978_v61  ;;  %2920 = vmatprep.subr.mxu0 %v2472_v1  ;;  %v4006_v12 = vsel %vm2673_vm5, %v2692_v16, %v2700_v10  ;;  %v2459_v18 = vld [vmem:[#allocation10 + $0x1190] sm:$0xff]  ;;  %v2698_v1 = vrot.slane %v3330_v19, 2  ;;  %v4014_v16 = vsel %vm2673_vm5, %v2686_v28, %v2694_v24  ;;  %v2440_v45 = vld [vmem:[#allocation10 + $0x10f8] sm:$0xff] }
 0x28d   :  { %3015 = vmatprep.subr.mxu1 %v2600_v26  ;;  %2800 = vmatprep.mubr.f32.mxu0 %v3984_v34  ;;  %v4011_v26 = vrot.slane %v2407_v17, 2  ;;  %v2583_v36 = vld [vmem:[#allocation10 + $0x1570] sm:$0xff]  ;;  %v2444_v17 = vld [vmem:[#allocation10 + $0x1118] sm:$0xff] }
 0x28e   :  { %2895 = vmatprep.mubr.f32.mxu1 %v3990_v42  ;;  %2921 = vmatpush1.msra.mxu0 %v2471_v29  ;;  %v2404_v29 = vld [vmem:[#allocation3 + $0x80] sm:$0xf]  ;;  %v4018_v4 = vsel %vm2673_vm5, %v2690_v8, %v2698_v1  ;;  %v2439_v19 = vld [vmem:[#allocation10 + $0x10f0] sm:$0xff] }
 0x28f   :  { %3016 = vmatpush1.msra.mxu1 %v2599_v35  ;;  %2922 = vmatprep.subr.mxu0 %v2468_v2  ;;  %v2584_v35 = vld [vmem:[#allocation10 + $0x1578] sm:$0xff]  ;;  %v2406_v2 = vld [vmem:[#allocation3 + $0x90] sm:$0xf]  ;;  %v4025_v28 = vrot.slane %v2404_v29, 2 }
 0x290   :  { %3017 = vmatprep.subr.mxu1 %v2596_v3  ;;  %2923 = vmatpush1.msra.mxu0 %v2467_v48  ;;  %v2455_v3 = vld [vmem:[#allocation10 + $0x1170] sm:$0xff]  ;;  %v4023_v48 = vsel %vm2673_vm5, %v2696_v41, %v4009_v59  ;;  %v2580_v8 = vld [vmem:[#allocation10 + $0x1558] sm:$0xff]  ;;  %v4032_v52 = vrot.slane %v2406_v2, 2 }
 0x291   :  { %3018 = vmatpush1.msra.mxu1 %v2595_v50  ;;  %2801 = vmatmul.mubr.f32.gmra.mxu0 %v3994_v58  ;;  %v2452_v50 = vld [vmem:[#allocation10 + $0x1158] sm:$0xff]  ;;  %v2579_v41 = vld [vmem:[#allocation10 + $0x1550] sm:$0xff] }
 0x292   :  { %2896 = vmatmul.mubr.f32.gmra.mxu1 %v3998_v44  ;;  %2924 = vmatprep.subr.mxu0 %v2464_v22  ;;  %v4030_v22 = vsel %vm2673_vm5, %v2700_v10, %v4011_v26  ;;  %v4042_v10 = vsel %vm2673_vm5, %v2698_v1, %v4032_v52  ;;  %v2567_v1 = vld [vmem:[#allocation10 + $0x14f0] sm:$0xff]  ;;  %v2564_v29 = vld [vmem:[#allocation10 + $0x14d8] sm:$0xff] }
 0x293   :  { %3019 = vmatprep.subr.mxu1 %v2592_v40  ;;  %2806 = vmatprep.mubr.f32.mxu0 %v4002_v51  ;;  %v2451_v40 = vld [vmem:[#allocation10 + $0x1150] sm:$0xff] }
 0x294   :  { %2901 = vmatprep.mubr.f32.mxu1 %v4006_v12  ;;  %2925 = vmatpush1.msra.mxu0 %v2463_v23  ;;  %v4037_v23 = vsel %vm2673_vm5, %v2694_v24, %v4025_v28  ;;  %v2568_v24 = vld [vmem:[#allocation10 + $0x14f8] sm:$0xff]  ;;  %v2563_v2 = vld [vmem:[#allocation10 + $0x14d0] sm:$0xff] }
 0x295   :  { %3020 = vmatpush1.msra.mxu1 %v2591_v46  ;;  %2926 = vmatprep.subr.mxu0 %v2460_v55  ;;  %v2447_v46 = vld [vmem:[#allocation10 + $0x1130] sm:$0xff] }
 0x296   :  { %3021 = vmatprep.subr.mxu1 %v2588_v54  ;;  %2927 = vmatpush1.msra.mxu0 %v2459_v18  ;;  %v2575_v55 = vld [vmem:[#allocation10 + $0x1530] sm:$0xff]  ;;  %v2572_v54 = vld [vmem:[#allocation10 + $0x1518] sm:$0xff] }
 0x297   :  { %3022 = vmatpush1.msra.mxu1 %v2587_v7  ;;  %2807 = vmatmul.mubr.f32.gmra.mxu0 %v4014_v16  ;;  %v2443_v18 = vld [vmem:[#allocation10 + $0x1110] sm:$0xff] }
 0x298   :  { %2902 = vmatmul.mubr.f32.gmra.mxu1 %v4018_v4  ;;  %2928 = vmatprep.subr.mxu0 %v2456_v9  ;;  %v2571_v7 = vld [vmem:[#allocation10 + $0x1510] sm:$0xff]  ;;  %v2436_v9 = vld [vmem:[#allocation10 + $0x10d8] sm:$0xff] }
 0x299   :  { %3023 = vmatprep.subr.mxu1 %v2584_v35  ;;  %2812 = vmatprep.mubr.f32.mxu0 %v4023_v48  ;;  %v2435_v35 = vld [vmem:[#allocation10 + $0x10d0] sm:$0xff] }
 0x29a   :  { %2907 = vmatprep.mubr.f32.mxu1 %v4030_v22  ;;  %2929 = vmatpush1.msra.mxu0 %v2455_v3  ;;  %v2432_v3 = vld [vmem:[#allocation10 + $0x10b8] sm:$0xff] }
 0x29b   :  { %3024 = vmatpush1.msra.mxu1 %v2583_v36  ;;  %2930 = vmatprep.subr.mxu0 %v2452_v50  ;;  %v2560_v36 = vld [vmem:[#allocation10 + $0x14b8] sm:$0xff]  ;;  %v2431_v50 = vld [vmem:[#allocation10 + $0x10b0] sm:$0xff] }
 0x29c   :  { %3025 = vmatprep.subr.mxu1 %v2580_v8  ;;  %2931 = vmatpush1.msra.mxu0 %v2451_v40  ;;  %v2559_v8 = vld [vmem:[#allocation10 + $0x14b0] sm:$0xff]  ;;  %v2428_v40 = vld [vmem:[#allocation10 + $0x1098] sm:$0xff] }
 0x29d   :  { %3026 = vmatpush1.msra.mxu1 %v2579_v41  ;;  %2813 = vmatmul.mubr.f32.gmra.mxu0 %v4037_v23  ;;  %v2556_v41 = vld [vmem:[#allocation10 + $0x1498] sm:$0xff] }
 0x29e   :  { %2908 = vmatmul.mubr.f32.gmra.mxu1 %v4042_v10  ;;  %2932 = vmatprep.subr.mxu0 %v2448_v39  ;;  %v2427_v39 = vld [vmem:[#allocation10 + $0x1090] sm:$0xff] }
 0x29f   :  { %3027 = vmatprep.subr.mxu1 %v2576_v0  ;;  %2818 = vmatprep.mubr.f32.mxu0 %v4009_v59  ;;  %v2555_v0 = vld [vmem:[#allocation10 + $0x1490] sm:$0xff] }
 0x2a0   :  { %2913 = vmatprep.mubr.f32.mxu1 %v4011_v26  ;;  %2933 = vmatpush1.msra.mxu0 %v2447_v46  ;;  %v2552_v46 = vld [vmem:[#allocation10 + $0x1478] sm:$0xff] }
 0x2a1   :  { %3028 = vmatpush1.msra.mxu1 %v2575_v55  ;;  %2934 = vmatprep.subr.mxu0 %v2444_v17  ;;  %v2423_v55 = vld [vmem:[#allocation10 + $0x1070] sm:$0xff]  ;;  %v2420_v17 = vld [vmem:[#allocation10 + $0x1058] sm:$0xff] }
 0x2a2   :  { %3029 = vmatprep.subr.mxu1 %v2572_v54  ;;  %2935 = vmatpush1.msra.mxu0 %v2443_v18  ;;  %v2548_v54 = vld [vmem:[#allocation10 + $0x1458] sm:$0xff]  ;;  %v2419_v18 = vld [vmem:[#allocation10 + $0x1050] sm:$0xff] }
 0x2a3   :  { %3030 = vmatpush1.msra.mxu1 %v2571_v7  ;;  %2819 = vmatmul.mubr.f32.gmra.mxu0 %v4025_v28  ;;  %v2547_v7 = vld [vmem:[#allocation10 + $0x1450] sm:$0xff] }
 0x2a4   :  { %2914 = vmatmul.mubr.f32.gmra.mxu1 %v4032_v52  ;;  %2936 = vmatprep.subr.mxu0 %v2440_v45  ;;  %v2416_v45 = vld [vmem:[#allocation10 + $0x1038] sm:$0xff] }
 0x2a5   :  { %3031 = vmatprep.subr.mxu1 %v2568_v24  ;;  %2937 = vmatpush1.msra.mxu0 %v2439_v19  ;;  %v2544_v24 = vld [vmem:[#allocation10 + $0x1438] sm:$0xff]  ;;  %v2415_v19 = vld [vmem:[#allocation10 + $0x1030] sm:$0xff] }
 0x2a6   :  { %2984 = vmatprep.mubr.f32.mxu0 %v3944_v6  ;;  %3032 = vmatpush1.msra.mxu1 %v2567_v1  ;;  %v2424_v6 = vld [vmem:[#allocation10 + $0x1078] sm:$0xff]  ;;  %v2543_v1 = vld [vmem:[#allocation10 + $0x1430] sm:$0xff] }
 0x2a7   :  { %3079 = vmatprep.mubr.f32.mxu1 %v3950_v62  ;;  %2938 = vmatprep.subr.mxu0 %v2436_v9  ;;  %v2551_v62 = vld [vmem:[#allocation10 + $0x1470] sm:$0xff]  ;;  %v2412_v9 = vld [vmem:[#allocation10 + $0x1018] sm:$0xff] }
 0x2a8   :  { %3033 = vmatprep.subr.mxu1 %v2564_v29  ;;  %2939 = vmatpush1.msra.mxu0 %v2435_v35  ;;  %v2540_v29 = vld [vmem:[#allocation10 + $0x1418] sm:$0xff]  ;;  %v2411_v35 = vld [vmem:[#allocation10 + $0x1010] sm:$0xff] }
 0x2a9   :  { %3034 = vmatpush1.msra.mxu1 %v2563_v2  ;;  %2940 = vmatprep.subr.mxu0 %v2432_v3  ;;  %v2539_v2 = vld [vmem:[#allocation10 + $0x1410] sm:$0xff]  ;;  %v2536_v3 = vld [vmem:[#allocation10 + $0x13f8] sm:$0xff] }
 0x2aa   :  { %3035 = vmatprep.subr.mxu1 %v2560_v36  ;;  %2941 = vmatpush1.msra.mxu0 %v2431_v50  ;;  %v2664_v36 = vld [vmem:[#allocation10 + $0x17f8] sm:$0xff]  ;;  %v2535_v50 = vld [vmem:[#allocation10 + $0x13f0] sm:$0xff] }
 0x2ab   :  { %3036 = vmatpush1.msra.mxu1 %v2559_v8  ;;  %2942 = vmatprep.subr.mxu0 %v2428_v40  ;;  %v2663_v8 = vld [vmem:[#allocation10 + $0x17f0] sm:$0xff]  ;;  %v2532_v40 = vld [vmem:[#allocation10 + $0x13d8] sm:$0xff] }
 0x2ac   :  { %3037 = vmatprep.subr.mxu1 %v2556_v41  ;;  %2943 = vmatpush1.msra.mxu0 %v2427_v39  ;;  %v2660_v41 = vld [vmem:[#allocation10 + $0x17d8] sm:$0xff]  ;;  %v2531_v39 = vld [vmem:[#allocation10 + $0x13d0] sm:$0xff] }
 0x2ad   :  { %3038 = vmatpush1.msra.mxu1 %v2555_v0  ;;  %2944 = vmatprep.subr.mxu0 %v2424_v6  ;;  %v2659_v0 = vld [vmem:[#allocation10 + $0x17d0] sm:$0xff]  ;;  %v2528_v6 = vld [vmem:[#allocation10 + $0x13b8] sm:$0xff] }
 0x2ae   :  { %3039 = vmatprep.subr.mxu1 %v2552_v46  ;;  %2945 = vmatpush1.msra.mxu0 %v2423_v55  ;;  %v2656_v46 = vld [vmem:[#allocation10 + $0x17b8] sm:$0xff]  ;;  %v2527_v55 = vld [vmem:[#allocation10 + $0x13b0] sm:$0xff] }
 0x2af   :  { %3040 = vmatpush1.msra.mxu1 %v2551_v62  ;;  %2946 = vmatprep.subr.mxu0 %v2420_v17  ;;  %v2655_v62 = vld [vmem:[#allocation10 + $0x17b0] sm:$0xff]  ;;  %v2524_v17 = vld [vmem:[#allocation10 + $0x1398] sm:$0xff] }
 0x2b0   :  { %3041 = vmatprep.subr.mxu1 %v2548_v54  ;;  %2947 = vmatpush1.msra.mxu0 %v2419_v18  ;;  %v2652_v54 = vld [vmem:[#allocation10 + $0x1798] sm:$0xff]  ;;  %v2523_v18 = vld [vmem:[#allocation10 + $0x1390] sm:$0xff] }
 0x2b1   :  { %3042 = vmatpush1.msra.mxu1 %v2547_v7  ;;  %2948 = vmatprep.subr.mxu0 %v2416_v45  ;;  %v2651_v7 = vld [vmem:[#allocation10 + $0x1790] sm:$0xff]  ;;  %v2520_v45 = vld [vmem:[#allocation10 + $0x1378] sm:$0xff] }
 0x2b2   :  { %3043 = vmatprep.subr.mxu1 %v2544_v24  ;;  %2949 = vmatpush1.msra.mxu0 %v2415_v19  ;;  %v2648_v24 = vld [vmem:[#allocation10 + $0x1778] sm:$0xff]  ;;  %v2519_v19 = vld [vmem:[#allocation10 + $0x1370] sm:$0xff] }
 0x2b3   :  { %3044 = vmatpush1.msra.mxu1 %v2543_v1  ;;  %2950 = vmatprep.subr.mxu0 %v2412_v9  ;;  %v2647_v1 = vld [vmem:[#allocation10 + $0x1770] sm:$0xff]  ;;  %v2516_v9 = vld [vmem:[#allocation10 + $0x1358] sm:$0xff] }
 0x2b4   :  { %3045 = vmatprep.subr.mxu1 %v2540_v29  ;;  %2951 = vmatpush1.msra.mxu0 %v2411_v35  ;;  %v2644_v29 = vld [vmem:[#allocation10 + $0x1758] sm:$0xff]  ;;  %v2515_v35 = vld [vmem:[#allocation10 + $0x1350] sm:$0xff] }
 0x2b5   :  { %3046 = vmatpush1.msra.mxu1 %v2539_v2  ;;  %2952 = vmatprep.subr.mxu0 %v2536_v3  ;;  %v2643_v2 = vld [vmem:[#allocation10 + $0x1750] sm:$0xff]  ;;  %v2512_v3 = vld [vmem:[#allocation10 + $0x1338] sm:$0xff] }
 0x2b6   :  { %3047 = vmatprep.subr.mxu1 %v2664_v36  ;;  %2953 = vmatpush2.msra.mxu0 %v2535_v50  ;;  %v2640_v36 = vld [vmem:[#allocation10 + $0x1738] sm:$0xff]  ;;  %v2511_v50 = vld [vmem:[#allocation10 + $0x1330] sm:$0xff] }
 0x2b7   :  { %3048 = vmatpush2.msra.mxu1 %v2663_v8  ;;  %2954 = vmatprep.subr.mxu0 %v2532_v40  ;;  %v2639_v8 = vld [vmem:[#allocation10 + $0x1730] sm:$0xff]  ;;  %v2508_v40 = vld [vmem:[#allocation10 + $0x1318] sm:$0xff] }
 0x2b8   :  { %3049 = vmatprep.subr.mxu1 %v2660_v41  ;;  %2955 = vmatpush2.msra.mxu0 %v2531_v39  ;;  %v2636_v41 = vld [vmem:[#allocation10 + $0x1718] sm:$0xff]  ;;  %v2507_v39 = vld [vmem:[#allocation10 + $0x1310] sm:$0xff] }
 0x2b9   :  { %3050 = vmatpush2.msra.mxu1 %v2659_v0  ;;  %2956 = vmatprep.subr.mxu0 %v2528_v6  ;;  %v2635_v0 = vld [vmem:[#allocation10 + $0x1710] sm:$0xff]  ;;  %v2504_v6 = vld [vmem:[#allocation10 + $0x12f8] sm:$0xff] }
 0x2ba   :  { %3051 = vmatprep.subr.mxu1 %v2656_v46  ;;  %2957 = vmatpush2.msra.mxu0 %v2527_v55  ;;  %v2632_v46 = vld [vmem:[#allocation10 + $0x16f8] sm:$0xff]  ;;  %v2503_v55 = vld [vmem:[#allocation10 + $0x12f0] sm:$0xff] }
 0x2bb   :  { %3052 = vmatpush2.msra.mxu1 %v2655_v62  ;;  %2958 = vmatprep.subr.mxu0 %v2524_v17  ;;  %v2631_v62 = vld [vmem:[#allocation10 + $0x16f0] sm:$0xff]  ;;  %v2500_v17 = vld [vmem:[#allocation10 + $0x12d8] sm:$0xff] }
 0x2bc   :  { %3053 = vmatprep.subr.mxu1 %v2652_v54  ;;  %2959 = vmatpush2.msra.mxu0 %v2523_v18  ;;  %v2628_v54 = vld [vmem:[#allocation10 + $0x16d8] sm:$0xff]  ;;  %v2499_v18 = vld [vmem:[#allocation10 + $0x12d0] sm:$0xff] }
 0x2bd   :  { %3054 = vmatpush2.msra.mxu1 %v2651_v7  ;;  %2960 = vmatprep.subr.mxu0 %v2520_v45  ;;  %v2627_v7 = vld [vmem:[#allocation10 + $0x16d0] sm:$0xff]  ;;  %v2496_v45 = vld [vmem:[#allocation10 + $0x12b8] sm:$0xff] }
 0x2be   :  { %3055 = vmatprep.subr.mxu1 %v2648_v24  ;;  %2961 = vmatpush2.msra.mxu0 %v2519_v19  ;;  %v2624_v24 = vld [vmem:[#allocation10 + $0x16b8] sm:$0xff]  ;;  %v2495_v19 = vld [vmem:[#allocation10 + $0x12b0] sm:$0xff] }
 0x2bf   :  { %3056 = vmatpush2.msra.mxu1 %v2647_v1  ;;  %2962 = vmatprep.subr.mxu0 %v2516_v9  ;;  %v2623_v1 = vld [vmem:[#allocation10 + $0x16b0] sm:$0xff]  ;;  %v2492_v9 = vld [vmem:[#allocation10 + $0x1298] sm:$0xff] }
 0x2c0   :  { %3057 = vmatprep.subr.mxu1 %v2644_v29  ;;  %2963 = vmatpush2.msra.mxu0 %v2515_v35  ;;  %v2620_v29 = vld [vmem:[#allocation10 + $0x1698] sm:$0xff]  ;;  %v2491_v35 = vld [vmem:[#allocation10 + $0x1290] sm:$0xff] }
 0x2c1   :  { %3058 = vmatpush2.msra.mxu1 %v2643_v2  ;;  %2964 = vmatprep.subr.mxu0 %v2512_v3  ;;  %v2619_v2 = vld [vmem:[#allocation10 + $0x1690] sm:$0xff]  ;;  %v2488_v3 = vld [vmem:[#allocation10 + $0x1278] sm:$0xff] }
 0x2c2   :  { %3059 = vmatprep.subr.mxu1 %v2640_v36  ;;  %2965 = vmatpush2.msra.mxu0 %v2511_v50  ;;  %v2616_v36 = vld [vmem:[#allocation10 + $0x1678] sm:$0xff]  ;;  %v2487_v50 = vld [vmem:[#allocation10 + $0x1270] sm:$0xff] }
 0x2c3   :  { %3060 = vmatpush2.msra.mxu1 %v2639_v8  ;;  %2966 = vmatprep.subr.mxu0 %v2508_v40  ;;  %v2615_v8 = vld [vmem:[#allocation10 + $0x1670] sm:$0xff]  ;;  %v2484_v40 = vld [vmem:[#allocation10 + $0x1258] sm:$0xff] }
 0x2c4   :  { %3061 = vmatprep.subr.mxu1 %v2636_v41  ;;  %2967 = vmatpush2.msra.mxu0 %v2507_v39  ;;  %v2612_v41 = vld [vmem:[#allocation10 + $0x1658] sm:$0xff]  ;;  %v2483_v39 = vld [vmem:[#allocation10 + $0x1250] sm:$0xff] }
 0x2c5   :  { %3062 = vmatpush2.msra.mxu1 %v2635_v0  ;;  %2968 = vmatprep.subr.mxu0 %v2504_v6  ;;  %v2611_v0 = vld [vmem:[#allocation10 + $0x1650] sm:$0xff]  ;;  %v2480_v6 = vld [vmem:[#allocation10 + $0x1238] sm:$0xff] }
 0x2c6   :  { %3063 = vmatprep.subr.mxu1 %v2632_v46  ;;  %2969 = vmatpush2.msra.mxu0 %v2503_v55  ;;  %v2608_v46 = vld [vmem:[#allocation10 + $0x1638] sm:$0xff]  ;;  %v2479_v55 = vld [vmem:[#allocation10 + $0x1230] sm:$0xff] }
 0x2c7   :  { %3064 = vmatpush2.msra.mxu1 %v2631_v62  ;;  %2970 = vmatprep.subr.mxu0 %v2500_v17  ;;  %v2607_v62 = vld [vmem:[#allocation10 + $0x1630] sm:$0xff]  ;;  %v2476_v17 = vld [vmem:[#allocation10 + $0x1218] sm:$0xff] }
 0x2c8   :  { %3065 = vmatprep.subr.mxu1 %v2628_v54  ;;  %2971 = vmatpush2.msra.mxu0 %v2499_v18  ;;  %v2604_v54 = vld [vmem:[#allocation10 + $0x1618] sm:$0xff]  ;;  %v2475_v18 = vld [vmem:[#allocation10 + $0x1210] sm:$0xff] }
 0x2c9   :  { %3066 = vmatpush2.msra.mxu1 %v2627_v7  ;;  %2972 = vmatprep.subr.mxu0 %v2496_v45  ;;  %v2603_v7 = vld [vmem:[#allocation10 + $0x1610] sm:$0xff]  ;;  %v4058_v45 = vpop.f32.mrf.mxu0 }
 0x2ca   :  { %3067 = vmatprep.subr.mxu1 %v2624_v24  ;;  %2973 = vmatpush2.msra.mxu0 %v2495_v19  ;;  %v4061_v24 = vpop.f32.mrf.mxu1 }
 0x2cb   :  { %3068 = vmatpush2.msra.mxu1 %v2623_v1  ;;  %2974 = vmatprep.subr.mxu0 %v2492_v9 }
 0x2cc   :  { %3069 = vmatprep.subr.mxu1 %v2620_v29  ;;  %2975 = vmatpush2.msra.mxu0 %v2491_v35 }
 0x2cd   :  { %3070 = vmatpush2.msra.mxu1 %v2619_v2  ;;  %2976 = vmatprep.subr.mxu0 %v2488_v3 }
 0x2ce   :  { %3071 = vmatprep.subr.mxu1 %v2616_v36  ;;  %2977 = vmatpush2.msra.mxu0 %v2487_v50 }
 0x2cf   :  { %3072 = vmatpush2.msra.mxu1 %v2615_v8  ;;  %2978 = vmatprep.subr.mxu0 %v2484_v40 }
 0x2d0   :  { %3073 = vmatprep.subr.mxu1 %v2612_v41  ;;  %2979 = vmatpush2.msra.mxu0 %v2483_v39 }
 0x2d1   :  { %3074 = vmatpush2.msra.mxu1 %v2611_v0  ;;  %2980 = vmatprep.subr.mxu0 %v2480_v6 }
 0x2d2   :  { %3075 = vmatprep.subr.mxu1 %v2608_v46  ;;  %2981 = vmatpush2.msra.mxu0 %v2479_v55 }
 0x2d3   :  { %3076 = vmatpush2.msra.mxu1 %v2607_v62  ;;  %2982 = vmatprep.subr.mxu0 %v2476_v17 }
 0x2d4   :  { %3077 = vmatprep.subr.mxu1 %v2604_v54  ;;  %2983 = vmatpush2.msra.mxu0 %v2475_v18 }
 0x2d5   :  { %3078 = vmatpush2.msra.mxu1 %v2603_v7  ;;  %2985 = vmatmul.mubr.f32.vlgmr.msra.gmra.mxu0 %v3974_v20  ;;  %v4066_v20 = vpop.f32.mrf.mxu0 }
 0x2d6   :  { %3080 = vmatmul.mubr.f32.vlgmr.msra.gmra.mxu1 %v3978_v61  ;;  %2990 = vmatprep.mubr.f32.mxu0 %v3984_v34  ;;  %v4069_v61 = vpop.f32.mrf.mxu1 }
 0x2d7   :  { %3085 = vmatprep.mubr.f32.mxu1 %v3990_v42  ;;  %v4074_v34 = vpop.f32.mrf.mxu0 }
 0x2d8   :  { %v4077_v42 = vpop.f32.mrf.mxu1 }
 0x2d9   :  { %2991 = vmatmul.mubr.f32.gmra.mxu0 %v3994_v58  ;;  %v4081_v58 = vpop.f32.mrf.mxu0 }
 0x2da   :  { %3086 = vmatmul.mubr.f32.gmra.mxu1 %v3998_v44  ;;  %2996 = vmatprep.mubr.f32.mxu0 %v4002_v51  ;;  %v4083_v44 = vpop.f32.mrf.mxu1 }
 0x2db   :  { %3091 = vmatprep.mubr.f32.mxu1 %v4006_v12  ;;  %v4085_v51 = vpop.f32.mrf.mxu0 }
 0x2dc   :  { %v4087_v12 = vpop.f32.mrf.mxu1 }
 0x2dd   :  { %2997 = vmatmul.mubr.f32.gmra.mxu0 %v4014_v16  ;;  %v4089_v16 = vpop.f32.mrf.mxu0 }
 0x2de   :  { %3092 = vmatmul.mubr.f32.gmra.mxu1 %v4018_v4  ;;  %3002 = vmatprep.mubr.f32.mxu0 %v4023_v48 }
 0x2df   :  { %3097 = vmatprep.mubr.f32.mxu1 %v4030_v22  ;;  %v4093_v4 = vpop.f32.mrf.mxu0 }
 0x2e1   :  { %3003 = vmatmul.mubr.f32.gmra.mxu0 %v4037_v23  ;;  %v4097_v48 = vpop.f32.mrf.mxu0 }
 0x2e2   :  { %3098 = vmatmul.mubr.f32.gmra.mxu1 %v4042_v10  ;;  %3008 = vmatprep.mubr.f32.mxu0 %v4009_v59  ;;  %v4091_v59 = vpop.f32.mrf.mxu1 }
 0x2e3   :  { %3103 = vmatprep.mubr.f32.mxu1 %v4011_v26  ;;  %v4101_v22 = vpop.f32.mrf.mxu0 }
 0x2e4   :  { %v4095_v26 = vpop.f32.mrf.mxu1 }
 0x2e5   :  { %3009 = vmatmul.mubr.f32.gmra.mxu0 %v4025_v28  ;;  %v4105_v23 = vpop.f32.mrf.mxu0 }
 0x2e6   :  { %3104 = vmatmul.mubr.f32.gmra.mxu1 %v4032_v52  ;;  %v4099_v28 = vpop.f32.mrf.mxu1 }
 0x2e8   :  { %v4103_v52 = vpop.f32.mrf.mxu1 }
 0x2ea   :  { %v4107_v10 = vpop.f32.mrf.mxu1 }
 0x301   :  { %v2276_v19 = vpop.f32.mrf.mxu0 }
 0x302   :  { %v2277_v1 = vadd.f32 %v2276_v19, %v3953_v60  ;;  %v2371_v9 = vpop.f32.mrf.mxu1 }
 0x303   :  { %v2278_v29 = vpop.f32.mrf.mxu0 }
 0x304   :  { %v4110_v35 = vadd.f32 %v2371_v9, %v2277_v1  ;;  %v2279_v2 = vadd.f32 %v2278_v29, %v3955_v27  ;;  %v2373_v3 = vpop.f32.mrf.mxu1 }
 0x306   :  { %v4113_v36 = vadd.f32 %v2373_v3, %v2279_v2 }
 0x307   :  { %v2282_v50 = vpop.f32.mrf.mxu0 }
 0x308   :  { %v2283_v8 = vadd.f32 %v2282_v50, %v3957_v47  ;;  %v2377_v40 = vpop.f32.mrf.mxu1 }
 0x309   :  { %v2284_v41 = vpop.f32.mrf.mxu0 }
 0x30a   :  { %v4116_v39 = vadd.f32 %v2377_v40, %v2283_v8  ;;  %v2285_v0 = vadd.f32 %v2284_v41, %v3959_v53  ;;  %v2379_v6 = vpop.f32.mrf.mxu1 }
 0x30c   :  { %v4119_v60 = vadd.f32 %v2379_v6, %v2285_v0  ;;  %v2087_v6 = vadd.f32 %v4058_v45, %v3901_v5  ;;  %v2093_v5 = vadd.f32 %v4074_v34, %v3905_v57 }
 0x30d   :  { %v2288_v46 = vpop.f32.mrf.mxu0 }
 0x30e   :  { %v2289_v55 = vadd.f32 %v2288_v46, %v3961_v37  ;;  %v2383_v62 = vpop.f32.mrf.mxu1  ;;  %v4143_v46 = vld [vmem:[#allocation12] sm:$0xf] }
 0x30f   :  { %v2290_v27 = vpop.f32.mrf.mxu0 }
 0x310   :  { %v4122_v17 = vadd.f32 %v2383_v62, %v2289_v55  ;;  %v2291_v54 = vadd.f32 %v2290_v27, %v3963_v13  ;;  %v2385_v18 = vpop.f32.mrf.mxu1 }
 0x312   :  { %v4125_v47 = vadd.f32 %v2385_v18, %v2291_v54  ;;  %v4239_v54 = vsub.s32 0, %v3605_v32 }
 0x313   :  { %v2294_v7 = vpop.f32.mrf.mxu0 }
 0x314   :  { %v2295_v19 = vadd.f32 %v2294_v7, %v3965_v31  ;;  %v2389_v1 = vpop.f32.mrf.mxu1 }
 0x315   :  { %v2296_v53 = vpop.f32.mrf.mxu0 }
 0x316   :  { %v4128_v9 = vadd.f32 %v2389_v1, %v2295_v19  ;;  %v2297_v29 = vadd.f32 %v2296_v53, %v3967_v14  ;;  %v2391_v2 = vpop.f32.mrf.mxu1  ;;  %v2089_v14 = vadd.f32 %v4066_v20, %v3903_v49  ;;  %v4240_v20 = vsub.s32 1, %v3605_v32 }
 0x318   :  { %v4131_v37 = vadd.f32 %v2391_v2, %v2297_v29  ;;  %v2184_v7 = vadd.f32 %v4069_v61, %v2089_v14  ;;  %v4157_v1 = vrot.slane %v4143_v46, %v4240_v20  ;;  %v2188_v61 = vadd.f32 %v4077_v42, %v2093_v5 }
 0x319   :  { %v2300_v3 = vpop.f32.mrf.mxu0  ;;  %v2101_v14 = vadd.f32 %v4089_v16, %v3911_v43 }
 0x31a   :  { %v2301_v50 = vadd.f32 %v2300_v3, %v3969_v63  ;;  %v2395_v8 = vpop.f32.mrf.mxu1  ;;  %v2182_v63 = vadd.f32 %v4061_v24, %v2087_v6  ;;  %v2095_v24 = vadd.f32 %v4081_v58, %v3907_v11 }
 0x31b   :  { %v2302_v13 = vpop.f32.mrf.mxu0 }
 0x31c   :  { %v4134_v40 = vadd.f32 %v2395_v8, %v2301_v50  ;;  %v2303_v41 = vadd.f32 %v2302_v13, %v3971_v33  ;;  %v2397_v0 = vpop.f32.mrf.mxu1  ;;  %v4149_v33 = vrot.slane %v4143_v46, %v4239_v54  ;;  %v2190_v13 = vadd.f32 %v4083_v44, %v2095_v24 }
 0x31e   :  { %v4137_v31 = vadd.f32 %v2397_v0, %v2303_v41  ;;  %v2099_v0 = vadd.f32 %v4085_v51, %v3909_v15  ;;  %v2196_v51 = vadd.f32 %v4091_v59, %v2101_v14 }
 0x34b   :  { %v2796_v55 = vpop.f32.mrf.mxu0 }
 0x34c   :  { %v2891_v62 = vpop.f32.mrf.mxu1 }
 0x34d   :  { %v2892_v27 = vadd.f32 %v2891_v62, %v2796_v55  ;;  %v2798_v18 = vpop.f32.mrf.mxu0 }
 0x34e   :  { %v2893_v19 = vpop.f32.mrf.mxu1 }
 0x34f   :  { %v3110_v49 = vadd.f32 %v2892_v27, %v2182_v63  ;;  %v2894_v45 = vadd.f32 %v2893_v19, %v2798_v18  ;;  %v2194_v27 = vadd.f32 %v4087_v12, %v2099_v0  ;;  %v2105_v19 = vadd.f32 %v4093_v4, %v3913_v56 }
 0x351   :  { %v3152_v53 = vadd.f32 %v4149_v33, %v3110_v49  ;;  %v3111_v29 = vadd.f32 %v2894_v45, %v2184_v7  ;;  %v2802_v2 = vpop.f32.mrf.mxu0  ;;  %v2107_v49 = vadd.f32 %v4097_v48, %v3915_v21  ;;  %v2113_v48 = vadd.f32 %v4105_v23, %v3920_v30 }
 0x352   :  { %v2897_v3 = vpop.f32.mrf.mxu1 }
 0x353   :  { %v3172_v50 = vmax.f32 %v3152_v53, 0.0  ;;  %v3153_v57 = vadd.f32 %v4157_v1, %v3111_v29  ;;  %v2898_v34 = vadd.f32 %v2897_v3, %v2802_v2  ;;  %v2804_v8 = vpop.f32.mrf.mxu0  ;;  %v2200_v53 = vadd.f32 %v4095_v26, %v2105_v19 }
 0x354   :  { %v2899_v41 = vpop.f32.mrf.mxu1  ;;  %v2202_v4 = vadd.f32 %v4099_v28, %v2107_v49  ;;  %v2111_v3 = vadd.f32 %v4101_v22, %v3917_v25  ;;  %v2208_v25 = vadd.f32 %v4107_v10, %v2113_v48 }
 0x355   :  { %3192 = vst [vmem:[#allocation13] sm:$0xff] %v3172_v50  ;;  %v3173_v11 = vmax.f32 %v3153_v57, 0.0  ;;  %v3114_v58 = vadd.f32 %v2898_v34, %v2188_v61  ;;  %v2900_v6 = vadd.f32 %v2899_v41, %v2804_v8 }
 0x356   :  { %v2206_v41 = vadd.f32 %v4103_v52, %v2111_v3 }
 0x357   :  { %3193 = vst [vmem:[#allocation13 + $0x8] sm:$0xff] %v3173_v11  ;;  %v3156_v42 = vadd.f32 %v4149_v33, %v3114_v58  ;;  %v3115_v55 = vadd.f32 %v2900_v6, %v2190_v13  ;;  %v2808_v62 = vpop.f32.mrf.mxu0 }
 0x358   :  { %v2903_v63 = vpop.f32.mrf.mxu1 }
 0x359   :  { %v3176_v44 = vmax.f32 %v3156_v42, 0.0  ;;  %v3157_v54 = vadd.f32 %v4157_v1, %v3115_v55  ;;  %v2904_v18 = vadd.f32 %v2903_v63, %v2808_v62  ;;  %v2810_v15 = vpop.f32.mrf.mxu0 }
 0x35a   :  { %v2905_v7 = vpop.f32.mrf.mxu1 }
 0x35b   :  { %3196 = vst [vmem:[#allocation13 + $0x20] sm:$0xff] %v3176_v44  ;;  %v3177_v43 = vmax.f32 %v3157_v54, 0.0  ;;  %v3118_v16 = vadd.f32 %v2904_v18, %v2194_v27  ;;  %v2906_v5 = vadd.f32 %v2905_v7, %v2810_v15 }
 0x35d   :  { %3197 = vst [vmem:[#allocation13 + $0x28] sm:$0xff] %v3177_v43  ;;  %v3119_v12 = vadd.f32 %v2906_v5, %v2196_v51  ;;  %v2814_v45 = vpop.f32.mrf.mxu0  ;;  %v3160_v20 = vadd.f32 %v4149_v33, %v3118_v16  ;;  %v4241_v5 = vsub.s32 2, %v3605_v32 }
 0x35e   :  { %v2909_v24 = vpop.f32.mrf.mxu1 }
 0x35f   :  { %v2910_v59 = vadd.f32 %v2909_v24, %v2814_v45  ;;  %v2816_v29 = vpop.f32.mrf.mxu0  ;;  %v3161_v2 = vadd.f32 %v4157_v1, %v3119_v12  ;;  %v3180_v50 = vmax.f32 %v3160_v20, 0.0  ;;  %v3143_v49 = vrot.slane %v4143_v46, %v4241_v5 }
 0x360   :  { %v2911_v56 = vpop.f32.mrf.mxu1  ;;  %v3147_v24 = vrot.slane %v4143_v46, %v864_v38 }
 0x361   :  { %v3122_v61 = vadd.f32 %v2910_v59, %v2200_v53  ;;  %v2912_v21 = vadd.f32 %v2911_v56, %v2816_v29  ;;  %v3181_v8 = vmax.f32 %v3161_v2, 0.0  ;;  %v3212_v22 = vrot.slane %v3180_v50, 2 }
 0x363   :  { %v3164_v57 = vadd.f32 %v4149_v33, %v3122_v61  ;;  %v3123_v34 = vadd.f32 %v2912_v21, %v2202_v4  ;;  %v2820_v26 = vpop.f32.mrf.mxu0  ;;  %v3215_v55 = vrot.slane %v3181_v8, 2 }
 0x364   :  { %v2915_v13 = vpop.f32.mrf.mxu1 }
 0x365   :  { %v3184_v0 = vmax.f32 %v3164_v57, 0.0  ;;  %v3165_v28 = vadd.f32 %v4157_v1, %v3123_v34  ;;  %v2916_v11 = vadd.f32 %v2915_v13, %v2820_v26  ;;  %v2822_v58 = vpop.f32.mrf.mxu0 }
 0x366   :  { %v2917_v6 = vpop.f32.mrf.mxu1 }
 0x367   :  { %v3213_v14 = vrot.slane %v3184_v0, 2  ;;  %v3185_v30 = vmax.f32 %v3165_v28, 0.0  ;;  %v3126_v23 = vadd.f32 %v2916_v11, %v2206_v41  ;;  %v2918_v42 = vadd.f32 %v2917_v6, %v2822_v58 }
 0x369   :  { %v3214_v62 = vsel %vm2673_vm5, %v3212_v22, %v3213_v14  ;;  %v3216_v63 = vrot.slane %v3185_v30, 2  ;;  %v3168_v27 = vadd.f32 %v4149_v33, %v3126_v23  ;;  %v3127_v52 = vadd.f32 %v2918_v42, %v2208_v25 }
 0x36a   :  { %3241 = vst [vmem:[#allocation13 + $0x40] sm:$0xff] %v3214_v62 }
 0x36b   :  { %v3217_v44 = vsel %vm2673_vm5, %v3215_v55, %v3216_v63  ;;  %v3188_v54 = vmax.f32 %v3168_v27, 0.0  ;;  %v3169_v18 = vadd.f32 %v4157_v1, %v3127_v52 }
 0x36c   :  { %3242 = vst [vmem:[#allocation13 + $0x48] sm:$0xff] %v3217_v44 }
 0x36d   :  { %v3224_v10 = vrot.slane %v3188_v54, 2  ;;  %v3189_v15 = vmax.f32 %v3169_v18, 0.0 }
 0x36f   :  { %v3225_v51 = vsel %vm2673_vm5, %v3213_v14, %v3224_v10  ;;  %v3226_v7 = vrot.slane %v3189_v15, 2 }
 0x370   :  { %3245 = vst [vmem:[#allocation13 + $0x60] sm:$0xff] %v3225_v51 }
 0x371   :  { %v3227_v19 = vsel %vm2673_vm5, %v3216_v63, %v3226_v7 }
 0x372   :  { %3246 = vst [vmem:[#allocation13 + $0x68] sm:$0xff] %v3227_v19 }
 0x395   :  { %v2986_v43 = vpop.f32.mrf.mxu0 }
 0x396   :  { %v3081_v16 = vpop.f32.mrf.mxu1 }
 0x397   :  { %v3082_v33 = vadd.f32 %v3081_v16, %v2986_v43  ;;  %v2988_v12 = vpop.f32.mrf.mxu0 }
 0x398   :  { %v3083_v45 = vpop.f32.mrf.mxu1 }
 0x399   :  { %v3112_v1 = vadd.f32 %v3082_v33, %v4110_v35  ;;  %v3084_v20 = vadd.f32 %v3083_v45, %v2988_v12  ;;  %v2992_v53 = vpop.f32.mrf.mxu0 }
 0x39a   :  { %v3087_v59 = vpop.f32.mrf.mxu1 }
 0x39b   :  { %v3154_v29 = vadd.f32 %v3143_v49, %v3112_v1  ;;  %v3113_v2 = vadd.f32 %v3084_v20, %v4113_v36  ;;  %v3088_v56 = vadd.f32 %v3087_v59, %v2992_v53  ;;  %v2994_v4 = vpop.f32.mrf.mxu0 }
 0x39c   :  { %v3089_v3 = vpop.f32.mrf.mxu1 }
 0x39d   :  { %v3174_v61 = vmax.f32 %v3154_v29, 0.0  ;;  %v3155_v21 = vadd.f32 %v3147_v24, %v3113_v2  ;;  %v3116_v48 = vadd.f32 %v3088_v56, %v4116_v39  ;;  %v3090_v50 = vadd.f32 %v3089_v3, %v2994_v4  ;;  %v2998_v57 = vpop.f32.mrf.mxu0 }
 0x39e   :  { %v3093_v35 = vpop.f32.mrf.mxu1 }
 0x39f   :  { %3194 = vst [vmem:[#allocation13 + $0x10] sm:$0xff] %v3174_v61  ;;  %v3175_v34 = vmax.f32 %v3155_v21, 0.0  ;;  %v3158_v32 = vadd.f32 %v3143_v49, %v3116_v48  ;;  %v3117_v38 = vadd.f32 %v3090_v50, %v4119_v60  ;;  %v3094_v46 = vadd.f32 %v3093_v35, %v2998_v57  ;;  %v3000_v26 = vpop.f32.mrf.mxu0 }
 0x3a0   :  { %v3095_v8 = vpop.f32.mrf.mxu1 }
 0x3a1   :  { %3195 = vst [vmem:[#allocation13 + $0x18] sm:$0xff] %v3175_v34  ;;  %v3178_v36 = vmax.f32 %v3158_v32, 0.0  ;;  %v3159_v13 = vadd.f32 %v3147_v24, %v3117_v38  ;;  %v3120_v41 = vadd.f32 %v3094_v46, %v4122_v17  ;;  %v3096_v0 = vadd.f32 %v3095_v8, %v3000_v26  ;;  %v3004_v28 = vpop.f32.mrf.mxu0 }
 0x3a2   :  { %v3099_v11 = vpop.f32.mrf.mxu1 }
 0x3a3   :  { %3198 = vst [vmem:[#allocation13 + $0x30] sm:$0xff] %v3178_v36  ;;  %v3179_v39 = vmax.f32 %v3159_v13, 0.0  ;;  %v3162_v58 = vadd.f32 %v3143_v49, %v3120_v41  ;;  %v3121_v25 = vadd.f32 %v3096_v0, %v4125_v47  ;;  %v3100_v22 = vadd.f32 %v3099_v11, %v3004_v28  ;;  %v3006_v6 = vpop.f32.mrf.mxu0 }
 0x3a4   :  { %v3101_v14 = vpop.f32.mrf.mxu1 }
 0x3a5   :  { %3199 = vst [vmem:[#allocation13 + $0x38] sm:$0xff] %v3179_v39  ;;  %v3163_v60 = vadd.f32 %v3147_v24, %v3121_v25  ;;  %v3124_v30 = vadd.f32 %v3100_v22, %v4128_v9  ;;  %v3102_v23 = vadd.f32 %v3101_v14, %v3006_v6  ;;  %v3010_v42 = vpop.f32.mrf.mxu0  ;;  %v3182_v62 = vmax.f32 %v3162_v58, 0.0 }
 0x3a6   :  { %v3105_v55 = vpop.f32.mrf.mxu1 }
 0x3a7   :  { %v3166_v17 = vadd.f32 %v3143_v49, %v3124_v30  ;;  %v3125_v63 = vadd.f32 %v3102_v23, %v4131_v37  ;;  %v3012_v27 = vpop.f32.mrf.mxu0  ;;  %v3106_v52 = vadd.f32 %v3105_v55, %v3010_v42  ;;  %v3183_v54 = vmax.f32 %v3163_v60, 0.0 }
 0x3a8   :  { %v3107_v44 = vpop.f32.mrf.mxu1  ;;  %v3218_v51 = vrot.slane %v3182_v62, 2 }
 0x3a9   :  { %v3186_v18 = vmax.f32 %v3166_v17, 0.0  ;;  %v3167_v47 = vadd.f32 %v3147_v24, %v3125_v63  ;;  %v3108_v10 = vadd.f32 %v3107_v44, %v3012_v27  ;;  %v3128_v15 = vadd.f32 %v3106_v52, %v4134_v40 }
 0x3aa   :  { %v3221_v16 = vrot.slane %v3183_v54, 2 }
 0x3ab   :  { %v3219_v7 = vrot.slane %v3186_v18, 2  ;;  %v3187_v19 = vmax.f32 %v3167_v47, 0.0  ;;  %v3129_v9 = vadd.f32 %v3108_v10, %v4137_v31  ;;  %v3170_v43 = vadd.f32 %v3143_v49, %v3128_v15 }
 0x3ad   :  { %v3220_v33 = vsel %vm2673_vm5, %v3218_v51, %v3219_v7  ;;  %v3222_v5 = vrot.slane %v3187_v19, 2  ;;  %v3171_v37 = vadd.f32 %v3147_v24, %v3129_v9  ;;  %v3190_v12 = vmax.f32 %v3170_v43, 0.0 }
 0x3ae   :  { %3243 = vst [vmem:[#allocation13 + $0x50] sm:$0xff] %v3220_v33 }
 0x3af   :  { %v3223_v45 = vsel %vm2673_vm5, %v3221_v16, %v3222_v5  ;;  %v3191_v1 = vmax.f32 %v3171_v37, 0.0  ;;  %v3228_v40 = vrot.slane %v3190_v12, 2 }
 0x3b0   :  { %3244 = vst [vmem:[#allocation13 + $0x58] sm:$0xff] %v3223_v45 }
 0x3b1   :  { %v3230_v20 = vrot.slane %v3191_v1, 2  ;;  %v3229_v53 = vsel %vm2673_vm5, %v3219_v7, %v3228_v40 }
 0x3b2   :  { %3247 = vst [vmem:[#allocation13 + $0x70] sm:$0xff] %v3229_v53 }
 0x3b3   :  { %v3231_v31 = vsel %vm2673_vm5, %v3222_v5, %v3230_v20 }
 0x3b4   :  { %3248 = vst [vmem:[#allocation13 + $0x78] sm:$0xff] %v3231_v31 }
 0x3b5   :  { %3442 = shalt.err (!%p3439_p1)
}
 0x3b6   :  { %3260 = dma.vmem_to_hbm [thread:$0]  %s3255_s4, 2048, %s4226_s5, [#allocation6], %s3460_s21, %s3460_s21, %s3461_s22  }
 0x3b7   :  { %3457 = dma.done.wait [#allocation6], 2048  }
 0x3b8   :  { %3458 = vsyncadd [#allocation6], 4294965248 }
 0x3b9   :  { %3264 = vsyncpa [#allocation5], 1 }
 0x3ba   :  { %3265 = vsyncpa [#allocation8], 1 }
 0x3bb   :  { %3266 = vsyncpa [#allocation11], 1 }
 0x3bc   :  { %3267 = vsyncpa [#allocation6], 1 }

</bundles_post_ra>
